<compile_context>
chip_gen: v7x
topology: tpu7x:2x2x1
jax: 0.10.0
libtpu: 0.0.40
codegen_flags: <defaults>
</compile_context>

<pallas_src>
import functools
import math

import jax
import jax.numpy as jnp
import numpy as np
from jax.experimental import pallas as pl
from jax.experimental.pallas import tpu as pltpu


# ------------------------------ fused Pallas kernel ------------------------------

def _se_bottleneck_kernel(H, W, DC2, DC,
                          x_ref, wstem_ref, shstem_ref,
                          w12_ref, sh12_ref, w22_ref, sh22_ref,
                          w23_ref, sh23_ref, wfa_ref, wfb_ref, shf_ref,
                          fw1_ref, fb1_ref, fw2_ref, fb2_ref,
                          o_ref, pad_ref):
    """Whole SEBottleneck forward for one image (NHWC rows = pixels, lanes = channels)."""
    bf16 = jnp.bfloat16
    f32 = jnp.float32
    Wp = W + 2                 # padded row width (1 left + 1 right phantom column)
    HW = H * W
    n_rows = H * Wp            # rows of the Wp-padded conv accumulator
    base = Wp + 1              # flat index of pixel (0, 0) inside the padded slab

    # ---- stem: conv1_1 & conv2_1 (1x1) as ONE matmul; BN scale pre-folded into weights
    x_f32 = x_ref[0]                                            # (HW, Cin) f32 (also residual)
    stem = jnp.dot(x_f32.astype(bf16), wstem_ref[...],
                   preferred_element_type=f32)
    stem = jnp.maximum(stem + shstem_ref[...], 0.0)             # (HW, DC2 + DC) f32
    t1 = stem[:, :DC2]                                          # branch1 input
    t2 = stem[:, DC2:]                                          # branch2 input

    # ---- grouped 3x3 conv (stride 1, pad 1) via a zero-padded flat slab in VMEM scratch.
    # The input is scattered into the zeroed slab in-kernel (no jnp.pad in XLA); each of
    # the 9 taps is then a contiguous shifted slab read -> 9 MXU dots accumulated in f32.
    # Output rows are the flattened (H, Wp) grid (2 phantom columns per row, never stored
    # to HBM; they are skipped when re-scattering / pooling / storing).
    def conv3x3(src, src_stride, cin, w9_ref, shift_ref):
        pad_ref[...] = jnp.zeros_like(pad_ref)
        for h in range(H):                                      # scatter valid pixels
            r = base + h * Wp
            pad_ref[r:r + W, :cin] = src[h * src_stride:h * src_stride + W, :cin]
        acc = None
        for dy in range(3):
            for dx in range(3):
                off = dy * Wp + dx
                patch = pad_ref[off:off + n_rows, :cin].astype(bf16)
                d = jnp.dot(patch, w9_ref[dy * 3 + dx], preferred_element_type=f32)
                acc = d if acc is None else acc + d
        return jnp.maximum(acc + shift_ref[...], 0.0)           # (H*Wp, cout) f32

    b1 = conv3x3(t1, W, DC2, w12_ref, sh12_ref)    # conv1_2 + bn_concat[:DC2] + relu
    b2 = conv3x3(t2, W, DC, w22_ref, sh22_ref)     # conv2_2 + bn2_2 + relu
    b2 = conv3x3(b2, Wp, DC, w23_ref, sh23_ref)    # conv2_3 + bn_concat[DC2:] + relu

    # ---- final 1x1 conv as two dots (no concat buffer) + folded BN shift (no relu yet)
    out = jnp.dot(b1.astype(bf16), wfa_ref[...], preferred_element_type=f32)
    out = out + jnp.dot(b2.astype(bf16), wfb_ref[...], preferred_element_type=f32)
    out = out + shf_ref[...]                                    # (H*Wp, Cout) f32

    # ---- SE: global average pool over the VALID pixels only (phantom columns excluded)
    pooled = None
    for h in range(H):
        part = jnp.sum(out[h * Wp:h * Wp + W, :], axis=0, keepdims=True)
        pooled = part if pooled is None else pooled + part
    pooled = pooled * (1.0 / HW)                                # (1, Cout)
    se = jnp.maximum(jnp.dot(pooled, fw1_ref[...], preferred_element_type=f32)
                     + fb1_ref[...], 0.0)                       # fc1 + relu
    se = jax.nn.sigmoid(jnp.dot(se, fw2_ref[...], preferred_element_type=f32)
                        + fb2_ref[...])                         # fc2 + sigmoid, (1, Cout)

    # ---- SE channel scale + residual add (f32 x) + final ReLU; store valid rows only
    for h in range(H):
        y = out[h * Wp:h * Wp + W, :] * se + x_f32[h * W:(h + 1) * W, :]
        o_ref[0, h * W:(h + 1) * W, :] = jnp.maximum(y, 0.0).astype(o_ref.dtype)


# ---------------------------------- JAX wrapper -----------------------------------

def bn_fold(bnp, eps=1e-5):
    """Fold eval-mode BatchNorm into per-channel (scale, shift), f32."""
    gamma, beta, mean, var = bnp
    scale = gamma / jnp.sqrt(var + eps)
    return scale, beta - mean * scale


def block_diag_3x3(w_groups):
    """(G,3,3,ci,co) grouped HWIO weights -> dense block-diagonal (3,3,G*ci,G*co).
    TODO(synk): at real cardinality (per-group channels >= 128) use true grouped
    matmuls instead of this G x FLOP dense fusion."""
    G, kh, kw, ci, co = w_groups.shape
    w = jnp.zeros((kh, kw, G * ci, G * co), w_groups.dtype)
    for g in range(G):
        w = w.at[:, :, g * ci:(g + 1) * ci, g * co:(g + 1) * co].set(w_groups[g])
    return w


def se_bottleneck_forward(x_nchw, p):
    bf16 = jnp.bfloat16
    N, Cin, H, W = x_nchw.shape
    HW = H * W
    DC2 = p['conv1_1_w'].shape[1]
    DC = p['conv2_1_w'].shape[1]
    DC3 = DC2 + DC
    Cout = p['conv_w'].shape[1]
    Cr = p['fc1_w'].shape[1]
    assert Cout == Cin, "residual add requires inplanes == planes*4 (downsample=None)"
    Wp = W + 2
    P = (H + 3) * Wp           # padded flat slab rows (1 top, 2 bottom rows for over-read)

    # Fold eval-mode BN scales into the bf16 weights on the host; only f32 shifts go to
    # the kernel epilogues (removes one full-tile VPU multiply + a broadcast per stage).
    s11, sh11 = bn_fold(p['bn1_1'])
    s21, sh21 = bn_fold(p['bn2_1'])
    s22, sh22 = bn_fold(p['bn2_2'])
    scat, shcat = bn_fold(p['bn_concat'])
    sbn, shbn = bn_fold(p['bn'])

    w_stem = jnp.concatenate([p['conv1_1_w'] * s11, p['conv2_1_w'] * s21],
                             axis=1).astype(bf16)                       # (Cin, DC3)
    sh_stem = jnp.concatenate([sh11, sh21]).reshape(1, DC3)
    w12 = (block_diag_3x3(p['conv1_2_w']) * scat[:DC2]).reshape(9, DC2, DC2).astype(bf16)
    w22 = (block_diag_3x3(p['conv2_2_w']) * s22).reshape(9, DC, DC).astype(bf16)
    w23 = (block_diag_3x3(p['conv2_3_w']) * scat[DC2:]).reshape(9, DC, DC).astype(bf16)
    wfa = (p['conv_w'][:DC2] * sbn).astype(bf16)                        # branch1 rows
    wfb = (p['conv_w'][DC2:] * sbn).astype(bf16)                        # branch2 rows

    # NCHW -> (N, HW, Cin) once at the boundary (tiny; see TODO about fusing in-kernel).
    x_nhwc = jnp.transpose(x_nchw, (0, 2, 3, 1)).astype(jnp.float32).reshape(N, HW, Cin)

    kernel = functools.partial(_se_bottleneck_kernel, H, W, DC2, DC)
    flops = N * (2 * HW * Cin * DC3
                 + 2 * H * Wp * 9 * (DC2 * DC2 + 2 * DC * DC)
                 + 2 * H * Wp * DC3 * Cout
                 + 4 * Cout * Cr + 5 * HW * Cout)
    bytes_acc = (N * HW * (Cin + Cout) * 4
                 + 2 * (Cin * DC3 + 9 * (DC2 * DC2 + 2 * DC * DC) + DC3 * Cout)
                 + 4 * (DC3 + DC2 + 2 * DC + 2 * Cout + 2 * Cout * Cr + Cr))

    c2 = lambda b: (0, 0)
    c3 = lambda b: (0, 0, 0)
    out = pl.pallas_call(
        kernel,
        out_shape=jax.ShapeDtypeStruct((N, HW, Cout), jnp.float32),
        grid=(N,),
        in_specs=[
            pl.BlockSpec((1, HW, Cin), lambda b: (b, 0, 0)),   # x (stem input + residual)
            pl.BlockSpec((Cin, DC3), c2),                      # fused stem weight
            pl.BlockSpec((1, DC3), c2),                        # stem shift
            pl.BlockSpec((9, DC2, DC2), c3),                   # conv1_2 (block-diag, scaled)
            pl.BlockSpec((1, DC2), c2),
            pl.BlockSpec((9, DC, DC), c3),                     # conv2_2
            pl.BlockSpec((1, DC), c2),
            pl.BlockSpec((9, DC, DC), c3),                     # conv2_3
            pl.BlockSpec((1, DC), c2),
            pl.BlockSpec((DC2, Cout), c2),                     # final conv, branch1 rows
            pl.BlockSpec((DC, Cout), c2),                      # final conv, branch2 rows
            pl.BlockSpec((1, Cout), c2),                       # final bn shift
            pl.BlockSpec((Cout, Cr), c2),                      # fc1
            pl.BlockSpec((1, Cr), c2),
            pl.BlockSpec((Cr, Cout), c2),                      # fc2
            pl.BlockSpec((1, Cout), c2),
        ],
        out_specs=pl.BlockSpec((1, HW, Cout), lambda b: (b, 0, 0)),
        scratch_shapes=[pltpu.VMEM((P, DC2), jnp.float32)],    # zero-padded conv slab
        compiler_params=pltpu.CompilerParams(dimension_semantics=("parallel",)),
        cost_estimate=pl.CostEstimate(flops=flops, transcendentals=N * Cout,
                                      bytes_accessed=bytes_acc),
    )(x_nhwc, w_stem, sh_stem,
      w12, shcat[:DC2].reshape(1, DC2),
      w22, sh22.reshape(1, DC),
      w23, shcat[DC2:].reshape(1, DC),
      wfa, wfb, shbn.reshape(1, Cout),
      p['fc1_w'], p['fc1_b'].reshape(1, Cr),
      p['fc2_w'], p['fc2_b'].reshape(1, Cout))

    return jnp.transpose(out.reshape(N, H, W, Cout), (0, 3, 1, 2))       # NHWC -> NCHW


# ---------------------- deterministic synthetic parameters -----------------------

def init_params(key, inplanes, planes, baseWidth, C):
    D = int(math.floor(planes * (baseWidth / 128)))
    DC, DC2, DC3, Cout = D * C, D * C * 2, D * C * 3, planes * 4
    Cr = int(planes / 4)
    G2 = int(C * 0.5)
    ks = jax.random.split(key, 16)

    def w(k, shape, scale=0.1):
        return scale * jax.random.normal(k, shape, jnp.float32)

    def bn(k, c):
        k1, k2, k3, k4 = jax.random.split(k, 4)
        return (1.0 + 0.1 * jax.random.normal(k1, (c,), jnp.float32),
                0.1 * jax.random.normal(k2, (c,), jnp.float32),
                0.1 * jax.random.normal(k3, (c,), jnp.float32),
                1.0 + 0.1 * jax.random.uniform(k4, (c,), jnp.float32))

    return {
        'conv1_1_w': w(ks[0], (inplanes, DC2)),                  # 1x1 conv as (Cin, Cout)
        'bn1_1': bn(ks[1], DC2),
        'conv1_2_w': w(ks[2], (C, 3, 3, DC2 // C, DC2 // C)),    # grouped 3x3, HWIO per group
        'conv2_1_w': w(ks[3], (inplanes, DC)),
        'bn2_1': bn(ks[4], DC),
        'conv2_2_w': w(ks[5], (G2, 3, 3, DC // G2, DC // G2)),
        'bn2_2': bn(ks[6], DC),
        'conv2_3_w': w(ks[7], (G2, 3, 3, DC // G2, DC // G2)),
        'bn_concat': bn(ks[8], DC3),
        'conv_w': w(ks[9], (DC3, Cout)),
        'bn': bn(ks[10], Cout),
        'fc1_w': w(ks[11], (Cout, Cr)),
        'fc1_b': w(ks[12], (Cr,)),
        'fc2_w': w(ks[13], (Cr, Cout)),
        'fc2_b': w(ks[14], (Cout,)),
    }


# -------------------------- pure-JAX reference (check) ---------------------------
# Mirrors the kernel's precision choices: BN scale folded into bf16 weights, bf16 conv
# operands, f32 accumulation / shifts / SE math, f32 residual add.

def se_bottleneck_ref(x_nchw, p, eps=1e-5):
    bf16 = jnp.bfloat16
    relu = lambda t: jnp.maximum(t, 0.0)

    def fold(b):
        g, be, m, v = b
        s = g * jax.lax.rsqrt(v + eps)
        return s, be - m * s

    def conv(x, w, scale, groups=1):
        return jax.lax.conv_general_dilated(
            x.astype(bf16), (w * scale).astype(bf16), window_strides=(1, 1),
            padding='SAME', dimension_numbers=('NHWC', 'HWIO', 'NHWC'),
            feature_group_count=groups, preferred_element_type=jnp.float32)

    gw = lambda wg: jnp.concatenate(list(wg), axis=-1)    # (G,3,3,ci,co) -> (3,3,ci,G*co)
    DC2 = p['conv1_1_w'].shape[1]
    s11, sh11 = fold(p['bn1_1'])
    s21, sh21 = fold(p['bn2_1'])
    s22, sh22 = fold(p['bn2_2'])
    scat, shcat = fold(p['bn_concat'])
    sbn, shbn = fold(p['bn'])

    x = jnp.transpose(x_nchw, (0, 2, 3, 1)).astype(jnp.float32)
    b1 = relu(conv(x, p['conv1_1_w'][None, None], s11) + sh11)
    b1 = relu(conv(b1, gw(p['conv1_2_w']), scat[:DC2],
                   groups=p['conv1_2_w'].shape[0]) + shcat[:DC2])
    b2 = relu(conv(x, p['conv2_1_w'][None, None], s21) + sh21)
    b2 = relu(conv(b2, gw(p['conv2_2_w']), s22,
                   groups=p['conv2_2_w'].shape[0]) + sh22)
    b2 = relu(conv(b2, gw(p['conv2_3_w']), scat[DC2:],
                   groups=p['conv2_3_w'].shape[0]) + shcat[DC2:])
    out = conv(jnp.concatenate([b1, b2], axis=-1), p['conv_w'][None, None], sbn) + shbn
    se = out.mean(axis=(1, 2))
    se = relu(se @ p['fc1_w'] + p['fc1_b'])
    se = jax.nn.sigmoid(se @ p['fc2_w'] + p['fc2_b'])
    out = relu(out * se[:, None, None, :] + x)
    return jnp.transpose(out, (0, 3, 1, 2))


# ------------------------------------- main ---------------------------------------

if __name__ == "__main__":
    # Module config: inplanes=32, planes=8, baseWidth=32, cardinality=2, stride=1,
    # downsample=None, ave_kernel=8 (global pool over the 8x8 feature map)
    #   -> D=2, D*C=4, D*C*2=8, D*C*3=12, planes*4=32 (== inplanes, residual works).
    N, H, W = 2, 8, 8
    inplanes, planes, baseWidth, C = 32, 8, 32, 2

    key = jax.random.PRNGKey(0)
    kx, kp = jax.random.split(key)
    x = jax.random.normal(kx, (N, inplanes, H, W), jnp.float32)   # NCHW input
    params = init_params(kp, inplanes, planes, baseWidth, C)

    y = jax.block_until_ready(jax.jit(se_bottleneck_forward)(x, params))
    y_ref = jax.block_until_ready(se_bottleneck_ref(x, params))
    np.testing.assert_allclose(np.asarray(y), np.asarray(y_ref),
                               rtol=5e-3, atol=5e-3)

    print("KERNEL_OK")
</pallas_src>

<mosaic_0001>
module attributes {stable_mosaic.version = 11 : i64} {
  func.func @_se_bottleneck_kernel(%arg0: i32, %arg1: memref<1x64x32xf32, #tpu.memory_space<vmem>>, %arg2: memref<32x12xbf16, #tpu.memory_space<vmem>>, %arg3: memref<1x12xf32, #tpu.memory_space<vmem>>, %arg4: memref<9x8x8xbf16, #tpu.memory_space<vmem>>, %arg5: memref<1x8xf32, #tpu.memory_space<vmem>>, %arg6: memref<9x4x4xbf16, #tpu.memory_space<vmem>>, %arg7: memref<1x4xf32, #tpu.memory_space<vmem>>, %arg8: memref<9x4x4xbf16, #tpu.memory_space<vmem>>, %arg9: memref<1x4xf32, #tpu.memory_space<vmem>>, %arg10: memref<8x32xbf16, #tpu.memory_space<vmem>>, %arg11: memref<4x32xbf16, #tpu.memory_space<vmem>>, %arg12: memref<1x32xf32, #tpu.memory_space<vmem>>, %arg13: memref<32x2xf32, #tpu.memory_space<vmem>>, %arg14: memref<1x2xf32, #tpu.memory_space<vmem>>, %arg15: memref<2x32xf32, #tpu.memory_space<vmem>>, %arg16: memref<1x32xf32, #tpu.memory_space<vmem>>, %arg17: memref<1x64x32xf32, #tpu.memory_space<vmem>>, %arg18: memref<110x8xf32, #tpu.memory_space<vmem>>) attributes {dimension_semantics = [#tpu.dimension_semantics<parallel>], iteration_bounds = array<i64: 2>, scalar_prefetch = 0 : i64, scratch_operands = 1 : i64, tpu.core_type = #tpu.core_type<tc>, window_params = [{transform_indices = @transform_0, window_bounds = array<i64: 1, 64, 32>}, {pipeline_mode = #tpu.pipeline_mode<synchronous>, transform_indices = @transform_1, window_bounds = array<i64: 32, 12>}, {pipeline_mode = #tpu.pipeline_mode<synchronous>, transform_indices = @transform_2, window_bounds = array<i64: 1, 12>}, {pipeline_mode = #tpu.pipeline_mode<synchronous>, transform_indices = @transform_3, window_bounds = array<i64: 9, 8, 8>}, {pipeline_mode = #tpu.pipeline_mode<synchronous>, transform_indices = @transform_4, window_bounds = array<i64: 1, 8>}, {pipeline_mode = #tpu.pipeline_mode<synchronous>, transform_indices = @transform_5, window_bounds = array<i64: 9, 4, 4>}, {pipeline_mode = #tpu.pipeline_mode<synchronous>, transform_indices = @transform_6, window_bounds = array<i64: 1, 4>}, {pipeline_mode = #tpu.pipeline_mode<synchronous>, transform_indices = @transform_7, window_bounds = array<i64: 9, 4, 4>}, {pipeline_mode = #tpu.pipeline_mode<synchronous>, transform_indices = @transform_8, window_bounds = array<i64: 1, 4>}, {pipeline_mode = #tpu.pipeline_mode<synchronous>, transform_indices = @transform_9, window_bounds = array<i64: 8, 32>}, {pipeline_mode = #tpu.pipeline_mode<synchronous>, transform_indices = @transform_10, window_bounds = array<i64: 4, 32>}, {pipeline_mode = #tpu.pipeline_mode<synchronous>, transform_indices = @transform_11, window_bounds = array<i64: 1, 32>}, {pipeline_mode = #tpu.pipeline_mode<synchronous>, transform_indices = @transform_12, window_bounds = array<i64: 32, 2>}, {pipeline_mode = #tpu.pipeline_mode<synchronous>, transform_indices = @transform_13, window_bounds = array<i64: 1, 2>}, {pipeline_mode = #tpu.pipeline_mode<synchronous>, transform_indices = @transform_14, window_bounds = array<i64: 2, 32>}, {pipeline_mode = #tpu.pipeline_mode<synchronous>, transform_indices = @transform_15, window_bounds = array<i64: 1, 32>}, {transform_indices = @transform_16, window_bounds = array<i64: 1, 64, 32>}]} {
    %c0 = arith.constant 0 : index
    %c0_0 = arith.constant 0 : index
    %c0_1 = arith.constant 0 : index
    %0 = vector.load %arg1[%c0, %c0_0, %c0_1] : memref<1x64x32xf32, #tpu.memory_space<vmem>>, vector<1x64x32xf32>
    %1 = vector.shape_cast %0 : vector<1x64x32xf32> to vector<64x32xf32>
    %2 = arith.truncf %1 : vector<64x32xf32> to vector<64x32xbf16>
    %c0_2 = arith.constant 0 : index
    %c0_3 = arith.constant 0 : index
    %3 = vector.load %arg2[%c0_2, %c0_3] : memref<32x12xbf16, #tpu.memory_space<vmem>>, vector<32x12xbf16>
    %cst = arith.constant dense<0.000000e+00> : vector<64x12xf32>
    %4 = tpu.matmul %2, %3, %cst {dimension_numbers = #tpu.dot_dimension_numbers<[1], [0], [0], [1], [0, 0, 1, 1], [], []>} : vector<64x32xbf16>, vector<32x12xbf16>, vector<64x12xf32> -> vector<64x12xf32>
    %c0_4 = arith.constant 0 : index
    %c0_5 = arith.constant 0 : index
    %5 = vector.load %arg3[%c0_4, %c0_5] : memref<1x12xf32, #tpu.memory_space<vmem>>, vector<1x12xf32>
    %6 = vector.broadcast %5 : vector<1x12xf32> to vector<64x12xf32>
    %7 = arith.addf %4, %6 : vector<64x12xf32>
    %cst_6 = arith.constant 0.000000e+00 : f32
    %8 = vector.broadcast %cst_6 : f32 to vector<64x12xf32>
    %9 = arith.maximumf %7, %8 : vector<64x12xf32>
    %10 = vector.extract_strided_slice %9 {offsets = [0, 0], sizes = [64, 8], strides = [1, 1]} : vector<64x12xf32> to vector<64x8xf32>
    %11 = vector.extract_strided_slice %9 {offsets = [0, 8], sizes = [64, 4], strides = [1, 1]} : vector<64x12xf32> to vector<64x4xf32>
    %cst_7 = arith.constant 0.000000e+00 : f32
    %12 = vector.broadcast %cst_7 : f32 to vector<110x8xf32>
    %c0_8 = arith.constant 0 : index
    %c0_9 = arith.constant 0 : index
    %13 = vector.load %arg18[%c0_8, %c0_9] : memref<110x8xf32, #tpu.memory_space<vmem>>, vector<110x8xf32>
    tpu.vector_store %arg18[%c0_8, %c0_9], %12 {strides = array<i32>} : memref<110x8xf32, #tpu.memory_space<vmem>>, vector<110x8xf32>,
    %14 = vector.extract_strided_slice %10 {offsets = [0, 0], sizes = [8, 8], strides = [1, 1]} : vector<64x8xf32> to vector<8x8xf32>
    %c11 = arith.constant 11 : index
    %c0_10 = arith.constant 0 : index
    %15 = vector.load %arg18[%c11, %c0_10] : memref<110x8xf32, #tpu.memory_space<vmem>>, vector<8x8xf32>
    tpu.vector_store %arg18[%c11, %c0_10], %14 {strides = array<i32>} : memref<110x8xf32, #tpu.memory_space<vmem>>, vector<8x8xf32>,
    %16 = vector.extract_strided_slice %10 {offsets = [8, 0], sizes = [8, 8], strides = [1, 1]} : vector<64x8xf32> to vector<8x8xf32>
    %c21 = arith.constant 21 : index
    %c0_11 = arith.constant 0 : index
    %17 = vector.load %arg18[%c21, %c0_11] : memref<110x8xf32, #tpu.memory_space<vmem>>, vector<8x8xf32>
    tpu.vector_store %arg18[%c21, %c0_11], %16 {strides = array<i32>} : memref<110x8xf32, #tpu.memory_space<vmem>>, vector<8x8xf32>,
    %18 = vector.extract_strided_slice %10 {offsets = [16, 0], sizes = [8, 8], strides = [1, 1]} : vector<64x8xf32> to vector<8x8xf32>
    %c31 = arith.constant 31 : index
    %c0_12 = arith.constant 0 : index
    %19 = vector.load %arg18[%c31, %c0_12] : memref<110x8xf32, #tpu.memory_space<vmem>>, vector<8x8xf32>
    tpu.vector_store %arg18[%c31, %c0_12], %18 {strides = array<i32>} : memref<110x8xf32, #tpu.memory_space<vmem>>, vector<8x8xf32>,
    %20 = vector.extract_strided_slice %10 {offsets = [24, 0], sizes = [8, 8], strides = [1, 1]} : vector<64x8xf32> to vector<8x8xf32>
    %c41 = arith.constant 41 : index
    %c0_13 = arith.constant 0 : index
    %21 = vector.load %arg18[%c41, %c0_13] : memref<110x8xf32, #tpu.memory_space<vmem>>, vector<8x8xf32>
    tpu.vector_store %arg18[%c41, %c0_13], %20 {strides = array<i32>} : memref<110x8xf32, #tpu.memory_space<vmem>>, vector<8x8xf32>,
    %22 = vector.extract_strided_slice %10 {offsets = [32, 0], sizes = [8, 8], strides = [1, 1]} : vector<64x8xf32> to vector<8x8xf32>
    %c51 = arith.constant 51 : index
    %c0_14 = arith.constant 0 : index
    %23 = vector.load %arg18[%c51, %c0_14] : memref<110x8xf32, #tpu.memory_space<vmem>>, vector<8x8xf32>
    tpu.vector_store %arg18[%c51, %c0_14], %22 {strides = array<i32>} : memref<110x8xf32, #tpu.memory_space<vmem>>, vector<8x8xf32>,
    %24 = vector.extract_strided_slice %10 {offsets = [40, 0], sizes = [8, 8], strides = [1, 1]} : vector<64x8xf32> to vector<8x8xf32>
    %c61 = arith.constant 61 : index
    %c0_15 = arith.constant 0 : index
    %25 = vector.load %arg18[%c61, %c0_15] : memref<110x8xf32, #tpu.memory_space<vmem>>, vector<8x8xf32>
    tpu.vector_store %arg18[%c61, %c0_15], %24 {strides = array<i32>} : memref<110x8xf32, #tpu.memory_space<vmem>>, vector<8x8xf32>,
    %26 = vector.extract_strided_slice %10 {offsets = [48, 0], sizes = [8, 8], strides = [1, 1]} : vector<64x8xf32> to vector<8x8xf32>
    %c71 = arith.constant 71 : index
    %c0_16 = arith.constant 0 : index
    %27 = vector.load %arg18[%c71, %c0_16] : memref<110x8xf32, #tpu.memory_space<vmem>>, vector<8x8xf32>
    tpu.vector_store %arg18[%c71, %c0_16], %26 {strides = array<i32>} : memref<110x8xf32, #tpu.memory_space<vmem>>, vector<8x8xf32>,
    %28 = vector.extract_strided_slice %10 {offsets = [56, 0], sizes = [8, 8], strides = [1, 1]} : vector<64x8xf32> to vector<8x8xf32>
    %c81 = arith.constant 81 : index
    %c0_17 = arith.constant 0 : index
    %29 = vector.load %arg18[%c81, %c0_17] : memref<110x8xf32, #tpu.memory_space<vmem>>, vector<8x8xf32>
    tpu.vector_store %arg18[%c81, %c0_17], %28 {strides = array<i32>} : memref<110x8xf32, #tpu.memory_space<vmem>>, vector<8x8xf32>,
    %c0_18 = arith.constant 0 : index
    %c0_19 = arith.constant 0 : index
    %30 = vector.load %arg18[%c0_18, %c0_19] : memref<110x8xf32, #tpu.memory_space<vmem>>, vector<80x8xf32>
    %31 = arith.truncf %30 : vector<80x8xf32> to vector<80x8xbf16>
    %c0_20 = arith.constant 0 : index
    %c0_21 = arith.constant 0 : index
    %c0_22 = arith.constant 0 : index
    %32 = vector.load %arg4[%c0_20, %c0_21, %c0_22] : memref<9x8x8xbf16, #tpu.memory_space<vmem>>, vector<1x8x8xbf16>
    %33 = vector.shape_cast %32 : vector<1x8x8xbf16> to vector<8x8xbf16>
    %cst_23 = arith.constant dense<0.000000e+00> : vector<80x8xf32>
    %34 = tpu.matmul %31, %33, %cst_23 {dimension_numbers = #tpu.dot_dimension_numbers<[1], [0], [0], [1], [0, 0, 1, 1], [], []>} : vector<80x8xbf16>, vector<8x8xbf16>, vector<80x8xf32> -> vector<80x8xf32>
    %c1 = arith.constant 1 : index
    %c0_24 = arith.constant 0 : index
    %35 = vector.load %arg18[%c1, %c0_24] : memref<110x8xf32, #tpu.memory_space<vmem>>, vector<80x8xf32>
    %36 = arith.truncf %35 : vector<80x8xf32> to vector<80x8xbf16>
    %c1_25 = arith.constant 1 : index
    %c0_26 = arith.constant 0 : index
    %c0_27 = arith.constant 0 : index
    %37 = vector.load %arg4[%c1_25, %c0_26, %c0_27] : memref<9x8x8xbf16, #tpu.memory_space<vmem>>, vector<1x8x8xbf16>
    %38 = vector.shape_cast %37 : vector<1x8x8xbf16> to vector<8x8xbf16>
    %cst_28 = arith.constant dense<0.000000e+00> : vector<80x8xf32>
    %39 = tpu.matmul %36, %38, %cst_28 {dimension_numbers = #tpu.dot_dimension_numbers<[1], [0], [0], [1], [0, 0, 1, 1], [], []>} : vector<80x8xbf16>, vector<8x8xbf16>, vector<80x8xf32> -> vector<80x8xf32>
    %40 = arith.addf %34, %39 : vector<80x8xf32>
    %c2 = arith.constant 2 : index
    %c0_29 = arith.constant 0 : index
    %41 = vector.load %arg18[%c2, %c0_29] : memref<110x8xf32, #tpu.memory_space<vmem>>, vector<80x8xf32>
    %42 = arith.truncf %41 : vector<80x8xf32> to vector<80x8xbf16>
    %c2_30 = arith.constant 2 : index
    %c0_31 = arith.constant 0 : index
    %c0_32 = arith.constant 0 : index
    %43 = vector.load %arg4[%c2_30, %c0_31, %c0_32] : memref<9x8x8xbf16, #tpu.memory_space<vmem>>, vector<1x8x8xbf16>
    %44 = vector.shape_cast %43 : vector<1x8x8xbf16> to vector<8x8xbf16>
    %cst_33 = arith.constant dense<0.000000e+00> : vector<80x8xf32>
    %45 = tpu.matmul %42, %44, %cst_33 {dimension_numbers = #tpu.dot_dimension_numbers<[1], [0], [0], [1], [0, 0, 1, 1], [], []>} : vector<80x8xbf16>, vector<8x8xbf16>, vector<80x8xf32> -> vector<80x8xf32>
    %46 = arith.addf %40, %45 : vector<80x8xf32>
    %c10 = arith.constant 10 : index
    %c0_34 = arith.constant 0 : index
    %47 = vector.load %arg18[%c10, %c0_34] : memref<110x8xf32, #tpu.memory_space<vmem>>, vector<80x8xf32>
    %48 = arith.truncf %47 : vector<80x8xf32> to vector<80x8xbf16>
    %c3 = arith.constant 3 : index
    %c0_35 = arith.constant 0 : index
    %c0_36 = arith.constant 0 : index
    %49 = vector.load %arg4[%c3, %c0_35, %c0_36] : memref<9x8x8xbf16, #tpu.memory_space<vmem>>, vector<1x8x8xbf16>
    %50 = vector.shape_cast %49 : vector<1x8x8xbf16> to vector<8x8xbf16>
    %cst_37 = arith.constant dense<0.000000e+00> : vector<80x8xf32>
    %51 = tpu.matmul %48, %50, %cst_37 {dimension_numbers = #tpu.dot_dimension_numbers<[1], [0], [0], [1], [0, 0, 1, 1], [], []>} : vector<80x8xbf16>, vector<8x8xbf16>, vector<80x8xf32> -> vector<80x8xf32>
    %52 = arith.addf %46, %51 : vector<80x8xf32>
    %c11_38 = arith.constant 11 : index
    %c0_39 = arith.constant 0 : index
    %53 = vector.load %arg18[%c11_38, %c0_39] : memref<110x8xf32, #tpu.memory_space<vmem>>, vector<80x8xf32>
    %54 = arith.truncf %53 : vector<80x8xf32> to vector<80x8xbf16>
    %c4 = arith.constant 4 : index
    %c0_40 = arith.constant 0 : index
    %c0_41 = arith.constant 0 : index
    %55 = vector.load %arg4[%c4, %c0_40, %c0_41] : memref<9x8x8xbf16, #tpu.memory_space<vmem>>, vector<1x8x8xbf16>
    %56 = vector.shape_cast %55 : vector<1x8x8xbf16> to vector<8x8xbf16>
    %cst_42 = arith.constant dense<0.000000e+00> : vector<80x8xf32>
    %57 = tpu.matmul %54, %56, %cst_42 {dimension_numbers = #tpu.dot_dimension_numbers<[1], [0], [0], [1], [0, 0, 1, 1], [], []>} : vector<80x8xbf16>, vector<8x8xbf16>, vector<80x8xf32> -> vector<80x8xf32>
    %58 = arith.addf %52, %57 : vector<80x8xf32>
    %c12 = arith.constant 12 : index
    %c0_43 = arith.constant 0 : index
    %59 = vector.load %arg18[%c12, %c0_43] : memref<110x8xf32, #tpu.memory_space<vmem>>, vector<80x8xf32>
    %60 = arith.truncf %59 : vector<80x8xf32> to vector<80x8xbf16>
    %c5 = arith.constant 5 : index
    %c0_44 = arith.constant 0 : index
    %c0_45 = arith.constant 0 : index
    %61 = vector.load %arg4[%c5, %c0_44, %c0_45] : memref<9x8x8xbf16, #tpu.memory_space<vmem>>, vector<1x8x8xbf16>
    %62 = vector.shape_cast %61 : vector<1x8x8xbf16> to vector<8x8xbf16>
    %cst_46 = arith.constant dense<0.000000e+00> : vector<80x8xf32>
    %63 = tpu.matmul %60, %62, %cst_46 {dimension_numbers = #tpu.dot_dimension_numbers<[1], [0], [0], [1], [0, 0, 1, 1], [], []>} : vector<80x8xbf16>, vector<8x8xbf16>, vector<80x8xf32> -> vector<80x8xf32>
    %64 = arith.addf %58, %63 : vector<80x8xf32>
    %c20 = arith.constant 20 : index
    %c0_47 = arith.constant 0 : index
    %65 = vector.load %arg18[%c20, %c0_47] : memref<110x8xf32, #tpu.memory_space<vmem>>, vector<80x8xf32>
    %66 = arith.truncf %65 : vector<80x8xf32> to vector<80x8xbf16>
    %c6 = arith.constant 6 : index
    %c0_48 = arith.constant 0 : index
    %c0_49 = arith.constant 0 : index
    %67 = vector.load %arg4[%c6, %c0_48, %c0_49] : memref<9x8x8xbf16, #tpu.memory_space<vmem>>, vector<1x8x8xbf16>
    %68 = vector.shape_cast %67 : vector<1x8x8xbf16> to vector<8x8xbf16>
    %cst_50 = arith.constant dense<0.000000e+00> : vector<80x8xf32>
    %69 = tpu.matmul %66, %68, %cst_50 {dimension_numbers = #tpu.dot_dimension_numbers<[1], [0], [0], [1], [0, 0, 1, 1], [], []>} : vector<80x8xbf16>, vector<8x8xbf16>, vector<80x8xf32> -> vector<80x8xf32>
    %70 = arith.addf %64, %69 : vector<80x8xf32>
    %c21_51 = arith.constant 21 : index
    %c0_52 = arith.constant 0 : index
    %71 = vector.load %arg18[%c21_51, %c0_52] : memref<110x8xf32, #tpu.memory_space<vmem>>, vector<80x8xf32>
    %72 = arith.truncf %71 : vector<80x8xf32> to vector<80x8xbf16>
    %c7 = arith.constant 7 : index
    %c0_53 = arith.constant 0 : index
    %c0_54 = arith.constant 0 : index
    %73 = vector.load %arg4[%c7, %c0_53, %c0_54] : memref<9x8x8xbf16, #tpu.memory_space<vmem>>, vector<1x8x8xbf16>
    %74 = vector.shape_cast %73 : vector<1x8x8xbf16> to vector<8x8xbf16>
    %cst_55 = arith.constant dense<0.000000e+00> : vector<80x8xf32>
    %75 = tpu.matmul %72, %74, %cst_55 {dimension_numbers = #tpu.dot_dimension_numbers<[1], [0], [0], [1], [0, 0, 1, 1], [], []>} : vector<80x8xbf16>, vector<8x8xbf16>, vector<80x8xf32> -> vector<80x8xf32>
    %76 = arith.addf %70, %75 : vector<80x8xf32>
    %c22 = arith.constant 22 : index
    %c0_56 = arith.constant 0 : index
    %77 = vector.load %arg18[%c22, %c0_56] : memref<110x8xf32, #tpu.memory_space<vmem>>, vector<80x8xf32>
    %78 = arith.truncf %77 : vector<80x8xf32> to vector<80x8xbf16>
    %c8 = arith.constant 8 : index
    %c0_57 = arith.constant 0 : index
    %c0_58 = arith.constant 0 : index
    %79 = vector.load %arg4[%c8, %c0_57, %c0_58] : memref<9x8x8xbf16, #tpu.memory_space<vmem>>, vector<1x8x8xbf16>
    %80 = vector.shape_cast %79 : vector<1x8x8xbf16> to vector<8x8xbf16>
    %cst_59 = arith.constant dense<0.000000e+00> : vector<80x8xf32>
    %81 = tpu.matmul %78, %80, %cst_59 {dimension_numbers = #tpu.dot_dimension_numbers<[1], [0], [0], [1], [0, 0, 1, 1], [], []>} : vector<80x8xbf16>, vector<8x8xbf16>, vector<80x8xf32> -> vector<80x8xf32>
    %82 = arith.addf %76, %81 : vector<80x8xf32>
    %c0_60 = arith.constant 0 : index
    %c0_61 = arith.constant 0 : index
    %83 = vector.load %arg5[%c0_60, %c0_61] : memref<1x8xf32, #tpu.memory_space<vmem>>, vector<1x8xf32>
    %84 = vector.broadcast %83 : vector<1x8xf32> to vector<80x8xf32>
    %85 = arith.addf %82, %84 : vector<80x8xf32>
    %cst_62 = arith.constant 0.000000e+00 : f32
    %86 = vector.broadcast %cst_62 : f32 to vector<80x8xf32>
    %87 = arith.maximumf %85, %86 : vector<80x8xf32>
    %cst_63 = arith.constant 0.000000e+00 : f32
    %88 = vector.broadcast %cst_63 : f32 to vector<110x8xf32>
    %c0_64 = arith.constant 0 : index
    %c0_65 = arith.constant 0 : index
    %89 = vector.load %arg18[%c0_64, %c0_65] : memref<110x8xf32, #tpu.memory_space<vmem>>, vector<110x8xf32>
    tpu.vector_store %arg18[%c0_64, %c0_65], %88 {strides = array<i32>} : memref<110x8xf32, #tpu.memory_space<vmem>>, vector<110x8xf32>,
    %90 = vector.extract_strided_slice %11 {offsets = [0, 0], sizes = [8, 4], strides = [1, 1]} : vector<64x4xf32> to vector<8x4xf32>
    %c11_66 = arith.constant 11 : index
    %c0_67 = arith.constant 0 : index
    %91 = vector.load %arg18[%c11_66, %c0_67] : memref<110x8xf32, #tpu.memory_space<vmem>>, vector<8x4xf32>
    tpu.vector_store %arg18[%c11_66, %c0_67], %90 {strides = array<i32>} : memref<110x8xf32, #tpu.memory_space<vmem>>, vector<8x4xf32>,
    %92 = vector.extract_strided_slice %11 {offsets = [8, 0], sizes = [8, 4], strides = [1, 1]} : vector<64x4xf32> to vector<8x4xf32>
    %c21_68 = arith.constant 21 : index
    %c0_69 = arith.constant 0 : index
    %93 = vector.load %arg18[%c21_68, %c0_69] : memref<110x8xf32, #tpu.memory_space<vmem>>, vector<8x4xf32>
    tpu.vector_store %arg18[%c21_68, %c0_69], %92 {strides = array<i32>} : memref<110x8xf32, #tpu.memory_space<vmem>>, vector<8x4xf32>,
    %94 = vector.extract_strided_slice %11 {offsets = [16, 0], sizes = [8, 4], strides = [1, 1]} : vector<64x4xf32> to vector<8x4xf32>
    %c31_70 = arith.constant 31 : index
    %c0_71 = arith.constant 0 : index
    %95 = vector.load %arg18[%c31_70, %c0_71] : memref<110x8xf32, #tpu.memory_space<vmem>>, vector<8x4xf32>
    tpu.vector_store %arg18[%c31_70, %c0_71], %94 {strides = array<i32>} : memref<110x8xf32, #tpu.memory_space<vmem>>, vector<8x4xf32>,
    %96 = vector.extract_strided_slice %11 {offsets = [24, 0], sizes = [8, 4], strides = [1, 1]} : vector<64x4xf32> to vector<8x4xf32>
    %c41_72 = arith.constant 41 : index
    %c0_73 = arith.constant 0 : index
    %97 = vector.load %arg18[%c41_72, %c0_73] : memref<110x8xf32, #tpu.memory_space<vmem>>, vector<8x4xf32>
    tpu.vector_store %arg18[%c41_72, %c0_73], %96 {strides = array<i32>} : memref<110x8xf32, #tpu.memory_space<vmem>>, vector<8x4xf32>,
    %98 = vector.extract_strided_slice %11 {offsets = [32, 0], sizes = [8, 4], strides = [1, 1]} : vector<64x4xf32> to vector<8x4xf32>
    %c51_74 = arith.constant 51 : index
    %c0_75 = arith.constant 0 : index
    %99 = vector.load %arg18[%c51_74, %c0_75] : memref<110x8xf32, #tpu.memory_space<vmem>>, vector<8x4xf32>
    tpu.vector_store %arg18[%c51_74, %c0_75], %98 {strides = array<i32>} : memref<110x8xf32, #tpu.memory_space<vmem>>, vector<8x4xf32>,
    %100 = vector.extract_strided_slice %11 {offsets = [40, 0], sizes = [8, 4], strides = [1, 1]} : vector<64x4xf32> to vector<8x4xf32>
    %c61_76 = arith.constant 61 : index
    %c0_77 = arith.constant 0 : index
    %101 = vector.load %arg18[%c61_76, %c0_77] : memref<110x8xf32, #tpu.memory_space<vmem>>, vector<8x4xf32>
    tpu.vector_store %arg18[%c61_76, %c0_77], %100 {strides = array<i32>} : memref<110x8xf32, #tpu.memory_space<vmem>>, vector<8x4xf32>,
    %102 = vector.extract_strided_slice %11 {offsets = [48, 0], sizes = [8, 4], strides = [1, 1]} : vector<64x4xf32> to vector<8x4xf32>
    %c71_78 = arith.constant 71 : index
    %c0_79 = arith.constant 0 : index
    %103 = vector.load %arg18[%c71_78, %c0_79] : memref<110x8xf32, #tpu.memory_space<vmem>>, vector<8x4xf32>
    tpu.vector_store %arg18[%c71_78, %c0_79], %102 {strides = array<i32>} : memref<110x8xf32, #tpu.memory_space<vmem>>, vector<8x4xf32>,
    %104 = vector.extract_strided_slice %11 {offsets = [56, 0], sizes = [8, 4], strides = [1, 1]} : vector<64x4xf32> to vector<8x4xf32>
    %c81_80 = arith.constant 81 : index
    %c0_81 = arith.constant 0 : index
    %105 = vector.load %arg18[%c81_80, %c0_81] : memref<110x8xf32, #tpu.memory_space<vmem>>, vector<8x4xf32>
    tpu.vector_store %arg18[%c81_80, %c0_81], %104 {strides = array<i32>} : memref<110x8xf32, #tpu.memory_space<vmem>>, vector<8x4xf32>,
    %c0_82 = arith.constant 0 : index
    %c0_83 = arith.constant 0 : index
    %106 = vector.load %arg18[%c0_82, %c0_83] : memref<110x8xf32, #tpu.memory_space<vmem>>, vector<80x4xf32>
    %107 = arith.truncf %106 : vector<80x4xf32> to vector<80x4xbf16>
    %c0_84 = arith.constant 0 : index
    %c0_85 = arith.constant 0 : index
    %c0_86 = arith.constant 0 : index
    %108 = vector.load %arg6[%c0_84, %c0_85, %c0_86] : memref<9x4x4xbf16, #tpu.memory_space<vmem>>, vector<1x4x4xbf16>
    %109 = vector.shape_cast %108 : vector<1x4x4xbf16> to vector<4x4xbf16>
    %cst_87 = arith.constant dense<0.000000e+00> : vector<80x4xf32>
    %110 = tpu.matmul %107, %109, %cst_87 {dimension_numbers = #tpu.dot_dimension_numbers<[1], [0], [0], [1], [0, 0, 1, 1], [], []>} : vector<80x4xbf16>, vector<4x4xbf16>, vector<80x4xf32> -> vector<80x4xf32>
    %c1_88 = arith.constant 1 : index
    %c0_89 = arith.constant 0 : index
    %111 = vector.load %arg18[%c1_88, %c0_89] : memref<110x8xf32, #tpu.memory_space<vmem>>, vector<80x4xf32>
    %112 = arith.truncf %111 : vector<80x4xf32> to vector<80x4xbf16>
    %c1_90 = arith.constant 1 : index
    %c0_91 = arith.constant 0 : index
    %c0_92 = arith.constant 0 : index
    %113 = vector.load %arg6[%c1_90, %c0_91, %c0_92] : memref<9x4x4xbf16, #tpu.memory_space<vmem>>, vector<1x4x4xbf16>
    %114 = vector.shape_cast %113 : vector<1x4x4xbf16> to vector<4x4xbf16>
    %cst_93 = arith.constant dense<0.000000e+00> : vector<80x4xf32>
    %115 = tpu.matmul %112, %114, %cst_93 {dimension_numbers = #tpu.dot_dimension_numbers<[1], [0], [0], [1], [0, 0, 1, 1], [], []>} : vector<80x4xbf16>, vector<4x4xbf16>, vector<80x4xf32> -> vector<80x4xf32>
    %116 = arith.addf %110, %115 : vector<80x4xf32>
    %c2_94 = arith.constant 2 : index
    %c0_95 = arith.constant 0 : index
    %117 = vector.load %arg18[%c2_94, %c0_95] : memref<110x8xf32, #tpu.memory_space<vmem>>, vector<80x4xf32>
    %118 = arith.truncf %117 : vector<80x4xf32> to vector<80x4xbf16>
    %c2_96 = arith.constant 2 : index
    %c0_97 = arith.constant 0 : index
    %c0_98 = arith.constant 0 : index
    %119 = vector.load %arg6[%c2_96, %c0_97, %c0_98] : memref<9x4x4xbf16, #tpu.memory_space<vmem>>, vector<1x4x4xbf16>
    %120 = vector.shape_cast %119 : vector<1x4x4xbf16> to vector<4x4xbf16>
    %cst_99 = arith.constant dense<0.000000e+00> : vector<80x4xf32>
    %121 = tpu.matmul %118, %120, %cst_99 {dimension_numbers = #tpu.dot_dimension_numbers<[1], [0], [0], [1], [0, 0, 1, 1], [], []>} : vector<80x4xbf16>, vector<4x4xbf16>, vector<80x4xf32> -> vector<80x4xf32>
    %122 = arith.addf %116, %121 : vector<80x4xf32>
    %c10_100 = arith.constant 10 : index
    %c0_101 = arith.constant 0 : index
    %123 = vector.load %arg18[%c10_100, %c0_101] : memref<110x8xf32, #tpu.memory_space<vmem>>, vector<80x4xf32>
    %124 = arith.truncf %123 : vector<80x4xf32> to vector<80x4xbf16>
    %c3_102 = arith.constant 3 : index
    %c0_103 = arith.constant 0 : index
    %c0_104 = arith.constant 0 : index
    %125 = vector.load %arg6[%c3_102, %c0_103, %c0_104] : memref<9x4x4xbf16, #tpu.memory_space<vmem>>, vector<1x4x4xbf16>
    %126 = vector.shape_cast %125 : vector<1x4x4xbf16> to vector<4x4xbf16>
    %cst_105 = arith.constant dense<0.000000e+00> : vector<80x4xf32>
    %127 = tpu.matmul %124, %126, %cst_105 {dimension_numbers = #tpu.dot_dimension_numbers<[1], [0], [0], [1], [0, 0, 1, 1], [], []>} : vector<80x4xbf16>, vector<4x4xbf16>, vector<80x4xf32> -> vector<80x4xf32>
    %128 = arith.addf %122, %127 : vector<80x4xf32>
    %c11_106 = arith.constant 11 : index
    %c0_107 = arith.constant 0 : index
    %129 = vector.load %arg18[%c11_106, %c0_107] : memref<110x8xf32, #tpu.memory_space<vmem>>, vector<80x4xf32>
    %130 = arith.truncf %129 : vector<80x4xf32> to vector<80x4xbf16>
    %c4_108 = arith.constant 4 : index
    %c0_109 = arith.constant 0 : index
    %c0_110 = arith.constant 0 : index
    %131 = vector.load %arg6[%c4_108, %c0_109, %c0_110] : memref<9x4x4xbf16, #tpu.memory_space<vmem>>, vector<1x4x4xbf16>
    %132 = vector.shape_cast %131 : vector<1x4x4xbf16> to vector<4x4xbf16>
    %cst_111 = arith.constant dense<0.000000e+00> : vector<80x4xf32>
    %133 = tpu.matmul %130, %132, %cst_111 {dimension_numbers = #tpu.dot_dimension_numbers<[1], [0], [0], [1], [0, 0, 1, 1], [], []>} : vector<80x4xbf16>, vector<4x4xbf16>, vector<80x4xf32> -> vector<80x4xf32>
    %134 = arith.addf %128, %133 : vector<80x4xf32>
    %c12_112 = arith.constant 12 : index
    %c0_113 = arith.constant 0 : index
    %135 = vector.load %arg18[%c12_112, %c0_113] : memref<110x8xf32, #tpu.memory_space<vmem>>, vector<80x4xf32>
    %136 = arith.truncf %135 : vector<80x4xf32> to vector<80x4xbf16>
    %c5_114 = arith.constant 5 : index
    %c0_115 = arith.constant 0 : index
    %c0_116 = arith.constant 0 : index
    %137 = vector.load %arg6[%c5_114, %c0_115, %c0_116] : memref<9x4x4xbf16, #tpu.memory_space<vmem>>, vector<1x4x4xbf16>
    %138 = vector.shape_cast %137 : vector<1x4x4xbf16> to vector<4x4xbf16>
    %cst_117 = arith.constant dense<0.000000e+00> : vector<80x4xf32>
    %139 = tpu.matmul %136, %138, %cst_117 {dimension_numbers = #tpu.dot_dimension_numbers<[1], [0], [0], [1], [0, 0, 1, 1], [], []>} : vector<80x4xbf16>, vector<4x4xbf16>, vector<80x4xf32> -> vector<80x4xf32>
    %140 = arith.addf %134, %139 : vector<80x4xf32>
    %c20_118 = arith.constant 20 : index
    %c0_119 = arith.constant 0 : index
    %141 = vector.load %arg18[%c20_118, %c0_119] : memref<110x8xf32, #tpu.memory_space<vmem>>, vector<80x4xf32>
    %142 = arith.truncf %141 : vector<80x4xf32> to vector<80x4xbf16>
    %c6_120 = arith.constant 6 : index
    %c0_121 = arith.constant 0 : index
    %c0_122 = arith.constant 0 : index
    %143 = vector.load %arg6[%c6_120, %c0_121, %c0_122] : memref<9x4x4xbf16, #tpu.memory_space<vmem>>, vector<1x4x4xbf16>
    %144 = vector.shape_cast %143 : vector<1x4x4xbf16> to vector<4x4xbf16>
    %cst_123 = arith.constant dense<0.000000e+00> : vector<80x4xf32>
    %145 = tpu.matmul %142, %144, %cst_123 {dimension_numbers = #tpu.dot_dimension_numbers<[1], [0], [0], [1], [0, 0, 1, 1], [], []>} : vector<80x4xbf16>, vector<4x4xbf16>, vector<80x4xf32> -> vector<80x4xf32>
    %146 = arith.addf %140, %145 : vector<80x4xf32>
    %c21_124 = arith.constant 21 : index
    %c0_125 = arith.constant 0 : index
    %147 = vector.load %arg18[%c21_124, %c0_125] : memref<110x8xf32, #tpu.memory_space<vmem>>, vector<80x4xf32>
    %148 = arith.truncf %147 : vector<80x4xf32> to vector<80x4xbf16>
    %c7_126 = arith.constant 7 : index
    %c0_127 = arith.constant 0 : index
    %c0_128 = arith.constant 0 : index
    %149 = vector.load %arg6[%c7_126, %c0_127, %c0_128] : memref<9x4x4xbf16, #tpu.memory_space<vmem>>, vector<1x4x4xbf16>
    %150 = vector.shape_cast %149 : vector<1x4x4xbf16> to vector<4x4xbf16>
    %cst_129 = arith.constant dense<0.000000e+00> : vector<80x4xf32>
    %151 = tpu.matmul %148, %150, %cst_129 {dimension_numbers = #tpu.dot_dimension_numbers<[1], [0], [0], [1], [0, 0, 1, 1], [], []>} : vector<80x4xbf16>, vector<4x4xbf16>, vector<80x4xf32> -> vector<80x4xf32>
    %152 = arith.addf %146, %151 : vector<80x4xf32>
    %c22_130 = arith.constant 22 : index
    %c0_131 = arith.constant 0 : index
    %153 = vector.load %arg18[%c22_130, %c0_131] : memref<110x8xf32, #tpu.memory_space<vmem>>, vector<80x4xf32>
    %154 = arith.truncf %153 : vector<80x4xf32> to vector<80x4xbf16>
    %c8_132 = arith.constant 8 : index
    %c0_133 = arith.constant 0 : index
    %c0_134 = arith.constant 0 : index
    %155 = vector.load %arg6[%c8_132, %c0_133, %c0_134] : memref<9x4x4xbf16, #tpu.memory_space<vmem>>, vector<1x4x4xbf16>
    %156 = vector.shape_cast %155 : vector<1x4x4xbf16> to vector<4x4xbf16>
    %cst_135 = arith.constant dense<0.000000e+00> : vector<80x4xf32>
    %157 = tpu.matmul %154, %156, %cst_135 {dimension_numbers = #tpu.dot_dimension_numbers<[1], [0], [0], [1], [0, 0, 1, 1], [], []>} : vector<80x4xbf16>, vector<4x4xbf16>, vector<80x4xf32> -> vector<80x4xf32>
    %158 = arith.addf %152, %157 : vector<80x4xf32>
    %c0_136 = arith.constant 0 : index
    %c0_137 = arith.constant 0 : index
    %159 = vector.load %arg7[%c0_136, %c0_137] : memref<1x4xf32, #tpu.memory_space<vmem>>, vector<1x4xf32>
    %160 = vector.broadcast %159 : vector<1x4xf32> to vector<80x4xf32>
    %161 = arith.addf %158, %160 : vector<80x4xf32>
    %cst_138 = arith.constant 0.000000e+00 : f32
    %162 = vector.broadcast %cst_138 : f32 to vector<80x4xf32>
    %163 = arith.maximumf %161, %162 : vector<80x4xf32>
    %cst_139 = arith.constant 0.000000e+00 : f32
    %164 = vector.broadcast %cst_139 : f32 to vector<110x8xf32>
    %c0_140 = arith.constant 0 : index
    %c0_141 = arith.constant 0 : index
    %165 = vector.load %arg18[%c0_140, %c0_141] : memref<110x8xf32, #tpu.memory_space<vmem>>, vector<110x8xf32>
    tpu.vector_store %arg18[%c0_140, %c0_141], %164 {strides = array<i32>} : memref<110x8xf32, #tpu.memory_space<vmem>>, vector<110x8xf32>,
    %166 = vector.extract_strided_slice %163 {offsets = [0, 0], sizes = [8, 4], strides = [1, 1]} : vector<80x4xf32> to vector<8x4xf32>
    %c11_142 = arith.constant 11 : index
    %c0_143 = arith.constant 0 : index
    %167 = vector.load %arg18[%c11_142, %c0_143] : memref<110x8xf32, #tpu.memory_space<vmem>>, vector<8x4xf32>
    tpu.vector_store %arg18[%c11_142, %c0_143], %166 {strides = array<i32>} : memref<110x8xf32, #tpu.memory_space<vmem>>, vector<8x4xf32>,
    %168 = vector.extract_strided_slice %163 {offsets = [10, 0], sizes = [8, 4], strides = [1, 1]} : vector<80x4xf32> to vector<8x4xf32>
    %c21_144 = arith.constant 21 : index
    %c0_145 = arith.constant 0 : index
    %169 = vector.load %arg18[%c21_144, %c0_145] : memref<110x8xf32, #tpu.memory_space<vmem>>, vector<8x4xf32>
    tpu.vector_store %arg18[%c21_144, %c0_145], %168 {strides = array<i32>} : memref<110x8xf32, #tpu.memory_space<vmem>>, vector<8x4xf32>,
    %170 = vector.extract_strided_slice %163 {offsets = [20, 0], sizes = [8, 4], strides = [1, 1]} : vector<80x4xf32> to vector<8x4xf32>
    %c31_146 = arith.constant 31 : index
    %c0_147 = arith.constant 0 : index
    %171 = vector.load %arg18[%c31_146, %c0_147] : memref<110x8xf32, #tpu.memory_space<vmem>>, vector<8x4xf32>
    tpu.vector_store %arg18[%c31_146, %c0_147], %170 {strides = array<i32>} : memref<110x8xf32, #tpu.memory_space<vmem>>, vector<8x4xf32>,
    %172 = vector.extract_strided_slice %163 {offsets = [30, 0], sizes = [8, 4], strides = [1, 1]} : vector<80x4xf32> to vector<8x4xf32>
    %c41_148 = arith.constant 41 : index
    %c0_149 = arith.constant 0 : index
    %173 = vector.load %arg18[%c41_148, %c0_149] : memref<110x8xf32, #tpu.memory_space<vmem>>, vector<8x4xf32>
    tpu.vector_store %arg18[%c41_148, %c0_149], %172 {strides = array<i32>} : memref<110x8xf32, #tpu.memory_space<vmem>>, vector<8x4xf32>,
    %174 = vector.extract_strided_slice %163 {offsets = [40, 0], sizes = [8, 4], strides = [1, 1]} : vector<80x4xf32> to vector<8x4xf32>
    %c51_150 = arith.constant 51 : index
    %c0_151 = arith.constant 0 : index
    %175 = vector.load %arg18[%c51_150, %c0_151] : memref<110x8xf32, #tpu.memory_space<vmem>>, vector<8x4xf32>
    tpu.vector_store %arg18[%c51_150, %c0_151], %174 {strides = array<i32>} : memref<110x8xf32, #tpu.memory_space<vmem>>, vector<8x4xf32>,
    %176 = vector.extract_strided_slice %163 {offsets = [50, 0], sizes = [8, 4], strides = [1, 1]} : vector<80x4xf32> to vector<8x4xf32>
    %c61_152 = arith.constant 61 : index
    %c0_153 = arith.constant 0 : index
    %177 = vector.load %arg18[%c61_152, %c0_153] : memref<110x8xf32, #tpu.memory_space<vmem>>, vector<8x4xf32>
    tpu.vector_store %arg18[%c61_152, %c0_153], %176 {strides = array<i32>} : memref<110x8xf32, #tpu.memory_space<vmem>>, vector<8x4xf32>,
    %178 = vector.extract_strided_slice %163 {offsets = [60, 0], sizes = [8, 4], strides = [1, 1]} : vector<80x4xf32> to vector<8x4xf32>
    %c71_154 = arith.constant 71 : index
    %c0_155 = arith.constant 0 : index
    %179 = vector.load %arg18[%c71_154, %c0_155] : memref<110x8xf32, #tpu.memory_space<vmem>>, vector<8x4xf32>
    tpu.vector_store %arg18[%c71_154, %c0_155], %178 {strides = array<i32>} : memref<110x8xf32, #tpu.memory_space<vmem>>, vector<8x4xf32>,
    %180 = vector.extract_strided_slice %163 {offsets = [70, 0], sizes = [8, 4], strides = [1, 1]} : vector<80x4xf32> to vector<8x4xf32>
    %c81_156 = arith.constant 81 : index
    %c0_157 = arith.constant 0 : index
    %181 = vector.load %arg18[%c81_156, %c0_157] : memref<110x8xf32, #tpu.memory_space<vmem>>, vector<8x4xf32>
    tpu.vector_store %arg18[%c81_156, %c0_157], %180 {strides = array<i32>} : memref<110x8xf32, #tpu.memory_space<vmem>>, vector<8x4xf32>,
    %c0_158 = arith.constant 0 : index
    %c0_159 = arith.constant 0 : index
    %182 = vector.load %arg18[%c0_158, %c0_159] : memref<110x8xf32, #tpu.memory_space<vmem>>, vector<80x4xf32>
    %183 = arith.truncf %182 : vector<80x4xf32> to vector<80x4xbf16>
    %c0_160 = arith.constant 0 : index
    %c0_161 = arith.constant 0 : index
    %c0_162 = arith.constant 0 : index
    %184 = vector.load %arg8[%c0_160, %c0_161, %c0_162] : memref<9x4x4xbf16, #tpu.memory_space<vmem>>, vector<1x4x4xbf16>
    %185 = vector.shape_cast %184 : vector<1x4x4xbf16> to vector<4x4xbf16>
    %cst_163 = arith.constant dense<0.000000e+00> : vector<80x4xf32>
    %186 = tpu.matmul %183, %185, %cst_163 {dimension_numbers = #tpu.dot_dimension_numbers<[1], [0], [0], [1], [0, 0, 1, 1], [], []>} : vector<80x4xbf16>, vector<4x4xbf16>, vector<80x4xf32> -> vector<80x4xf32>
    %c1_164 = arith.constant 1 : index
    %c0_165 = arith.constant 0 : index
    %187 = vector.load %arg18[%c1_164, %c0_165] : memref<110x8xf32, #tpu.memory_space<vmem>>, vector<80x4xf32>
    %188 = arith.truncf %187 : vector<80x4xf32> to vector<80x4xbf16>
    %c1_166 = arith.constant 1 : index
    %c0_167 = arith.constant 0 : index
    %c0_168 = arith.constant 0 : index
    %189 = vector.load %arg8[%c1_166, %c0_167, %c0_168] : memref<9x4x4xbf16, #tpu.memory_space<vmem>>, vector<1x4x4xbf16>
    %190 = vector.shape_cast %189 : vector<1x4x4xbf16> to vector<4x4xbf16>
    %cst_169 = arith.constant dense<0.000000e+00> : vector<80x4xf32>
    %191 = tpu.matmul %188, %190, %cst_169 {dimension_numbers = #tpu.dot_dimension_numbers<[1], [0], [0], [1], [0, 0, 1, 1], [], []>} : vector<80x4xbf16>, vector<4x4xbf16>, vector<80x4xf32> -> vector<80x4xf32>
    %192 = arith.addf %186, %191 : vector<80x4xf32>
    %c2_170 = arith.constant 2 : index
    %c0_171 = arith.constant 0 : index
    %193 = vector.load %arg18[%c2_170, %c0_171] : memref<110x8xf32, #tpu.memory_space<vmem>>, vector<80x4xf32>
    %194 = arith.truncf %193 : vector<80x4xf32> to vector<80x4xbf16>
    %c2_172 = arith.constant 2 : index
    %c0_173 = arith.constant 0 : index
    %c0_174 = arith.constant 0 : index
    %195 = vector.load %arg8[%c2_172, %c0_173, %c0_174] : memref<9x4x4xbf16, #tpu.memory_space<vmem>>, vector<1x4x4xbf16>
    %196 = vector.shape_cast %195 : vector<1x4x4xbf16> to vector<4x4xbf16>
    %cst_175 = arith.constant dense<0.000000e+00> : vector<80x4xf32>
    %197 = tpu.matmul %194, %196, %cst_175 {dimension_numbers = #tpu.dot_dimension_numbers<[1], [0], [0], [1], [0, 0, 1, 1], [], []>} : vector<80x4xbf16>, vector<4x4xbf16>, vector<80x4xf32> -> vector<80x4xf32>
    %198 = arith.addf %192, %197 : vector<80x4xf32>
    %c10_176 = arith.constant 10 : index
    %c0_177 = arith.constant 0 : index
    %199 = vector.load %arg18[%c10_176, %c0_177] : memref<110x8xf32, #tpu.memory_space<vmem>>, vector<80x4xf32>
    %200 = arith.truncf %199 : vector<80x4xf32> to vector<80x4xbf16>
    %c3_178 = arith.constant 3 : index
    %c0_179 = arith.constant 0 : index
    %c0_180 = arith.constant 0 : index
    %201 = vector.load %arg8[%c3_178, %c0_179, %c0_180] : memref<9x4x4xbf16, #tpu.memory_space<vmem>>, vector<1x4x4xbf16>
    %202 = vector.shape_cast %201 : vector<1x4x4xbf16> to vector<4x4xbf16>
    %cst_181 = arith.constant dense<0.000000e+00> : vector<80x4xf32>
    %203 = tpu.matmul %200, %202, %cst_181 {dimension_numbers = #tpu.dot_dimension_numbers<[1], [0], [0], [1], [0, 0, 1, 1], [], []>} : vector<80x4xbf16>, vector<4x4xbf16>, vector<80x4xf32> -> vector<80x4xf32>
    %204 = arith.addf %198, %203 : vector<80x4xf32>
    %c11_182 = arith.constant 11 : index
    %c0_183 = arith.constant 0 : index
    %205 = vector.load %arg18[%c11_182, %c0_183] : memref<110x8xf32, #tpu.memory_space<vmem>>, vector<80x4xf32>
    %206 = arith.truncf %205 : vector<80x4xf32> to vector<80x4xbf16>
    %c4_184 = arith.constant 4 : index
    %c0_185 = arith.constant 0 : index
    %c0_186 = arith.constant 0 : index
    %207 = vector.load %arg8[%c4_184, %c0_185, %c0_186] : memref<9x4x4xbf16, #tpu.memory_space<vmem>>, vector<1x4x4xbf16>
    %208 = vector.shape_cast %207 : vector<1x4x4xbf16> to vector<4x4xbf16>
    %cst_187 = arith.constant dense<0.000000e+00> : vector<80x4xf32>
    %209 = tpu.matmul %206, %208, %cst_187 {dimension_numbers = #tpu.dot_dimension_numbers<[1], [0], [0], [1], [0, 0, 1, 1], [], []>} : vector<80x4xbf16>, vector<4x4xbf16>, vector<80x4xf32> -> vector<80x4xf32>
    %210 = arith.addf %204, %209 : vector<80x4xf32>
    %c12_188 = arith.constant 12 : index
    %c0_189 = arith.constant 0 : index
    %211 = vector.load %arg18[%c12_188, %c0_189] : memref<110x8xf32, #tpu.memory_space<vmem>>, vector<80x4xf32>
    %212 = arith.truncf %211 : vector<80x4xf32> to vector<80x4xbf16>
    %c5_190 = arith.constant 5 : index
    %c0_191 = arith.constant 0 : index
    %c0_192 = arith.constant 0 : index
    %213 = vector.load %arg8[%c5_190, %c0_191, %c0_192] : memref<9x4x4xbf16, #tpu.memory_space<vmem>>, vector<1x4x4xbf16>
    %214 = vector.shape_cast %213 : vector<1x4x4xbf16> to vector<4x4xbf16>
    %cst_193 = arith.constant dense<0.000000e+00> : vector<80x4xf32>
    %215 = tpu.matmul %212, %214, %cst_193 {dimension_numbers = #tpu.dot_dimension_numbers<[1], [0], [0], [1], [0, 0, 1, 1], [], []>} : vector<80x4xbf16>, vector<4x4xbf16>, vector<80x4xf32> -> vector<80x4xf32>
    %216 = arith.addf %210, %215 : vector<80x4xf32>
    %c20_194 = arith.constant 20 : index
    %c0_195 = arith.constant 0 : index
    %217 = vector.load %arg18[%c20_194, %c0_195] : memref<110x8xf32, #tpu.memory_space<vmem>>, vector<80x4xf32>
    %218 = arith.truncf %217 : vector<80x4xf32> to vector<80x4xbf16>
    %c6_196 = arith.constant 6 : index
    %c0_197 = arith.constant 0 : index
    %c0_198 = arith.constant 0 : index
    %219 = vector.load %arg8[%c6_196, %c0_197, %c0_198] : memref<9x4x4xbf16, #tpu.memory_space<vmem>>, vector<1x4x4xbf16>
    %220 = vector.shape_cast %219 : vector<1x4x4xbf16> to vector<4x4xbf16>
    %cst_199 = arith.constant dense<0.000000e+00> : vector<80x4xf32>
    %221 = tpu.matmul %218, %220, %cst_199 {dimension_numbers = #tpu.dot_dimension_numbers<[1], [0], [0], [1], [0, 0, 1, 1], [], []>} : vector<80x4xbf16>, vector<4x4xbf16>, vector<80x4xf32> -> vector<80x4xf32>
    %222 = arith.addf %216, %221 : vector<80x4xf32>
    %c21_200 = arith.constant 21 : index
    %c0_201 = arith.constant 0 : index
    %223 = vector.load %arg18[%c21_200, %c0_201] : memref<110x8xf32, #tpu.memory_space<vmem>>, vector<80x4xf32>
    %224 = arith.truncf %223 : vector<80x4xf32> to vector<80x4xbf16>
    %c7_202 = arith.constant 7 : index
    %c0_203 = arith.constant 0 : index
    %c0_204 = arith.constant 0 : index
    %225 = vector.load %arg8[%c7_202, %c0_203, %c0_204] : memref<9x4x4xbf16, #tpu.memory_space<vmem>>, vector<1x4x4xbf16>
    %226 = vector.shape_cast %225 : vector<1x4x4xbf16> to vector<4x4xbf16>
    %cst_205 = arith.constant dense<0.000000e+00> : vector<80x4xf32>
    %227 = tpu.matmul %224, %226, %cst_205 {dimension_numbers = #tpu.dot_dimension_numbers<[1], [0], [0], [1], [0, 0, 1, 1], [], []>} : vector<80x4xbf16>, vector<4x4xbf16>, vector<80x4xf32> -> vector<80x4xf32>
    %228 = arith.addf %222, %227 : vector<80x4xf32>
    %c22_206 = arith.constant 22 : index
    %c0_207 = arith.constant 0 : index
    %229 = vector.load %arg18[%c22_206, %c0_207] : memref<110x8xf32, #tpu.memory_space<vmem>>, vector<80x4xf32>
    %230 = arith.truncf %229 : vector<80x4xf32> to vector<80x4xbf16>
    %c8_208 = arith.constant 8 : index
    %c0_209 = arith.constant 0 : index
    %c0_210 = arith.constant 0 : index
    %231 = vector.load %arg8[%c8_208, %c0_209, %c0_210] : memref<9x4x4xbf16, #tpu.memory_space<vmem>>, vector<1x4x4xbf16>
    %232 = vector.shape_cast %231 : vector<1x4x4xbf16> to vector<4x4xbf16>
    %cst_211 = arith.constant dense<0.000000e+00> : vector<80x4xf32>
    %233 = tpu.matmul %230, %232, %cst_211 {dimension_numbers = #tpu.dot_dimension_numbers<[1], [0], [0], [1], [0, 0, 1, 1], [], []>} : vector<80x4xbf16>, vector<4x4xbf16>, vector<80x4xf32> -> vector<80x4xf32>
    %234 = arith.addf %228, %233 : vector<80x4xf32>
    %c0_212 = arith.constant 0 : index
    %c0_213 = arith.constant 0 : index
    %235 = vector.load %arg9[%c0_212, %c0_213] : memref<1x4xf32, #tpu.memory_space<vmem>>, vector<1x4xf32>
    %236 = vector.broadcast %235 : vector<1x4xf32> to vector<80x4xf32>
    %237 = arith.addf %234, %236 : vector<80x4xf32>
    %cst_214 = arith.constant 0.000000e+00 : f32
    %238 = vector.broadcast %cst_214 : f32 to vector<80x4xf32>
    %239 = arith.maximumf %237, %238 : vector<80x4xf32>
    %240 = arith.truncf %87 : vector<80x8xf32> to vector<80x8xbf16>
    %c0_215 = arith.constant 0 : index
    %c0_216 = arith.constant 0 : index
    %241 = vector.load %arg10[%c0_215, %c0_216] : memref<8x32xbf16, #tpu.memory_space<vmem>>, vector<8x32xbf16>
    %cst_217 = arith.constant dense<0.000000e+00> : vector<80x32xf32>
    %242 = tpu.matmul %240, %241, %cst_217 {dimension_numbers = #tpu.dot_dimension_numbers<[1], [0], [0], [1], [0, 0, 1, 1], [], []>} : vector<80x8xbf16>, vector<8x32xbf16>, vector<80x32xf32> -> vector<80x32xf32>
    %243 = arith.truncf %239 : vector<80x4xf32> to vector<80x4xbf16>
    %c0_218 = arith.constant 0 : index
    %c0_219 = arith.constant 0 : index
    %244 = vector.load %arg11[%c0_218, %c0_219] : memref<4x32xbf16, #tpu.memory_space<vmem>>, vector<4x32xbf16>
    %cst_220 = arith.constant dense<0.000000e+00> : vector<80x32xf32>
    %245 = tpu.matmul %243, %244, %cst_220 {dimension_numbers = #tpu.dot_dimension_numbers<[1], [0], [0], [1], [0, 0, 1, 1], [], []>} : vector<80x4xbf16>, vector<4x32xbf16>, vector<80x32xf32> -> vector<80x32xf32>
    %246 = arith.addf %242, %245 : vector<80x32xf32>
    %c0_221 = arith.constant 0 : index
    %c0_222 = arith.constant 0 : index
    %247 = vector.load %arg12[%c0_221, %c0_222] : memref<1x32xf32, #tpu.memory_space<vmem>>, vector<1x32xf32>
    %248 = vector.broadcast %247 : vector<1x32xf32> to vector<80x32xf32>
    %249 = arith.addf %246, %248 : vector<80x32xf32>
    %250 = vector.extract_strided_slice %249 {offsets = [0, 0], sizes = [8, 32], strides = [1, 1]} : vector<80x32xf32> to vector<8x32xf32>
    %cst_223 = arith.constant dense<0.000000e+00> : vector<32xf32>
    %251 = vector.multi_reduction <add>, %250, %cst_223 [0] : vector<8x32xf32> to vector<32xf32>
    %252 = vector.shape_cast %251 : vector<32xf32> to vector<1x32xf32>
    %253 = vector.extract_strided_slice %249 {offsets = [10, 0], sizes = [8, 32], strides = [1, 1]} : vector<80x32xf32> to vector<8x32xf32>
    %cst_224 = arith.constant dense<0.000000e+00> : vector<32xf32>
    %254 = vector.multi_reduction <add>, %253, %cst_224 [0] : vector<8x32xf32> to vector<32xf32>
    %255 = vector.shape_cast %254 : vector<32xf32> to vector<1x32xf32>
    %256 = arith.addf %252, %255 : vector<1x32xf32>
    %257 = vector.extract_strided_slice %249 {offsets = [20, 0], sizes = [8, 32], strides = [1, 1]} : vector<80x32xf32> to vector<8x32xf32>
    %cst_225 = arith.constant dense<0.000000e+00> : vector<32xf32>
    %258 = vector.multi_reduction <add>, %257, %cst_225 [0] : vector<8x32xf32> to vector<32xf32>
    %259 = vector.shape_cast %258 : vector<32xf32> to vector<1x32xf32>
    %260 = arith.addf %256, %259 : vector<1x32xf32>
    %261 = vector.extract_strided_slice %249 {offsets = [30, 0], sizes = [8, 32], strides = [1, 1]} : vector<80x32xf32> to vector<8x32xf32>
    %cst_226 = arith.constant dense<0.000000e+00> : vector<32xf32>
    %262 = vector.multi_reduction <add>, %261, %cst_226 [0] : vector<8x32xf32> to vector<32xf32>
    %263 = vector.shape_cast %262 : vector<32xf32> to vector<1x32xf32>
    %264 = arith.addf %260, %263 : vector<1x32xf32>
    %265 = vector.extract_strided_slice %249 {offsets = [40, 0], sizes = [8, 32], strides = [1, 1]} : vector<80x32xf32> to vector<8x32xf32>
    %cst_227 = arith.constant dense<0.000000e+00> : vector<32xf32>
    %266 = vector.multi_reduction <add>, %265, %cst_227 [0] : vector<8x32xf32> to vector<32xf32>
    %267 = vector.shape_cast %266 : vector<32xf32> to vector<1x32xf32>
    %268 = arith.addf %264, %267 : vector<1x32xf32>
    %269 = vector.extract_strided_slice %249 {offsets = [50, 0], sizes = [8, 32], strides = [1, 1]} : vector<80x32xf32> to vector<8x32xf32>
    %cst_228 = arith.constant dense<0.000000e+00> : vector<32xf32>
    %270 = vector.multi_reduction <add>, %269, %cst_228 [0] : vector<8x32xf32> to vector<32xf32>
    %271 = vector.shape_cast %270 : vector<32xf32> to vector<1x32xf32>
    %272 = arith.addf %268, %271 : vector<1x32xf32>
    %273 = vector.extract_strided_slice %249 {offsets = [60, 0], sizes = [8, 32], strides = [1, 1]} : vector<80x32xf32> to vector<8x32xf32>
    %cst_229 = arith.constant dense<0.000000e+00> : vector<32xf32>
    %274 = vector.multi_reduction <add>, %273, %cst_229 [0] : vector<8x32xf32> to vector<32xf32>
    %275 = vector.shape_cast %274 : vector<32xf32> to vector<1x32xf32>
    %276 = arith.addf %272, %275 : vector<1x32xf32>
    %277 = vector.extract_strided_slice %249 {offsets = [70, 0], sizes = [8, 32], strides = [1, 1]} : vector<80x32xf32> to vector<8x32xf32>
    %cst_230 = arith.constant dense<0.000000e+00> : vector<32xf32>
    %278 = vector.multi_reduction <add>, %277, %cst_230 [0] : vector<8x32xf32> to vector<32xf32>
    %279 = vector.shape_cast %278 : vector<32xf32> to vector<1x32xf32>
    %280 = arith.addf %276, %279 : vector<1x32xf32>
    %cst_231 = arith.constant 1.562500e-02 : f32
    %281 = vector.broadcast %cst_231 : f32 to vector<1x32xf32>
    %282 = arith.mulf %280, %281 : vector<1x32xf32>
    %c0_232 = arith.constant 0 : index
    %c0_233 = arith.constant 0 : index
    %283 = vector.load %arg13[%c0_232, %c0_233] : memref<32x2xf32, #tpu.memory_space<vmem>>, vector<32x2xf32>
    %cst_234 = arith.constant dense<0.000000e+00> : vector<1x2xf32>
    %284 = tpu.matmul %282, %283, %cst_234 {dimension_numbers = #tpu.dot_dimension_numbers<[1], [0], [0], [1], [0, 0, 1, 1], [], []>} : vector<1x32xf32>, vector<32x2xf32>, vector<1x2xf32> -> vector<1x2xf32>
    %c0_235 = arith.constant 0 : index
    %c0_236 = arith.constant 0 : index
    %285 = vector.load %arg14[%c0_235, %c0_236] : memref<1x2xf32, #tpu.memory_space<vmem>>, vector<1x2xf32>
    %286 = arith.addf %284, %285 : vector<1x2xf32>
    %cst_237 = arith.constant 0.000000e+00 : f32
    %287 = vector.broadcast %cst_237 : f32 to vector<1x2xf32>
    %288 = arith.maximumf %286, %287 : vector<1x2xf32>
    %c0_238 = arith.constant 0 : index
    %c0_239 = arith.constant 0 : index
    %289 = vector.load %arg15[%c0_238, %c0_239] : memref<2x32xf32, #tpu.memory_space<vmem>>, vector<2x32xf32>
    %cst_240 = arith.constant dense<0.000000e+00> : vector<1x32xf32>
    %290 = tpu.matmul %288, %289, %cst_240 {dimension_numbers = #tpu.dot_dimension_numbers<[1], [0], [0], [1], [0, 0, 1, 1], [], []>} : vector<1x2xf32>, vector<2x32xf32>, vector<1x32xf32> -> vector<1x32xf32>
    %c0_241 = arith.constant 0 : index
    %c0_242 = arith.constant 0 : index
    %291 = vector.load %arg16[%c0_241, %c0_242] : memref<1x32xf32, #tpu.memory_space<vmem>>, vector<1x32xf32>
    %292 = arith.addf %290, %291 : vector<1x32xf32>
    %293 = arith.negf %292 : vector<1x32xf32>
    %294 = math.exp %293 : vector<1x32xf32>
    %cst_243 = arith.constant 1.000000e+00 : f32
    %295 = vector.broadcast %cst_243 : f32 to vector<1x32xf32>
    %296 = arith.addf %295, %294 : vector<1x32xf32>
    %297 = arith.divf %295, %296 : vector<1x32xf32>
    %298 = vector.extract_strided_slice %249 {offsets = [0, 0], sizes = [8, 32], strides = [1, 1]} : vector<80x32xf32> to vector<8x32xf32>
    %299 = vector.broadcast %297 : vector<1x32xf32> to vector<8x32xf32>
    %300 = arith.mulf %298, %299 : vector<8x32xf32>
    %301 = vector.extract_strided_slice %1 {offsets = [0, 0], sizes = [8, 32], strides = [1, 1]} : vector<64x32xf32> to vector<8x32xf32>
    %302 = arith.addf %300, %301 : vector<8x32xf32>
    %cst_244 = arith.constant 0.000000e+00 : f32
    %303 = vector.broadcast %cst_244 : f32 to vector<8x32xf32>
    %304 = arith.maximumf %302, %303 : vector<8x32xf32>
    %c0_245 = arith.constant 0 : index
    %c0_246 = arith.constant 0 : index
    %c0_247 = arith.constant 0 : index
    %305 = vector.load %arg17[%c0_245, %c0_246, %c0_247] : memref<1x64x32xf32, #tpu.memory_space<vmem>>, vector<1x8x32xf32>
    %306 = vector.shape_cast %305 : vector<1x8x32xf32> to vector<8x32xf32>
    %307 = vector.shape_cast %304 : vector<8x32xf32> to vector<1x8x32xf32>
    tpu.vector_store %arg17[%c0_245, %c0_246, %c0_247], %307 {strides = array<i32>} : memref<1x64x32xf32, #tpu.memory_space<vmem>>, vector<1x8x32xf32>,
    %308 = vector.extract_strided_slice %249 {offsets = [10, 0], sizes = [8, 32], strides = [1, 1]} : vector<80x32xf32> to vector<8x32xf32>
    %309 = vector.broadcast %297 : vector<1x32xf32> to vector<8x32xf32>
    %310 = arith.mulf %308, %309 : vector<8x32xf32>
    %311 = vector.extract_strided_slice %1 {offsets = [8, 0], sizes = [8, 32], strides = [1, 1]} : vector<64x32xf32> to vector<8x32xf32>
    %312 = arith.addf %310, %311 : vector<8x32xf32>
    %cst_248 = arith.constant 0.000000e+00 : f32
    %313 = vector.broadcast %cst_248 : f32 to vector<8x32xf32>
    %314 = arith.maximumf %312, %313 : vector<8x32xf32>
    %c0_249 = arith.constant 0 : index
    %c8_250 = arith.constant 8 : index
    %c0_251 = arith.constant 0 : index
    %315 = vector.load %arg17[%c0_249, %c8_250, %c0_251] : memref<1x64x32xf32, #tpu.memory_space<vmem>>, vector<1x8x32xf32>
    %316 = vector.shape_cast %315 : vector<1x8x32xf32> to vector<8x32xf32>
    %317 = vector.shape_cast %314 : vector<8x32xf32> to vector<1x8x32xf32>
    tpu.vector_store %arg17[%c0_249, %c8_250, %c0_251], %317 {strides = array<i32>} : memref<1x64x32xf32, #tpu.memory_space<vmem>>, vector<1x8x32xf32>,
    %318 = vector.extract_strided_slice %249 {offsets = [20, 0], sizes = [8, 32], strides = [1, 1]} : vector<80x32xf32> to vector<8x32xf32>
    %319 = vector.broadcast %297 : vector<1x32xf32> to vector<8x32xf32>
    %320 = arith.mulf %318, %319 : vector<8x32xf32>
    %321 = vector.extract_strided_slice %1 {offsets = [16, 0], sizes = [8, 32], strides = [1, 1]} : vector<64x32xf32> to vector<8x32xf32>
    %322 = arith.addf %320, %321 : vector<8x32xf32>
    %cst_252 = arith.constant 0.000000e+00 : f32
    %323 = vector.broadcast %cst_252 : f32 to vector<8x32xf32>
    %324 = arith.maximumf %322, %323 : vector<8x32xf32>
    %c0_253 = arith.constant 0 : index
    %c16 = arith.constant 16 : index
    %c0_254 = arith.constant 0 : index
    %325 = vector.load %arg17[%c0_253, %c16, %c0_254] : memref<1x64x32xf32, #tpu.memory_space<vmem>>, vector<1x8x32xf32>
    %326 = vector.shape_cast %325 : vector<1x8x32xf32> to vector<8x32xf32>
    %327 = vector.shape_cast %324 : vector<8x32xf32> to vector<1x8x32xf32>
    tpu.vector_store %arg17[%c0_253, %c16, %c0_254], %327 {strides = array<i32>} : memref<1x64x32xf32, #tpu.memory_space<vmem>>, vector<1x8x32xf32>,
    %328 = vector.extract_strided_slice %249 {offsets = [30, 0], sizes = [8, 32], strides = [1, 1]} : vector<80x32xf32> to vector<8x32xf32>
    %329 = vector.broadcast %297 : vector<1x32xf32> to vector<8x32xf32>
    %330 = arith.mulf %328, %329 : vector<8x32xf32>
    %331 = vector.extract_strided_slice %1 {offsets = [24, 0], sizes = [8, 32], strides = [1, 1]} : vector<64x32xf32> to vector<8x32xf32>
    %332 = arith.addf %330, %331 : vector<8x32xf32>
    %cst_255 = arith.constant 0.000000e+00 : f32
    %333 = vector.broadcast %cst_255 : f32 to vector<8x32xf32>
    %334 = arith.maximumf %332, %333 : vector<8x32xf32>
    %c0_256 = arith.constant 0 : index
    %c24 = arith.constant 24 : index
    %c0_257 = arith.constant 0 : index
    %335 = vector.load %arg17[%c0_256, %c24, %c0_257] : memref<1x64x32xf32, #tpu.memory_space<vmem>>, vector<1x8x32xf32>
    %336 = vector.shape_cast %335 : vector<1x8x32xf32> to vector<8x32xf32>
    %337 = vector.shape_cast %334 : vector<8x32xf32> to vector<1x8x32xf32>
    tpu.vector_store %arg17[%c0_256, %c24, %c0_257], %337 {strides = array<i32>} : memref<1x64x32xf32, #tpu.memory_space<vmem>>, vector<1x8x32xf32>,
    %338 = vector.extract_strided_slice %249 {offsets = [40, 0], sizes = [8, 32], strides = [1, 1]} : vector<80x32xf32> to vector<8x32xf32>
    %339 = vector.broadcast %297 : vector<1x32xf32> to vector<8x32xf32>
    %340 = arith.mulf %338, %339 : vector<8x32xf32>
    %341 = vector.extract_strided_slice %1 {offsets = [32, 0], sizes = [8, 32], strides = [1, 1]} : vector<64x32xf32> to vector<8x32xf32>
    %342 = arith.addf %340, %341 : vector<8x32xf32>
    %cst_258 = arith.constant 0.000000e+00 : f32
    %343 = vector.broadcast %cst_258 : f32 to vector<8x32xf32>
    %344 = arith.maximumf %342, %343 : vector<8x32xf32>
    %c0_259 = arith.constant 0 : index
    %c32 = arith.constant 32 : index
    %c0_260 = arith.constant 0 : index
    %345 = vector.load %arg17[%c0_259, %c32, %c0_260] : memref<1x64x32xf32, #tpu.memory_space<vmem>>, vector<1x8x32xf32>
    %346 = vector.shape_cast %345 : vector<1x8x32xf32> to vector<8x32xf32>
    %347 = vector.shape_cast %344 : vector<8x32xf32> to vector<1x8x32xf32>
    tpu.vector_store %arg17[%c0_259, %c32, %c0_260], %347 {strides = array<i32>} : memref<1x64x32xf32, #tpu.memory_space<vmem>>, vector<1x8x32xf32>,
    %348 = vector.extract_strided_slice %249 {offsets = [50, 0], sizes = [8, 32], strides = [1, 1]} : vector<80x32xf32> to vector<8x32xf32>
    %349 = vector.broadcast %297 : vector<1x32xf32> to vector<8x32xf32>
    %350 = arith.mulf %348, %349 : vector<8x32xf32>
    %351 = vector.extract_strided_slice %1 {offsets = [40, 0], sizes = [8, 32], strides = [1, 1]} : vector<64x32xf32> to vector<8x32xf32>
    %352 = arith.addf %350, %351 : vector<8x32xf32>
    %cst_261 = arith.constant 0.000000e+00 : f32
    %353 = vector.broadcast %cst_261 : f32 to vector<8x32xf32>
    %354 = arith.maximumf %352, %353 : vector<8x32xf32>
    %c0_262 = arith.constant 0 : index
    %c40 = arith.constant 40 : index
    %c0_263 = arith.constant 0 : index
    %355 = vector.load %arg17[%c0_262, %c40, %c0_263] : memref<1x64x32xf32, #tpu.memory_space<vmem>>, vector<1x8x32xf32>
    %356 = vector.shape_cast %355 : vector<1x8x32xf32> to vector<8x32xf32>
    %357 = vector.shape_cast %354 : vector<8x32xf32> to vector<1x8x32xf32>
    tpu.vector_store %arg17[%c0_262, %c40, %c0_263], %357 {strides = array<i32>} : memref<1x64x32xf32, #tpu.memory_space<vmem>>, vector<1x8x32xf32>,
    %358 = vector.extract_strided_slice %249 {offsets = [60, 0], sizes = [8, 32], strides = [1, 1]} : vector<80x32xf32> to vector<8x32xf32>
    %359 = vector.broadcast %297 : vector<1x32xf32> to vector<8x32xf32>
    %360 = arith.mulf %358, %359 : vector<8x32xf32>
    %361 = vector.extract_strided_slice %1 {offsets = [48, 0], sizes = [8, 32], strides = [1, 1]} : vector<64x32xf32> to vector<8x32xf32>
    %362 = arith.addf %360, %361 : vector<8x32xf32>
    %cst_264 = arith.constant 0.000000e+00 : f32
    %363 = vector.broadcast %cst_264 : f32 to vector<8x32xf32>
    %364 = arith.maximumf %362, %363 : vector<8x32xf32>
    %c0_265 = arith.constant 0 : index
    %c48 = arith.constant 48 : index
    %c0_266 = arith.constant 0 : index
    %365 = vector.load %arg17[%c0_265, %c48, %c0_266] : memref<1x64x32xf32, #tpu.memory_space<vmem>>, vector<1x8x32xf32>
    %366 = vector.shape_cast %365 : vector<1x8x32xf32> to vector<8x32xf32>
    %367 = vector.shape_cast %364 : vector<8x32xf32> to vector<1x8x32xf32>
    tpu.vector_store %arg17[%c0_265, %c48, %c0_266], %367 {strides = array<i32>} : memref<1x64x32xf32, #tpu.memory_space<vmem>>, vector<1x8x32xf32>,
    %368 = vector.extract_strided_slice %249 {offsets = [70, 0], sizes = [8, 32], strides = [1, 1]} : vector<80x32xf32> to vector<8x32xf32>
    %369 = vector.broadcast %297 : vector<1x32xf32> to vector<8x32xf32>
    %370 = arith.mulf %368, %369 : vector<8x32xf32>
    %371 = vector.extract_strided_slice %1 {offsets = [56, 0], sizes = [8, 32], strides = [1, 1]} : vector<64x32xf32> to vector<8x32xf32>
    %372 = arith.addf %370, %371 : vector<8x32xf32>
    %cst_267 = arith.constant 0.000000e+00 : f32
    %373 = vector.broadcast %cst_267 : f32 to vector<8x32xf32>
    %374 = arith.maximumf %372, %373 : vector<8x32xf32>
    %c0_268 = arith.constant 0 : index
    %c56 = arith.constant 56 : index
    %c0_269 = arith.constant 0 : index
    %375 = vector.load %arg17[%c0_268, %c56, %c0_269] : memref<1x64x32xf32, #tpu.memory_space<vmem>>, vector<1x8x32xf32>
    %376 = vector.shape_cast %375 : vector<1x8x32xf32> to vector<8x32xf32>
    %377 = vector.shape_cast %374 : vector<8x32xf32> to vector<1x8x32xf32>
    tpu.vector_store %arg17[%c0_268, %c56, %c0_269], %377 {strides = array<i32>} : memref<1x64x32xf32, #tpu.memory_space<vmem>>, vector<1x8x32xf32>,
    return
  }
  func.func @transform_0(%arg0: i32) -> (i32, i32, i32) {
    %c0_i32 = arith.constant 0 : i32
    %c0_i32_0 = arith.constant 0 : i32
    %c0_i32_1 = arith.constant 0 : i32
    return %arg0, %c0_i32, %c0_i32_0 : i32, i32, i32
  }
  func.func @transform_1(%arg0: i32) -> (i32, i32) {
    %c0_i32 = arith.constant 0 : i32
    %c0_i32_0 = arith.constant 0 : i32
    %c0_i32_1 = arith.constant 0 : i32
    return %c0_i32, %c0_i32_0 : i32, i32
  }
  func.func @transform_2(%arg0: i32) -> (i32, i32) {
    %c0_i32 = arith.constant 0 : i32
    %c0_i32_0 = arith.constant 0 : i32
    %c0_i32_1 = arith.constant 0 : i32
    return %c0_i32, %c0_i32_0 : i32, i32
  }
  func.func @transform_3(%arg0: i32) -> (i32, i32, i32) {
    %c0_i32 = arith.constant 0 : i32
    %c0_i32_0 = arith.constant 0 : i32
    %c0_i32_1 = arith.constant 0 : i32
    %c0_i32_2 = arith.constant 0 : i32
    return %c0_i32, %c0_i32_0, %c0_i32_1 : i32, i32, i32
  }
  func.func @transform_4(%arg0: i32) -> (i32, i32) {
    %c0_i32 = arith.constant 0 : i32
    %c0_i32_0 = arith.constant 0 : i32
    %c0_i32_1 = arith.constant 0 : i32
    return %c0_i32, %c0_i32_0 : i32, i32
  }
  func.func @transform_5(%arg0: i32) -> (i32, i32, i32) {
    %c0_i32 = arith.constant 0 : i32
    %c0_i32_0 = arith.constant 0 : i32
    %c0_i32_1 = arith.constant 0 : i32
    %c0_i32_2 = arith.constant 0 : i32
    return %c0_i32, %c0_i32_0, %c0_i32_1 : i32, i32, i32
  }
  func.func @transform_6(%arg0: i32) -> (i32, i32) {
    %c0_i32 = arith.constant 0 : i32
    %c0_i32_0 = arith.constant 0 : i32
    %c0_i32_1 = arith.constant 0 : i32
    return %c0_i32, %c0_i32_0 : i32, i32
  }
  func.func @transform_7(%arg0: i32) -> (i32, i32, i32) {
    %c0_i32 = arith.constant 0 : i32
    %c0_i32_0 = arith.constant 0 : i32
    %c0_i32_1 = arith.constant 0 : i32
    %c0_i32_2 = arith.constant 0 : i32
    return %c0_i32, %c0_i32_0, %c0_i32_1 : i32, i32, i32
  }
  func.func @transform_8(%arg0: i32) -> (i32, i32) {
    %c0_i32 = arith.constant 0 : i32
    %c0_i32_0 = arith.constant 0 : i32
    %c0_i32_1 = arith.constant 0 : i32
    return %c0_i32, %c0_i32_0 : i32, i32
  }
  func.func @transform_9(%arg0: i32) -> (i32, i32) {
    %c0_i32 = arith.constant 0 : i32
    %c0_i32_0 = arith.constant 0 : i32
    %c0_i32_1 = arith.constant 0 : i32
    return %c0_i32, %c0_i32_0 : i32, i32
  }
  func.func @transform_10(%arg0: i32) -> (i32, i32) {
    %c0_i32 = arith.constant 0 : i32
    %c0_i32_0 = arith.constant 0 : i32
    %c0_i32_1 = arith.constant 0 : i32
    return %c0_i32, %c0_i32_0 : i32, i32
  }
  func.func @transform_11(%arg0: i32) -> (i32, i32) {
    %c0_i32 = arith.constant 0 : i32
    %c0_i32_0 = arith.constant 0 : i32
    %c0_i32_1 = arith.constant 0 : i32
    return %c0_i32, %c0_i32_0 : i32, i32
  }
  func.func @transform_12(%arg0: i32) -> (i32, i32) {
    %c0_i32 = arith.constant 0 : i32
    %c0_i32_0 = arith.constant 0 : i32
    %c0_i32_1 = arith.constant 0 : i32
    return %c0_i32, %c0_i32_0 : i32, i32
  }
  func.func @transform_13(%arg0: i32) -> (i32, i32) {
    %c0_i32 = arith.constant 0 : i32
    %c0_i32_0 = arith.constant 0 : i32
    %c0_i32_1 = arith.constant 0 : i32
    return %c0_i32, %c0_i32_0 : i32, i32
  }
  func.func @transform_14(%arg0: i32) -> (i32, i32) {
    %c0_i32 = arith.constant 0 : i32
    %c0_i32_0 = arith.constant 0 : i32
    %c0_i32_1 = arith.constant 0 : i32
    return %c0_i32, %c0_i32_0 : i32, i32
  }
  func.func @transform_15(%arg0: i32) -> (i32, i32) {
    %c0_i32 = arith.constant 0 : i32
    %c0_i32_0 = arith.constant 0 : i32
    %c0_i32_1 = arith.constant 0 : i32
    return %c0_i32, %c0_i32_0 : i32, i32
  }
  func.func @transform_16(%arg0: i32) -> (i32, i32, i32) {
    %c0_i32 = arith.constant 0 : i32
    %c0_i32_0 = arith.constant 0 : i32
    %c0_i32_1 = arith.constant 0 : i32
    return %arg0, %c0_i32, %c0_i32_0 : i32, i32, i32
  }
}

</mosaic_0001>

<bundles_post_ra>
// kernel: se_bottleneck_forward.1
= control target key start
LH: loop header
LB: loop body
LE: loop exit
PB: predicated region body
PF: predicated region fallthrough
CT: control target
= control target key end

     0   :  { %s7488_s0 = inlined_call_operand.vmem [shape: f32[2,64,32], index: 0, kind: input, shape index: {}]   ;;  %s7489_s1 = inlined_call_operand.vmem [shape: bf16[32,12], index: 1, kind: input, shape index: {}]   ;;  %s7490_s2 = inlined_call_operand.vmem [shape: f32[1,12], index: 2, kind: input, shape index: {}]   ;;  %s7491_s3 = inlined_call_operand.vmem [shape: bf16[9,8,8], index: 3, kind: input, shape index: {}]   ;;  %s7492_s4 = inlined_call_operand.vmem [shape: f32[1,8], index: 4, kind: input, shape index: {}]   ;;  %s7493_s5 = inlined_call_operand.vmem [shape: bf16[9,4,4], index: 5, kind: input, shape index: {}]   ;;  %s7494_s6 = inlined_call_operand.vmem [shape: f32[1,4], index: 6, kind: input, shape index: {}]   ;;  %s7495_s7 = inlined_call_operand.vmem [shape: bf16[9,4,4], index: 7, kind: input, shape index: {}]   ;;  %s7496_s8 = inlined_call_operand.vmem [shape: f32[1,4], index: 8, kind: input, shape index: {}]   ;;  %s7497_s9 = inlined_call_operand.vmem [shape: bf16[8,32], index: 9, kind: input, shape index: {}]   ;;  %s7498_s10 = inlined_call_operand.vmem [shape: bf16[4,32], index: 10, kind: input, shape index: {}]   ;;  %s7499_s11 = inlined_call_operand.vmem [shape: f32[1,32], index: 11, kind: input, shape index: {}]   ;;  %s7500_s12 = inlined_call_operand.vmem [shape: f32[32,2], index: 12, kind: input, shape index: {}]   ;;  %s7501_s13 = inlined_call_operand.vmem [shape: f32[1,2], index: 13, kind: input, shape index: {}]   ;;  %s7502_s14 = inlined_call_operand.vmem [shape: f32[2,32], index: 14, kind: input, shape index: {}]   ;;  %s7503_s15 = inlined_call_operand.vmem [shape: f32[1,32], index: 15, kind: input, shape index: {}]   ;;  %s7504_s16 = inlined_call_operand.hbm [shape: f32[2,64,32], index: 16, kind: output, shape index: {}]  }
   0x1   :  { %7520 = sst [smem:[#allocation43_spill]] %s7488_s0 }
   0x2   :  { %21 = vsyncpa [#allocation4], 0 }
   0x3   :  { %23 = vsyncpa [#allocation4 + $0x1], 0  ;;  %s5861_s21 = smov 0   ;;  %s5863_s22 = smov 0  }
   0x4   :  { %s5865_s23 = smov 0   ;;  %s5867_s24 = smov 0  }
   0x5 LB: > { %7521 = sst [smem:[#allocation6_spill]] %s5763_s23  ;;  %s5882_s25 = sadd.s32 4294967295, %s5767_s24   ;;  %s5767_s24 = sphi %s5867_s24, %s7600_s24   ;;  %s5763_s23 = sphi %s5865_s23, %s7602_s23   ;;  %s5759_s22 = sphi %s5863_s22, %s7604_s22   ;;  %s5755_s21 = sphi %s5861_s21, %s7603_s21  }
   0x6   : > { %s4589_s26 = sadd.s32 4294967294, %s5767_s24   ;;  %s5886_s27 = sadd.s32 1, %s5767_s24  }
   0x7   : > { %7522 = sst [smem:[#allocation7_spill]] %s5886_s27  ;;  %s377_s28 = sadd.s32 1, %s5763_s23 }
   0x8   : > { %s374_s29 = ssub.s32 %s5767_s24, %s5886_s27  ;;  %p387_p0 = scmp.ne.s32.totalorder %s5763_s23, %s5759_s22 }
   0x9   : > { %p375_p1 = scmp.eq.s32.totalorder %s374_s29, 0  ;;  %p388_p2 = scmp.eq.s32.totalorder %s5882_s25, 1 }
   0xa   : > { %p393_p3 = scmp.ne.s32.totalorder %s5759_s22, %s5755_s21  ;;  %p394_p4 = scmp.eq.s32.totalorder %s4589_s26, 1 }
   0xb   : > { %s5897_s30 = scalar_select %p375_p1, %s5763_s23, %s377_s28  }
   0xc   : > { %p5899_p5 = por %p388_p2, %p387_p0  ;;  %p5903_p6 = por %p394_p4, %p393_p3 }
   0xd   : > { %7523 = sst [smem:[#allocation8_spill]] %s5897_s30  ;;  %p4592_p7 = scmp.ge.s32.totalorder %s5767_s24, 1 }
   0xe   : > { %s7525_s17 = scalar_select %p5903_p6, 1, 0 }
   0xf   : > { %p465_p8 = scmp.lt.s32.totalorder %s5767_s24, 3 }
  0x10   : > { %7526 = sst [smem:[#allocation9_spill]] %s7525_s17 }
  0x11   : > { %p466_p9 = pnand %p4592_p7, %p465_p8 }
  0x13   : > { %469 = sbr.rel (%p466_p9) target bundleno = 1963 (0x7ab), region = 84 }
  0x1a   : > { %v5691_v0 = vld [vmem:[%s7489_s1] sm:$0xff]   ;;  %p515_p10 = scmp.lt.s32.totalorder %s5882_s25, 1  ;;  %v5692_v1 = vld [vmem:[%s7489_s1 + $0x8] sm:$0xff]   ;;  %s7527_s27 = sld [smem:[#allocation43_spill]]  ;;  %vm556_vm0 = vcmask 261120   ;;  %v7513_v14 = vmov 0.0  }
  0x1b   : > { %4974 = vmatprep.subr.bf16.mxu0 %v5691_v0  ;;  %4986 = vmatprep.subr.bf16.mxu1 %v7513_v14  ;;  %v681_v15 = vld [vmem:[%s7491_s3] sm:$0xf]  ;;  %vm714_vm1 = vcmask 1043456   ;;  %vm642_vm2 = vcmask 64512   ;;  %v4603_v17 = vld [vmem:[%s7491_s3 + $0x4] sm:$0xf] }
  0x1c   : > { %s516_s28 = scalar_select %p515_p10, %s5882_s25, 1  ;;  %4975 = vmatpush3.bf16.msra.mxu0 %v5691_v0  ;;  %v807_v16 = vsel %vm714_vm1, %v681_v15, 0  ;;  %646 = vst.msk [vmem:[#allocation2 + $0x18] sm:$0xff] %vm642_vm2, %v7513_v14  ;;  %647 = vst.msk [vmem:[#allocation2 + $0x20] sm:$0xff] %vm642_vm2, %v7513_v14  ;;  %v716_v18 = vsel %vm714_vm1, %v4603_v17, 0  ;;  %vm5770_vm3 = vmmov 0  }
  0x1d   : > { %4976 = vmatprep.subr.bf16.mxu0 %v5692_v1  ;;  %643 = vst.msk [vmem:[#allocation2] sm:$0xff] %vm642_vm2, %v7513_v14  ;;  %644 = vst.msk [vmem:[#allocation2 + $0x8] sm:$0xff] %vm642_vm2, %v7513_v14  ;;  %4987 = vmatpush3.bf16.msra.mxu1 %v716_v18  ;;  %v4596_v25 = vld [vmem:[%s7490_s2] ss:$0 sm:$0xff]  ;;  %s5771_s26 = smov 120   ;;  %vm1753_vm4 = vcmask 31744  }
  0x1e   : > { %s4785_s29 = sshll.u32 %s516_s28, 6  ;;  %645 = vst.msk [vmem:[#allocation2 + $0x10] sm:$0xff] %vm642_vm2, %v7513_v14  ;;  %648 = vst.msk [vmem:[#allocation2 + $0x28] sm:$0xff] %vm642_vm2, %v7513_v14  ;;  %5030 = vmatprep.subr.bf16.mxu1 %v7513_v14  ;;  %4988 = vmatprep.mubr.msk.bf16.mxu1 %vm5770_vm3, %v7513_v14  ;;  %v4614_v45 = vld [vmem:[%s7491_s3 + $0x8] sm:$0xf]  ;;  %vm1838_vm5 = vcmask 1041408  }
  0x1f   : > { %649 = vst.msk [vmem:[#allocation2 + $0x30] sm:$0xff] %vm642_vm2, %v7513_v14  ;;  %650 = vst.msk [vmem:[#allocation2 + $0x38] sm:$0xff] %vm642_vm2, %v7513_v14  ;;  %v4620_v49 = vld [vmem:[%s7491_s3 + $0xc] sm:$0xf]  ;;  %v915_v56 = vsel %vm714_vm1, %v4614_v45, 0  ;;  %vm2874_vm6 = vcmask 31746  }
  0x20   : > { %s5920_s17 = scalar_lea.vmem %s7527_s27, %s4785_s29  ;;  %4977 = vmatpush3.bf16.msra.mxu0 %v5692_v1  ;;  %651 = vst.msk [vmem:[#allocation2 + $0x40] sm:$0xff] %vm642_vm2, %v7513_v14  ;;  %652 = vst.msk [vmem:[#allocation2 + $0x48] sm:$0xff] %vm642_vm2, %v7513_v14  ;;  %v1033_v57 = vsel %vm714_vm1, %v4620_v49, 0  ;;  %vm2876_vm7 = vcmask 25600   ;;  %vm2878_vm8 = vcmask 31748   ;;  %vm2880_vm9 = vcmask 27648  }
  0x21   : > { %v521_v2 = vld [vmem:[%s5920_s17] sm:$0xff]  ;;  %v522_v3 = vld [vmem:[%s5920_s17 + $0x8] sm:$0xff]  ;;  %v523_v4 = vld [vmem:[%s5920_s17 + $0x10] sm:$0xff]  ;;  %5008 = vmatprep.subr.bf16.mxu0 %v7513_v14  ;;  %653 = vst.msk [vmem:[#allocation2 + $0x50] sm:$0xff] %vm642_vm2, %v7513_v14  ;;  %vm2882_vm10 = vcmask 31750   ;;  %vm2884_vm11 = vcmask 29696  }
  0x22   : > { %v529_v5 = vpack.c.bf16 %v522_v3, %v521_v2  ;;  %v524_v6 = vld [vmem:[%s5920_s17 + $0x18] sm:$0xff]  ;;  %v525_v7 = vld [vmem:[%s5920_s17 + $0x20] sm:$0xff]  ;;  %v526_v8 = vld [vmem:[%s5920_s17 + $0x28] sm:$0xff]  ;;  %654 = vst.msk [vmem:[#allocation2 + $0x58] sm:$0xff] %vm642_vm2, %v7513_v14  ;;  %vm4181_vm12 = vcmask 1045504   ;;  %vm4350_vm13 = vcmask 15360  }
  0x23   : > { %v530_v9 = vpack.c.bf16 %v524_v6, %v523_v4  ;;  %v531_v10 = vpack.c.bf16 %v526_v8, %v525_v7  ;;  %v527_v11 = vld [vmem:[%s5920_s17 + $0x30] sm:$0xff]  ;;  %v528_v12 = vld [vmem:[%s5920_s17 + $0x38] sm:$0xff]  ;;  %655 = vst.msk [vmem:[#allocation2 + $0x60] sm:$0xff] %vm642_vm2, %v7513_v14  ;;  %s512_s30 = sand.u32 1, %s5759_s22   ;;  %vm4450_vm14 = vcmask 261122   ;;  %vm4452_vm15 = vcmask 254976  }
  0x24   : > { %4978 = vmatprep.mubr.msk.bf16.mxu0 %vm556_vm0, %v529_v5  ;;  %v532_v13 = vpack.c.bf16 %v528_v12, %v527_v11  ;;  %v682_v19 = vld [vmem:[#allocation2 + $0x1] sm:$0xff]  ;;  %s4593_s18 = sshll.u32 %s512_s30, 6  ;;  %s7447_s29 = scalar_lea.sflag [#allocation4], %s512_s30 }
  0x25   : > { %4979 = vmatmul.mubr.msk.bf16.vlgmr.msra.gmra.mrb[0].mxu0 %vm556_vm0, %v530_v9  ;;  %v666_v20 = vld [vmem:[#allocation2] sm:$0xff]  ;;  %s7404_s19 = scalar_lea.vmem [#allocation3], %s4593_s18  ;;  %s5773_s27 = smov [#allocation3]  }
  0x26   : > { %4982 = vmatprep.mubr.msk.bf16.mxu0 %vm556_vm0, %v531_v10  ;;  %5009 = vmatpush3.bf16.msra.mxu0 %v807_v16  ;;  %v5972_v21 = vld [vmem:[#allocation2 + $0x2] sm:$0xff]  ;;  %s4527_s20 = sshll.u32 %s7404_s19, 4  ;;  %s5709_s18 = sshll.u32 %s5773_s27, 4  ;;  %s7437_s20 = int_to_ptr.vmem [resolvable:$true] %s4527_s20  ;;  %s5710_s18 = int_to_ptr.vmem [resolvable:$false] %s5709_s18 }
  0x27   : > { %5052 = vmatprep.subr.bf16.mxu0 %v7513_v14  ;;  %1735 = vst.msk [vmem:[#allocation2] sm:$0xff] %vm642_vm2, %v7513_v14  ;;  %s5705_s23 = scalar_lea.vmem %s7437_s20, 1024  ;;  %p5712_p0 = scmp.lt.s32.totalorder %s7437_s20, %s5710_s18 }
  0x28   : > { %p5706_p11 = scmp.ne.s32.totalorder %s7437_s20, %s5705_s23 }
  0x2a   : > { %v5980_v22 = vld [vmem:[#allocation2 + $0x5c] sm:$0xff]  ;;  %p5707_p12 = pnand %p5706_p11, %p5899_p5 }
  0x2b   : > { %v5982_v23 = vld [vmem:[#allocation2 + $0x5d] sm:$0xff] }
  0x2c   : > { %v5984_v24 = vld [vmem:[#allocation2 + $0x5e] sm:$0xff]  ;;  %p5708_p13 = pneg %p5707_p12 }
  0x2d   : > { %4983 = vmatmul.mubr.msk.bf16.gmra.mrb[4].mxu0 %vm556_vm0, %v532_v13  ;;  %7528 = vst [vmem:[#allocation10_spill] sm:$0xff] %v5984_v24  ;;  %1747 = vst.msk [vmem:[#allocation2 + $0x60] sm:$0xff] %vm642_vm2, %v7513_v14 }
  0x2e   : > { %5010 = vmatprep.mubr.msk.bf16.mxu0 %vm5770_vm3, %v7513_v14 }
  0xf8   : > { %v4980_v26 = vpop.f32.mrb[0].mxu0 }
  0xf9   : > { %v603_v27 = vpop.f32.mrb[1].mxu0  ;;  %v612_v28 = vadd.f32 %v4980_v26, %v4596_v25 }
  0xfa   : > { %v4981_v29 = vpop.f32.mrb[2].mxu0  ;;  %v604_v30 = vadd.f32 %v4596_v25, %v603_v27 }
  0xfb   : > { %v615_v31 = vadd.f32 %v4981_v29, %v4596_v25  ;;  %v606_v32 = vpop.f32.mrb[3].mxu0  ;;  %v636_v33 = vmax.f32 %v612_v28, 0.0 }
  0xfc   : > { %v607_v34 = vadd.f32 %v4596_v25, %v606_v32  ;;  %v634_v35 = vmax.f32 %v604_v30, 0.0 }
  0xfd   : > { %1761 = vrot.lane.b32.xlu1 %v636_v33, %s5771_s26  ;;  %660 = vst.msk [vmem:[#allocation2 + $0x1f] sm:$0xff] %vm642_vm2, %v636_v33  ;;  %v637_v36 = vmax.f32 %v615_v31, 0.0 }
  0xfe   : > { %1750 = vrot.lane.b32.xlu0 %v634_v35, %s5771_s26  ;;  %658 = vst.msk [vmem:[#allocation2 + $0xb] sm:$0xff] %vm642_vm2, %v634_v35  ;;  %v635_v37 = vmax.f32 %v607_v34, 0.0 }
  0xff   : > { %661 = vst.msk [vmem:[#allocation2 + $0x29] sm:$0xff] %vm642_vm2, %v637_v36 }
 0x100   : > { %v4984_v38 = vpop.f32.mrb[4].mxu0  ;;  %659 = vst.msk [vmem:[#allocation2 + $0x15] sm:$0xff] %vm642_vm2, %v635_v37 }
 0x101   : > { %v628_v39 = vadd.f32 %v4984_v38, %v4596_v25  ;;  %1766 = vrot.lane.b32.xlu1 %v637_v36, %s5771_s26  ;;  %v619_v40 = vpop.f32.mrb[5].mxu0 }
 0x102   : > { %v620_v41 = vadd.f32 %v4596_v25, %v619_v40  ;;  %v4985_v42 = vpop.f32.mrb[6].mxu0  ;;  %1756 = vrot.lane.b32.xlu0 %v635_v37, %s5771_s26 }
 0x103   : > { %v631_v43 = vadd.f32 %v4985_v42, %v4596_v25  ;;  %v622_v44 = vpop.f32.mrb[7].mxu0  ;;  %v640_v46 = vmax.f32 %v628_v39, 0.0 }
 0x104   : > { %v623_v47 = vadd.f32 %v4596_v25, %v622_v44  ;;  %v638_v48 = vmax.f32 %v620_v41, 0.0  ;;  %v686_v9 = vld [vmem:[#allocation2 + $0x21] sm:$0xff] }
 0x105   : > { %v683_v50 = vld [vmem:[#allocation2 + $0x9] sm:$0xff]  ;;  %v641_v52 = vmax.f32 %v631_v43, 0.0  ;;  %664 = vst.msk [vmem:[#allocation2 + $0x47] sm:$0xff] %vm642_vm2, %v640_v46  ;;  %v670_v10 = vld [vmem:[#allocation2 + $0x20] sm:$0xff] }
 0x106   : > { %v667_v51 = vld [vmem:[#allocation2 + $0x8] sm:$0xff]  ;;  %662 = vst.msk [vmem:[#allocation2 + $0x33] sm:$0xff] %vm642_vm2, %v638_v48  ;;  %1771 = vrot.lane.b32.xlu0 %v638_v48, %s5771_s26  ;;  %v639_v53 = vmax.f32 %v623_v47, 0.0  ;;  %v692_v54 = vpack.c.bf16 %v683_v50, %v682_v19  ;;  %v6055_v16 = vld [vmem:[#allocation2 + $0x1d] sm:$0xff] }
 0x107   : > { %v676_v55 = vpack.c.bf16 %v667_v51, %v666_v20  ;;  %665 = vst.msk [vmem:[#allocation2 + $0x51] sm:$0xff] %vm642_vm2, %v641_v52  ;;  %v6017_v58 = vld [vmem:[#allocation2 + $0xa] sm:$0xff]  ;;  %v685_v62 = vld [vmem:[#allocation2 + $0x19] sm:$0xff]  ;;  %v6061_v20 = vld [vmem:[#allocation2 + $0x22] sm:$0xff] }
 0x108   : > { %1776 = vrot.lane.b32.xlu1 %v639_v53, %s5771_s26  ;;  %663 = vst.msk [vmem:[#allocation2 + $0x3d] sm:$0xff] %vm642_vm2, %v639_v53  ;;  %4989 = vmatmul.mubr.msk.bf16.vlgmr.msra.gmra.mrb[0].mxu1 %vm642_vm2, %v692_v54  ;;  %v6019_v59 = vld [vmem:[#allocation2 + $0xb] sm:$0xff]  ;;  %v669_v0 = vld [vmem:[#allocation2 + $0x18] sm:$0xff]  ;;  %v6067_v27 = vld [vmem:[#allocation2 + $0x23] sm:$0xff] }
 0x109   : > { %5011 = vmatmul.mubr.msk.bf16.vlgmr.msra.gmra.mrb[8].mxu0 %vm642_vm2, %v676_v55  ;;  %5031 = vmatpush3.bf16.msra.mxu1 %v915_v56  ;;  %v6021_v60 = vld [vmem:[#allocation2 + $0xc] sm:$0xff]  ;;  %v6041_v5 = vld [vmem:[#allocation2 + $0x14] sm:$0xff]  ;;  %v6053_v15 = vld [vmem:[#allocation2 + $0x1c] sm:$0xff] }
 0x10a   : > { %5053 = vmatpush3.bf16.msra.mxu0 %v1033_v57  ;;  %4992 = vmatprep.mubr.msk.bf16.mxu1 %vm5770_vm3, %v7513_v14  ;;  %v684_v61 = vld [vmem:[#allocation2 + $0x11] sm:$0xff]  ;;  %1736 = vst.msk [vmem:[#allocation2 + $0x8] sm:$0xff] %vm642_vm2, %v7513_v14  ;;  %v687_v8 = vld [vmem:[#allocation2 + $0x29] sm:$0xff]  ;;  %v6049_v12 = vld [vmem:[#allocation2 + $0x1a] sm:$0xff] }
 0x10b   : > { %5014 = vmatprep.mubr.msk.bf16.mxu0 %vm5770_vm3, %v7513_v14  ;;  %1781 = vrot.lane.b32.xlu0 %v640_v46, %s5771_s26  ;;  %v668_v63 = vld [vmem:[#allocation2 + $0x10] sm:$0xff]  ;;  %v693_v1 = vpack.c.bf16 %v685_v62, %v684_v61  ;;  %v671_v11 = vld [vmem:[#allocation2 + $0x28] sm:$0xff]  ;;  %v6051_v13 = vld [vmem:[#allocation2 + $0x1b] sm:$0xff]  ;;  %v694_v17 = vpack.c.bf16 %v687_v8, %v686_v9 }
 0x10c   : > { %1786 = vrot.lane.b32.xlu1 %v641_v52, %s5771_s26  ;;  %5074 = vmatprep.subr.bf16.mxu1 %v7513_v14  ;;  %v677_v2 = vpack.c.bf16 %v669_v0, %v668_v63  ;;  %v6035_v3 = vld [vmem:[#allocation2 + $0x12] sm:$0xff]  ;;  %v6063_v25 = vld [vmem:[#allocation2 + $0x2a] sm:$0xff]  ;;  %v678_v36 = vpack.c.bf16 %v671_v11, %v670_v10  ;;  %v6109_v55 = vld [vmem:[#allocation2 + $0x1e] sm:$0xff] }
 0x10d   : > { %5096 = vmatprep.subr.bf16.mxu0 %v7513_v14  ;;  %v6037_v4 = vld [vmem:[#allocation2 + $0x13] sm:$0xff]  ;;  %v6069_v28 = vld [vmem:[#allocation2 + $0x24] sm:$0xff] }
 0x10e   : > { %v6043_v6 = vld [vmem:[#allocation2 + $0x15] sm:$0xff]  ;;  %v6071_v29 = vld [vmem:[#allocation2 + $0x2b] sm:$0xff] }
 0x10f   : > { %v6045_v7 = vld [vmem:[#allocation2 + $0x16] sm:$0xff]  ;;  %v6075_v31 = vld [vmem:[#allocation2 + $0x2c] sm:$0xff]  ;;  %v690_v39 = vld [vmem:[#allocation2 + $0x41] sm:$0xff] }
 0x110   : > { %4993 = vmatmul.mubr.msk.bf16.gmra.mrb[4].mxu1 %vm642_vm2, %v693_v1  ;;  %1737 = vst.msk [vmem:[#allocation2 + $0x10] sm:$0xff] %vm642_vm2, %v7513_v14  ;;  %v6057_v18 = vld [vmem:[#allocation2 + $0x31] sm:$0xff]  ;;  %v6079_v33 = vld [vmem:[#allocation2 + $0x25] sm:$0xff]  ;;  %v689_v37 = vld [vmem:[#allocation2 + $0x39] sm:$0xff] }
 0x111   : > { %5015 = vmatmul.mubr.msk.bf16.gmra.mrb[12].mxu0 %vm642_vm2, %v677_v2  ;;  %4996 = vmatprep.mubr.msk.bf16.mxu1 %vm5770_vm3, %v7513_v14  ;;  %v6059_v19 = vld [vmem:[#allocation2 + $0x30] sm:$0xff]  ;;  %v673_v38 = vld [vmem:[#allocation2 + $0x38] sm:$0xff]  ;;  %v674_v41 = vld [vmem:[#allocation2 + $0x40] sm:$0xff]  ;;  %1738 = vst.msk [vmem:[#allocation2 + $0x18] sm:$0xff] %vm642_vm2, %v7513_v14  ;;  %v695_v24 = vpack.c.bf16 %v689_v37, %v6057_v18 }
 0x112   : > { %5018 = vmatprep.mubr.msk.bf16.mxu0 %vm5770_vm3, %v7513_v14  ;;  %v6065_v26 = vld [vmem:[#allocation2 + $0x32] sm:$0xff]  ;;  %v691_v40 = vld [vmem:[#allocation2 + $0x49] sm:$0xff]  ;;  %v6085_v43 = vld [vmem:[#allocation2 + $0x3a] sm:$0xff] }
 0x113   : > { %v6073_v30 = vld [vmem:[#allocation2 + $0x33] sm:$0xff]  ;;  %v675_v42 = vld [vmem:[#allocation2 + $0x48] sm:$0xff]  ;;  %v6091_v46 = vld [vmem:[#allocation2 + $0x3b] sm:$0xff]  ;;  %v696_v18 = vpack.c.bf16 %v691_v40, %v690_v39  ;;  %v1010_v40 = vpack.c.bf16 %v6035_v3, %v6017_v58 }
 0x114   : > { %v6077_v32 = vld [vmem:[#allocation2 + $0x34] sm:$0xff]  ;;  %v6087_v44 = vld [vmem:[#allocation2 + $0x42] sm:$0xff]  ;;  %v6089_v45 = vld [vmem:[#allocation2 + $0x4a] sm:$0xff] }
 0x115   : > { %v6081_v34 = vld [vmem:[#allocation2 + $0x2d] sm:$0xff]  ;;  %v6083_v35 = vld [vmem:[#allocation2 + $0x35] sm:$0xff]  ;;  %v6093_v47 = vld [vmem:[#allocation2 + $0x43] sm:$0xff] }
 0x116   : > { %v6095_v48 = vld [vmem:[#allocation2 + $0x3c] sm:$0xff]  ;;  %v6097_v49 = vld [vmem:[#allocation2 + $0x44] sm:$0xff]  ;;  %v6101_v51 = vld [vmem:[#allocation2 + $0x4c] sm:$0xff] }
 0x117   : > { %v6099_v50 = vld [vmem:[#allocation2 + $0x4b] sm:$0xff]  ;;  %v6103_v52 = vld [vmem:[#allocation2 + $0x3d] sm:$0xff]  ;;  %v6114_v57 = vld [vmem:[#allocation2 + $0x53] sm:$0xff] }
 0x118   : > { %v6105_v53 = vld [vmem:[#allocation2 + $0x45] sm:$0xff]  ;;  %v6107_v54 = vld [vmem:[#allocation2 + $0x4d] sm:$0xff]  ;;  %4997 = vmatmul.mubr.msk.bf16.gmra.mrb[8].mxu1 %vm642_vm2, %v694_v17  ;;  %v6118_v62 = vld [vmem:[#allocation2 + $0x55] sm:$0xff] }
 0x119   : > { %v6112_v56 = vld [vmem:[#allocation2 + $0x52] sm:$0xff]  ;;  %v6122_v63 = vld [vmem:[#allocation2 + $0x1] sm:$0xff]  ;;  %5019 = vmatmul.mubr.msk.bf16.gmra.mrb[16].mxu0 %vm642_vm2, %v678_v36  ;;  %5000 = vmatprep.mubr.msk.bf16.mxu1 %vm5770_vm3, %v7513_v14 }
 0x11a   : > { %v6116_v61 = vld [vmem:[#allocation2 + $0x54] sm:$0xff]  ;;  %v6124_v0 = vld [vmem:[#allocation2 + $0x26] sm:$0xff]  ;;  %v6137_v8 = vld [vmem:[#allocation2 + $0x3e] sm:$0xff]  ;;  %5022 = vmatprep.mubr.msk.bf16.mxu0 %vm5770_vm3, %v7513_v14 }
 0x11b   : > { %v6126_v1 = vld [vmem:[#allocation2 + $0x2e] sm:$0xff]  ;;  %v6128_v2 = vld [vmem:[#allocation2 + $0x36] sm:$0xff]  ;;  %1739 = vst.msk [vmem:[#allocation2 + $0x20] sm:$0xff] %vm642_vm2, %v7513_v14  ;;  %v6141_v9 = vld [vmem:[#allocation2 + $0x46] sm:$0xff] }
 0x11c   : > { %1740 = vst.msk [vmem:[#allocation2 + $0x28] sm:$0xff] %vm642_vm2, %v7513_v14  ;;  %1741 = vst.msk [vmem:[#allocation2 + $0x30] sm:$0xff] %vm642_vm2, %v7513_v14  ;;  %v6143_v10 = vld [vmem:[#allocation2 + $0x4e] sm:$0xff]  ;;  %v6153_v11 = vld [vmem:[#allocation2 + $0x56] sm:$0xff] }
 0x11d   : > { %7529 = vst [vmem:[#allocation11_spill] sm:$0xff] %v6143_v10  ;;  %1742 = vst.msk [vmem:[#allocation2 + $0x38] sm:$0xff] %vm642_vm2, %v7513_v14  ;;  %v6155_v17 = vld [vmem:[#allocation2] sm:$0xff]  ;;  %v679_v10 = vpack.c.bf16 %v673_v38, %v6059_v19  ;;  %v680_v19 = vpack.c.bf16 %v675_v42, %v674_v41  ;;  %v4632_v37 = vld [vmem:[%s7491_s3 + $0x14] sm:$0xf]  ;;  %v892_v38 = vpack.c.bf16 %v6017_v58, %v5972_v21 }
 0x11e   : > { %1743 = vst.msk [vmem:[#allocation2 + $0x40] sm:$0xff] %vm642_vm2, %v7513_v14  ;;  %1744 = vst.msk [vmem:[#allocation2 + $0x48] sm:$0xff] %vm642_vm2, %v7513_v14  ;;  %v6157_v36 = vld [vmem:[#allocation2 + $0x2] sm:$0xff]  ;;  %v1269_v41 = vsel %vm714_vm1, %v4632_v37, 0  ;;  %v893_v21 = vpack.c.bf16 %v6049_v12, %v6035_v3  ;;  %v1011_v58 = vpack.c.bf16 %v6061_v20, %v6049_v12  ;;  %v894_v42 = vpack.c.bf16 %v6063_v25, %v6061_v20 }
 0x11f   : > { %7530 = vst [vmem:[#allocation12_spill] sm:$0xff] %v6153_v11  ;;  %7531 = vst [vmem:[#allocation13_spill] sm:$0xff] %v6155_v17  ;;  %v895_v3 = vpack.c.bf16 %v6085_v43, %v6065_v26  ;;  %v1013_v12 = vpack.c.bf16 %v6087_v44, %v6085_v43  ;;  %v896_v20 = vpack.c.bf16 %v6089_v45, %v6087_v44  ;;  %v4644_v43 = vld [vmem:[%s7491_s3 + $0x1c] sm:$0xf] }
 0x120   : > { %7532 = vst [vmem:[#allocation14_spill] sm:$0xff] %v6157_v36  ;;  %1746 = vst.msk [vmem:[#allocation2 + $0x58] sm:$0xff] %vm642_vm2, %v7513_v14  ;;  %5001 = vmatmul.mubr.msk.bf16.gmra.mrb[12].mxu1 %vm642_vm2, %v695_v24  ;;  %v4626_v24 = vld [vmem:[%s7491_s3 + $0x10] sm:$0xf]  ;;  %v1128_v44 = vpack.c.bf16 %v6037_v4, %v6019_v59  ;;  %v1129_v59 = vpack.c.bf16 %v6067_v27, %v6051_v13  ;;  %v1130_v4 = vpack.c.bf16 %v6073_v30, %v6071_v29 }
 0x121   : > { %1745 = vst.msk [vmem:[#allocation2 + $0x50] sm:$0xff] %vm642_vm2, %v7513_v14  ;;  %2859 = vst.msk [vmem:[#allocation2] sm:$0xff] %vm642_vm2, %v7513_v14  ;;  %5023 = vmatmul.mubr.msk.bf16.gmra.mrb[20].mxu0 %vm642_vm2, %v679_v10  ;;  %5004 = vmatprep.mubr.msk.bf16.mxu1 %vm5770_vm3, %v7513_v14  ;;  %v1151_v39 = vsel %vm714_vm1, %v4626_v24, 0  ;;  %v1012_v10 = vpack.c.bf16 %v6065_v26, %v6063_v25  ;;  %v1014_v25 = vpack.c.bf16 %v6112_v56, %v6089_v45  ;;  %v4638_v26 = vld [vmem:[%s7491_s3 + $0x18] sm:$0xf] }
 0x122   : > { %5026 = vmatprep.mubr.msk.bf16.mxu0 %vm5770_vm3, %v7513_v14  ;;  %v1387_v45 = vsel %vm714_vm1, %v4638_v26, 0  ;;  %v1246_v56 = vpack.c.bf16 %v6041_v5, %v6021_v60  ;;  %v1247_v60 = vpack.c.bf16 %v6069_v28, %v6053_v15  ;;  %v1131_v13 = vpack.c.bf16 %v6093_v47, %v6091_v46 }
 0x123   : > { %v1249_v29 = vpack.c.bf16 %v6097_v49, %v6095_v48  ;;  %v1132_v24 = vpack.c.bf16 %v6114_v57, %v6099_v50  ;;  %v1250_v37 = vpack.c.bf16 %v6116_v61, %v6101_v51 }
 0x127   : > { %v6173_v36 = vld [vmem:[#allocation2 + $0x5c] sm:$0xff] }
 0x128   : > { %7533 = vst [vmem:[#allocation15_spill] sm:$0xff] %v6173_v36  ;;  %v6175_v17 = vld [vmem:[#allocation2 + $0x5d] sm:$0xff]  ;;  %5005 = vmatmul.mubr.msk.bf16.gmra.mrb[16].mxu1 %vm642_vm2, %v696_v18  ;;  %v1505_v18 = vsel %vm714_vm1, %v4644_v43, 0  ;;  %v1364_v43 = vpack.c.bf16 %v6053_v15, %v6041_v5 }
 0x129   : > { %7534 = vst [vmem:[#allocation16_spill] sm:$0xff] %v6175_v17  ;;  %v6177_v11 = vld [vmem:[#allocation2 + $0x5e] sm:$0xff]  ;;  %5027 = vmatmul.mubr.msk.bf16.gmra.mrb[24].mxu0 %vm642_vm2, %v680_v19  ;;  %5032 = vmatprep.mubr.msk.bf16.mxu1 %vm5770_vm3, %v7513_v14  ;;  %v1248_v19 = vpack.c.bf16 %v6077_v32, %v6075_v31 }
 0x12a   : > { %7535 = vst [vmem:[#allocation17_spill] sm:$0xff] %v6177_v11  ;;  %2871 = vst.msk [vmem:[#allocation2 + $0x60] sm:$0xff] %vm642_vm2, %v7513_v14  ;;  %5054 = vmatprep.mubr.msk.bf16.mxu0 %vm5770_vm3, %v7513_v14 }
 0x130   : > { %5033 = vmatmul.mubr.msk.bf16.vlgmr.msra.gmra.mrb[20].mxu1 %vm642_vm2, %v892_v38 }
 0x131   : > { %5055 = vmatmul.mubr.msk.bf16.vlgmr.msra.gmra.mrb[28].mxu0 %vm642_vm2, %v1010_v40  ;;  %5075 = vmatpush3.bf16.msra.mxu1 %v1151_v39 }
 0x132   : > { %5097 = vmatpush3.bf16.msra.mxu0 %v1269_v41  ;;  %5036 = vmatprep.mubr.msk.bf16.mxu1 %vm5770_vm3, %v7513_v14 }
 0x133   : > { %5058 = vmatprep.mubr.msk.bf16.mxu0 %vm5770_vm3, %v7513_v14  ;;  %5118 = vmatprep.subr.bf16.mxu1 %v7513_v14 }
 0x134   : > { %5140 = vmatprep.subr.bf16.mxu0 %v7513_v14 }
 0x138   : > { %5037 = vmatmul.mubr.msk.bf16.gmra.mrb[24].mxu1 %vm642_vm2, %v893_v21 }
 0x139   : > { %5059 = vmatmul.mubr.msk.bf16.gmra.mrb[32].mxu0 %vm642_vm2, %v1011_v58  ;;  %5040 = vmatprep.mubr.msk.bf16.mxu1 %vm5770_vm3, %v7513_v14  ;;  %v4650_v58 = vld [vmem:[%s7491_s3 + $0x20] sm:$0xf] }
 0x13a   : > { %5062 = vmatprep.mubr.msk.bf16.mxu0 %vm5770_vm3, %v7513_v14 }
 0x140   : > { %5041 = vmatmul.mubr.msk.bf16.gmra.mrb[28].mxu1 %vm642_vm2, %v894_v42 }
 0x141   : > { %5063 = vmatmul.mubr.msk.bf16.gmra.mrb[36].mxu0 %vm642_vm2, %v1012_v10  ;;  %5044 = vmatprep.mubr.msk.bf16.mxu1 %vm5770_vm3, %v7513_v14 }
 0x142   : > { %5066 = vmatprep.mubr.msk.bf16.mxu0 %vm5770_vm3, %v7513_v14 }
 0x148   : > { %5045 = vmatmul.mubr.msk.bf16.gmra.mrb[32].mxu1 %vm642_vm2, %v895_v3  ;;  %v4657_v3 = vld [vmem:[%s7493_s5 + $0x2] sm:$0x3] }
 0x149   : > { %5067 = vmatmul.mubr.msk.bf16.gmra.mrb[40].mxu0 %vm642_vm2, %v1013_v12  ;;  %5048 = vmatprep.mubr.msk.bf16.mxu1 %vm5770_vm3, %v7513_v14 }
 0x14a   : > { %5070 = vmatprep.mubr.msk.bf16.mxu0 %vm5770_vm3, %v7513_v14 }
 0x150   : > { %5049 = vmatmul.mubr.msk.bf16.gmra.mrb[36].mxu1 %vm642_vm2, %v896_v20 }
 0x151   : > { %5071 = vmatmul.mubr.msk.bf16.gmra.mrb[44].mxu0 %vm642_vm2, %v1014_v25  ;;  %5076 = vmatprep.mubr.msk.bf16.mxu1 %vm5770_vm3, %v7513_v14 }
 0x152   : > { %5098 = vmatprep.mubr.msk.bf16.mxu0 %vm5770_vm3, %v7513_v14 }
 0x158   : > { %5077 = vmatmul.mubr.msk.bf16.vlgmr.msra.gmra.mrb[40].mxu1 %vm642_vm2, %v1128_v44  ;;  %v1623_v44 = vsel %vm714_vm1, %v4650_v58, 0 }
 0x159   : > { %5099 = vmatmul.mubr.msk.bf16.vlgmr.msra.gmra.mrb[48].mxu0 %vm642_vm2, %v1246_v56  ;;  %5119 = vmatpush3.bf16.msra.mxu1 %v1387_v45 }
 0x15a   : > { %5141 = vmatpush3.bf16.msra.mxu0 %v1505_v18  ;;  %5080 = vmatprep.mubr.msk.bf16.mxu1 %vm5770_vm3, %v7513_v14  ;;  %v1482_v18 = vpack.c.bf16 %v6055_v16, %v6043_v6 }
 0x15b   : > { %5102 = vmatprep.mubr.msk.bf16.mxu0 %vm5770_vm3, %v7513_v14  ;;  %5162 = vmatprep.subr.bf16.mxu1 %v7513_v14 }
 0x15c   : > { %5184 = vmatprep.subr.bf16.mxu0 %v7513_v14 }
 0x160   : > { %5081 = vmatmul.mubr.msk.bf16.gmra.mrb[44].mxu1 %vm642_vm2, %v1129_v59  ;;  %v1840_v59 = vsel %vm1838_vm5, %v4657_v3, 0  ;;  %v1483_v3 = vpack.c.bf16 %v6081_v34, %v6079_v33 }
 0x161   : > { %5103 = vmatmul.mubr.msk.bf16.gmra.mrb[52].mxu0 %vm642_vm2, %v1247_v60  ;;  %5084 = vmatprep.mubr.msk.bf16.mxu1 %vm5770_vm3, %v7513_v14 }
 0x162   : > { %5106 = vmatprep.mubr.msk.bf16.mxu0 %vm5770_vm3, %v7513_v14 }
 0x168   : > { %5085 = vmatmul.mubr.msk.bf16.gmra.mrb[48].mxu1 %vm642_vm2, %v1130_v4 }
 0x169   : > { %5107 = vmatmul.mubr.msk.bf16.gmra.mrb[56].mxu0 %vm642_vm2, %v1248_v19  ;;  %5088 = vmatprep.mubr.msk.bf16.mxu1 %vm5770_vm3, %v7513_v14 }
 0x16a   : > { %5110 = vmatprep.mubr.msk.bf16.mxu0 %vm5770_vm3, %v7513_v14 }
 0x16f   : > { %v1762_v27 = vpop.permute.xlu1 %1761 }
 0x170   : > { %v1751_v30 = vpop.permute.xlu0 %1750  ;;  %5089 = vmatmul.mubr.msk.bf16.gmra.mrb[52].mxu1 %vm642_vm2, %v1131_v13  ;;  %1764 = vst.msk [vmem:[#allocation2 + $0x1f] sm:$0xff] %vm1753_vm4, %v1762_v27 }
 0x171   : > { %1754 = vst.msk [vmem:[#allocation2 + $0xb] sm:$0xff] %vm1753_vm4, %v1751_v30  ;;  %5111 = vmatmul.mubr.msk.bf16.gmra.mrb[60].mxu0 %vm642_vm2, %v1249_v29  ;;  %5092 = vmatprep.mubr.msk.bf16.mxu1 %vm5770_vm3, %v7513_v14 }
 0x172   : > { %5114 = vmatprep.mubr.msk.bf16.mxu0 %vm5770_vm3, %v7513_v14 }
 0x173   : > { %v1767_v46 = vpop.permute.xlu1 %1766 }
 0x174   : > { %v1757_v47 = vpop.permute.xlu0 %1756  ;;  %1769 = vst.msk [vmem:[#allocation2 + $0x29] sm:$0xff] %vm1753_vm4, %v1767_v46 }
 0x175   : > { %1759 = vst.msk [vmem:[#allocation2 + $0x15] sm:$0xff] %vm1753_vm4, %v1757_v47 }
 0x177   : > { %v6326_v42 = vld [vmem:[#allocation2 + $0x20] sm:$0xff] }
 0x178   : > { %v1772_v38 = vpop.permute.xlu0 %1771  ;;  %5093 = vmatmul.mubr.msk.bf16.gmra.mrb[56].mxu1 %vm642_vm2, %v1132_v24  ;;  %v6309_v39 = vld [vmem:[#allocation2 + $0x9] sm:$0xff]  ;;  %v6367_v19 = vld [vmem:[#allocation2 + $0x1d] sm:$0xff] }
 0x179   : > { %5115 = vmatmul.mubr.msk.bf16.gmra.mrb[64].mxu0 %vm642_vm2, %v1250_v37  ;;  %5120 = vmatprep.mubr.msk.bf16.mxu1 %vm5770_vm3, %v7513_v14  ;;  %1774 = vst.msk [vmem:[#allocation2 + $0x33] sm:$0xff] %vm1753_vm4, %v1772_v38  ;;  %v6312_v40 = vld [vmem:[#allocation2 + $0x8] sm:$0xff]  ;;  %7537 = vst [vmem:[#allocation19_spill] sm:$0xff] %v6367_v19  ;;  %v6369_v13 = vld [vmem:[#allocation2 + $0x1e] sm:$0xff] }
 0x17a   : > { %v1777_v41 = vpop.permute.xlu1 %1776  ;;  %5142 = vmatprep.mubr.msk.bf16.mxu0 %vm5770_vm3, %v7513_v14  ;;  %v6316_v50 = vld [vmem:[#allocation2 + $0xa] sm:$0xff]  ;;  %7538 = vst [vmem:[#allocation20_spill] sm:$0xff] %v6369_v13 }
 0x17b   : > { %v6318_v57 = vld [vmem:[#allocation2 + $0xb] sm:$0xff]  ;;  %1779 = vst.msk [vmem:[#allocation2 + $0x3d] sm:$0xff] %vm1753_vm4, %v1777_v41  ;;  %v1365_v41 = vpack.c.bf16 %v6075_v31, %v6069_v28 }
 0x17c   : > { %v6320_v21 = vld [vmem:[#allocation2 + $0xc] sm:$0xff]  ;;  %v6339_v26 = vld [vmem:[#allocation2 + $0x18] sm:$0xff]  ;;  %v6416_v31 = vld [vmem:[#allocation2 + $0x24] sm:$0xff] }
 0x17d   : > { %7536 = vst [vmem:[#allocation18_spill] sm:$0xff] %v6320_v21  ;;  %v6328_v10 = vld [vmem:[#allocation2 + $0x28] sm:$0xff]  ;;  %2860 = vst.msk [vmem:[#allocation2 + $0x8] sm:$0xff] %vm642_vm2, %v7513_v14  ;;  %v6335_v12 = vld [vmem:[#allocation2 + $0x10] sm:$0xff]  ;;  %v1782_v25 = vpop.permute.xlu0 %1781 }
 0x17e   : > { %v1787_v45 = vpop.permute.xlu1 %1786  ;;  %1784 = vst.msk [vmem:[#allocation2 + $0x47] sm:$0xff] %vm1753_vm4, %v1782_v25  ;;  %v6355_v5 = vld [vmem:[#allocation2 + $0x11] sm:$0xff]  ;;  %v6357_v15 = vld [vmem:[#allocation2 + $0x19] sm:$0xff]  ;;  %7543 = vst [vmem:[#allocation25_spill] sm:$0xff] %v6416_v31 }
 0x17f   : > { %1789 = vst.msk [vmem:[#allocation2 + $0x51] sm:$0xff] %vm1753_vm4, %v1787_v45  ;;  %v6359_v60 = vld [vmem:[#allocation2 + $0x12] sm:$0xff]  ;;  %v6361_v6 = vld [vmem:[#allocation2 + $0x1a] sm:$0xff]  ;;  %v6408_v45 = vld [vmem:[#allocation2 + $0x22] sm:$0xff] }
 0x180   : > { %5121 = vmatmul.mubr.msk.bf16.vlgmr.msra.gmra.mrb[60].mxu1 %vm642_vm2, %v1364_v43  ;;  %v6363_v16 = vld [vmem:[#allocation2 + $0x30] sm:$0xff]  ;;  %v6378_v30 = vld [vmem:[#allocation2 + $0x1b] sm:$0xff] }
 0x181   : > { %5143 = vmatmul.mubr.msk.bf16.vlgmr.msra.gmra.mrb[68].mxu0 %vm642_vm2, %v1482_v18  ;;  %5163 = vmatpush3.bf16.msra.mxu1 %v1623_v44  ;;  %v6376_v29 = vld [vmem:[#allocation2 + $0x13] sm:$0xff]  ;;  %v6383_v47 = vld [vmem:[#allocation2 + $0x1c] sm:$0xff]  ;;  %v6406_v44 = vld [vmem:[#allocation2 + $0x29] sm:$0xff] }
 0x182   : > { %5185 = vmatpush3.bf16.msra.mxu0 %v1840_v59  ;;  %5124 = vmatprep.mubr.msk.bf16.mxu1 %vm5770_vm3, %v7513_v14  ;;  %v6365_v4 = vld [vmem:[#allocation2 + $0x38] sm:$0xff]  ;;  %7540 = vst [vmem:[#allocation22_spill] sm:$0xff] %v6383_v47  ;;  %v6404_v43 = vld [vmem:[#allocation2 + $0x21] sm:$0xff]  ;;  %v6410_v18 = vld [vmem:[#allocation2 + $0x2a] sm:$0xff] }
 0x183   : > { %5146 = vmatprep.mubr.msk.bf16.mxu0 %vm5770_vm3, %v7513_v14  ;;  %5206 = vmatprep.subr.bf16.mxu1 %v7513_v14  ;;  %v6380_v46 = vld [vmem:[#allocation2 + $0x14] sm:$0xff]  ;;  %v6412_v59 = vld [vmem:[#allocation2 + $0x23] sm:$0xff]  ;;  %v6414_v28 = vld [vmem:[#allocation2 + $0x2b] sm:$0xff] }
 0x184   : > { %7539 = vst [vmem:[#allocation21_spill] sm:$0xff] %v6380_v46  ;;  %5228 = vmatprep.subr.bf16.mxu0 %v7513_v14  ;;  %v6385_v24 = vld [vmem:[#allocation2 + $0x15] sm:$0xff]  ;;  %v6418_v33 = vld [vmem:[#allocation2 + $0x2c] sm:$0xff] }
 0x185   : > { %7541 = vst [vmem:[#allocation23_spill] sm:$0xff] %v6385_v24  ;;  %v6387_v37 = vld [vmem:[#allocation2 + $0x16] sm:$0xff]  ;;  %v6389_v38 = vld [vmem:[#allocation2 + $0x40] sm:$0xff]  ;;  %v6397_v58 = vld [vmem:[#allocation2 + $0x48] sm:$0xff] }
 0x186   : > { %7542 = vst [vmem:[#allocation24_spill] sm:$0xff] %v6387_v37  ;;  %2861 = vst.msk [vmem:[#allocation2 + $0x10] sm:$0xff] %vm642_vm2, %v7513_v14  ;;  %v6423_v34 = vld [vmem:[#allocation2 + $0x31] sm:$0xff]  ;;  %v6429_v27 = vld [vmem:[#allocation2 + $0x3a] sm:$0xff] }
 0x187   : > { %2862 = vst.msk [vmem:[#allocation2 + $0x18] sm:$0xff] %vm642_vm2, %v7513_v14  ;;  %7544 = vst [vmem:[#allocation26_spill] sm:$0xff] %v6418_v33  ;;  %v6427_v25 = vld [vmem:[#allocation2 + $0x32] sm:$0xff]  ;;  %v6433_v56 = vld [vmem:[#allocation2 + $0x3b] sm:$0xff] }
 0x188   : > { %5125 = vmatmul.mubr.msk.bf16.gmra.mrb[64].mxu1 %vm642_vm2, %v1365_v41  ;;  %v6425_v41 = vld [vmem:[#allocation2 + $0x39] sm:$0xff]  ;;  %v6441_v13 = vld [vmem:[#allocation2 + $0x2d] sm:$0xff]  ;;  %v6445_v37 = vld [vmem:[#allocation2 + $0x41] sm:$0xff] }
 0x189   : > { %5147 = vmatmul.mubr.msk.bf16.gmra.mrb[72].mxu0 %vm642_vm2, %v1483_v3  ;;  %5128 = vmatprep.mubr.msk.bf16.mxu1 %vm5770_vm3, %v7513_v14  ;;  %v6431_v20 = vld [vmem:[#allocation2 + $0x33] sm:$0xff]  ;;  %v6437_v17 = vld [vmem:[#allocation2 + $0x3c] sm:$0xff]  ;;  %v6439_v3 = vld [vmem:[#allocation2 + $0x25] sm:$0xff]  ;;  %7548 = vst [vmem:[#allocation30_spill] sm:$0xff] %v6441_v13 }
 0x18a   : > { %v6435_v11 = vld [vmem:[#allocation2 + $0x34] sm:$0xff]  ;;  %7546 = vst [vmem:[#allocation28_spill] sm:$0xff] %v6437_v17  ;;  %7547 = vst [vmem:[#allocation29_spill] sm:$0xff] %v6439_v3  ;;  %5150 = vmatprep.mubr.msk.bf16.mxu0 %vm5770_vm3, %v7513_v14  ;;  %v6447_v19 = vld [vmem:[#allocation2 + $0x42] sm:$0xff] }
 0x18b   : > { %7545 = vst [vmem:[#allocation27_spill] sm:$0xff] %v6435_v11  ;;  %v6449_v24 = vld [vmem:[#allocation2 + $0x43] sm:$0xff]  ;;  %v6455_v11 = vld [vmem:[#allocation2 + $0x2e] sm:$0xff] }
 0x18c   : > { %v6451_v36 = vld [vmem:[#allocation2 + $0x44] sm:$0xff]  ;;  %7551 = vst [vmem:[#allocation33_spill] sm:$0xff] %v6455_v11  ;;  %v6457_v17 = vld [vmem:[#allocation2 + $0x35] sm:$0xff]  ;;  %v6469_v46 = vld [vmem:[#allocation2 + $0x4c] sm:$0xff] }
 0x18d   : > { %7549 = vst [vmem:[#allocation31_spill] sm:$0xff] %v6451_v36  ;;  %v6453_v33 = vld [vmem:[#allocation2 + $0x26] sm:$0xff]  ;;  %7552 = vst [vmem:[#allocation34_spill] sm:$0xff] %v6457_v17  ;;  %v6463_v31 = vld [vmem:[#allocation2 + $0x52] sm:$0xff]  ;;  %v7557_v36 = vmov 0.0  }
 0x18e   : > { %7550 = vst [vmem:[#allocation32_spill] sm:$0xff] %v6453_v33  ;;  %v6459_v3 = vld [vmem:[#allocation2 + $0x49] sm:$0xff]  ;;  %v6467_v47 = vld [vmem:[#allocation2 + $0x53] sm:$0xff]  ;;  %7555 = vst [vmem:[#allocation37_spill] sm:$0xff] %v6469_v46 }
 0x18f   : > { %v6461_v13 = vld [vmem:[#allocation2 + $0x4a] sm:$0xff]  ;;  %7554 = vst [vmem:[#allocation36_spill] sm:$0xff] %v6467_v47  ;;  %v6471_v21 = vld [vmem:[#allocation2 + $0x54] sm:$0xff]  ;;  %2863 = vst.msk [vmem:[#allocation2 + $0x20] sm:$0xff] %vm642_vm2, %v7557_v36 }
 0x190   : > { %v6465_v14 = vld [vmem:[#allocation2 + $0x4b] sm:$0xff]  ;;  %7556 = vst [vmem:[#allocation38_spill] sm:$0xff] %v6471_v21  ;;  %2864 = vst.msk [vmem:[#allocation2 + $0x28] sm:$0xff] %vm642_vm2, %v7557_v36  ;;  %v6477_v17 = vld [vmem:[#allocation2 + $0x3d] sm:$0xff] }
 0x191   : > { %7553 = vst [vmem:[#allocation35_spill] sm:$0xff] %v6465_v14  ;;  %7558 = vst [vmem:[#allocation39_spill] sm:$0xff] %v6477_v17  ;;  %v6479_v11 = vld [vmem:[#allocation2 + $0x36] sm:$0xff]  ;;  %v6481_v33 = vld [vmem:[#allocation2 + $0x3e] sm:$0xff]  ;;  %v1366_v17 = vpack.c.bf16 %v6095_v48, %v6077_v32  ;;  %v1367_v32 = vpack.c.bf16 %v6101_v51, %v6097_v49  ;;  %v1485_v48 = vpack.c.bf16 %v6107_v54, %v6105_v53 }
 0x192   : > { %7559 = vst [vmem:[#allocation40_spill] sm:$0xff] %v6479_v11  ;;  %7560 = vst [vmem:[#allocation41_spill] sm:$0xff] %v6481_v33  ;;  %v6487_v46 = vld [vmem:[#allocation2 + $0x45] sm:$0xff]  ;;  %v6489_v21 = vld [vmem:[#allocation2 + $0x4d] sm:$0xff]  ;;  %v1817_v54 = vpack.c.bf16 %v6357_v15, %v6355_v5 }
 0x193   : > { %2865 = vst.msk [vmem:[#allocation2 + $0x30] sm:$0xff] %vm642_vm2, %v7557_v36  ;;  %2866 = vst.msk [vmem:[#allocation2 + $0x38] sm:$0xff] %vm642_vm2, %v7557_v36  ;;  %v6491_v47 = vld [vmem:[#allocation2 + $0x46] sm:$0xff]  ;;  %v6493_v14 = vld [vmem:[#allocation2 + $0x4e] sm:$0xff]  ;;  %5129 = vmatmul.mubr.msk.bf16.gmra.mrb[68].mxu1 %vm642_vm2, %v1366_v17  ;;  %v1820_v17 = vpack.c.bf16 %v6459_v3, %v6445_v37 }
 0x194   : > { %7561 = vst [vmem:[#allocation42_spill] sm:$0xff] %v6493_v14  ;;  %2867 = vst.msk [vmem:[#allocation2 + $0x40] sm:$0xff] %vm642_vm2, %v7557_v36  ;;  %v6497_v11 = vld [vmem:[#allocation2 + $0x55] sm:$0xff]  ;;  %v1484_v14 = vpack.c.bf16 %v6103_v52, %v6083_v35  ;;  %5132 = vmatprep.mubr.msk.bf16.mxu1 %vm5770_vm3, %v7557_v36  ;;  %v1486_v35 = vpack.c.bf16 %v5982_v23, %v6118_v62  ;;  %v1805_v49 = vld [vmem:[%s7493_s5] sm:$0x3]  ;;  %v1600_v23 = vpack.c.bf16 %v6109_v55, %v6045_v7 }
 0x195   : > { %v6499_v33 = vld [vmem:[#allocation2 + $0x56] sm:$0xff]  ;;  %2868 = vst.msk [vmem:[#allocation2 + $0x48] sm:$0xff] %vm642_vm2, %v7557_v36  ;;  %v1931_v51 = vsel %vm1838_vm5, %v1805_v49, 0  ;;  %v1816_v52 = vpack.c.bf16 %v6309_v39, %v6122_v63  ;;  %v1601_v7 = vpack.c.bf16 %v6126_v1, %v6124_v0  ;;  %v1602_v55 = vpack.c.bf16 %v6137_v8, %v6128_v2  ;;  %v7563_v1 = vld [vmem:[#allocation12_spill] sm:$0xff]  ;;  %v4680_v39 = vld [vmem:[%s7493_s5 + $0x8] sm:$0x3] }
 0x196   : > { %2869 = vst.msk [vmem:[#allocation2 + $0x50] sm:$0xff] %vm642_vm2, %v7557_v36  ;;  %2870 = vst.msk [vmem:[#allocation2 + $0x58] sm:$0xff] %vm642_vm2, %v7557_v36  ;;  %5151 = vmatmul.mubr.msk.bf16.gmra.mrb[76].mxu0 %vm642_vm2, %v1484_v14  ;;  %v1368_v14 = vpack.c.bf16 %v5980_v22, %v6116_v61  ;;  %v4668_v22 = vld [vmem:[%s7493_s5 + $0x4] sm:$0x3]  ;;  %v1818_v61 = vpack.c.bf16 %v6406_v44, %v6404_v43  ;;  %v7562_v62 = vld [vmem:[#allocation11_spill] sm:$0xff]  ;;  %v1819_v0 = vpack.c.bf16 %v6425_v41, %v6423_v34 }
 0x197   : > { %5154 = vmatprep.mubr.msk.bf16.mxu0 %vm5770_vm3, %v7557_v36  ;;  %v2039_v53 = vsel %vm1838_vm5, %v4668_v22, 0  ;;  %v1603_v63 = vpack.c.bf16 %v7562_v62, %v6141_v9  ;;  %v7564_v2 = vld [vmem:[#allocation10_spill] sm:$0xff]  ;;  %v4674_v9 = vld [vmem:[%s7493_s5 + $0x6] sm:$0x3]  ;;  %v7565_v5 = vld [vmem:[#allocation13_spill] sm:$0xff]  ;;  %v2275_v34 = vsel %vm1838_vm5, %v4680_v39, 0  ;;  %v7567_v41 = vpack.c.bf16 %v6339_v26, %v6335_v12 }
 0x198   : > { %v1604_v8 = vpack.c.bf16 %v7564_v2, %v7563_v1  ;;  %v1800_v15 = vpack.c.bf16 %v6312_v40, %v7565_v5  ;;  %v2157_v37 = vsel %vm1838_vm5, %v4674_v9, 0  ;;  %v7566_v43 = vld [vmem:[#allocation14_spill] sm:$0xff]  ;;  %v2017_v40 = vpack.c.bf16 %v6361_v6, %v6359_v60 }
 0x199   : > { %v2016_v44 = vpack.c.bf16 %v6316_v50, %v7566_v43  ;;  %v2019_v1 = vpack.c.bf16 %v6429_v27, %v6427_v25  ;;  %v7569_v2 = vpack.c.bf16 %v6365_v4, %v6363_v16 }
 0x19b   : > { %5133 = vmatmul.mubr.msk.bf16.gmra.mrb[72].mxu1 %vm642_vm2, %v1367_v32 }
 0x19c   : > { %5136 = vmatprep.mubr.msk.bf16.mxu1 %vm5770_vm3, %v7557_v36 }
 0x19e   : > { %5155 = vmatmul.mubr.msk.bf16.gmra.mrb[80].mxu0 %vm642_vm2, %v1485_v48 }
 0x19f   : > { %5158 = vmatprep.mubr.msk.bf16.mxu0 %vm5770_vm3, %v7557_v36 }
 0x1a3   : > { %5137 = vmatmul.mubr.msk.bf16.gmra.mrb[76].mxu1 %vm642_vm2, %v1368_v14 }
 0x1a4   : > { %5164 = vmatprep.mubr.msk.bf16.mxu1 %vm5770_vm3, %v7557_v36 }
 0x1a6   : > { %5159 = vmatmul.mubr.msk.bf16.gmra.mrb[84].mxu0 %vm642_vm2, %v1486_v35 }
 0x1a7   : > { %5186 = vmatprep.mubr.msk.bf16.mxu0 %vm5770_vm3, %v7557_v36 }
 0x1ab   : > { %5165 = vmatmul.mubr.msk.bf16.vlgmr.msra.gmra.mrb[80].mxu1 %vm642_vm2, %v1600_v23 }
 0x1ac   : > { %5207 = vmatpush3.bf16.msra.mxu1 %v1931_v51  ;;  %5168 = vmatprep.mubr.msk.bf16.mxu1 %vm5770_vm3, %v7557_v36  ;;  %v2018_v51 = vpack.c.bf16 %v6410_v18, %v6408_v45 }
 0x1ad   : > { %5250 = vmatprep.subr.bf16.mxu1 %v7557_v36 }
 0x1ae   : > { %5187 = vmatmul.mubr.msk.bf16.vlgmr.msra.gmra.mrb[88].mxu0 %vm1753_vm4, %v1816_v52  ;;  %v7568_v52 = vpack.c.bf16 %v6328_v10, %v6326_v42 }
 0x1af   : > { %5229 = vmatpush3.bf16.msra.mxu0 %v2039_v53  ;;  %5190 = vmatprep.mubr.msk.bf16.mxu0 %vm5770_vm3, %v7557_v36 }
 0x1b0   : > { %5272 = vmatprep.subr.bf16.mxu0 %v7557_v36 }
 0x1b3   : > { %5169 = vmatmul.mubr.msk.bf16.gmra.mrb[84].mxu1 %vm642_vm2, %v1601_v7 }
 0x1b4   : > { %5172 = vmatprep.mubr.msk.bf16.mxu1 %vm5770_vm3, %v7557_v36 }
 0x1b6   : > { %5191 = vmatmul.mubr.msk.bf16.gmra.mrb[92].mxu0 %vm1753_vm4, %v1817_v54 }
 0x1b7   : > { %5194 = vmatprep.mubr.msk.bf16.mxu0 %vm5770_vm3, %v7557_v36 }
 0x1bb   : > { %5173 = vmatmul.mubr.msk.bf16.gmra.mrb[88].mxu1 %vm642_vm2, %v1602_v55 }
 0x1bc   : > { %5176 = vmatprep.mubr.msk.bf16.mxu1 %vm5770_vm3, %v7557_v36 }
 0x1be   : > { %5195 = vmatmul.mubr.msk.bf16.gmra.mrb[96].mxu0 %vm1753_vm4, %v1818_v61 }
 0x1bf   : > { %5198 = vmatprep.mubr.msk.bf16.mxu0 %vm5770_vm3, %v7557_v36 }
 0x1c3   : > { %5177 = vmatmul.mubr.msk.bf16.gmra.mrb[92].mxu1 %vm642_vm2, %v1603_v63 }
 0x1c4   : > { %5180 = vmatprep.mubr.msk.bf16.mxu1 %vm5770_vm3, %v7557_v36 }
 0x1c6   : > { %5199 = vmatmul.mubr.msk.bf16.gmra.mrb[100].mxu0 %vm1753_vm4, %v1819_v0 }
 0x1c7   : > { %5202 = vmatprep.mubr.msk.bf16.mxu0 %vm5770_vm3, %v7557_v36 }
 0x1cb   : > { %5181 = vmatmul.mubr.msk.bf16.gmra.mrb[96].mxu1 %vm642_vm2, %v1604_v8 }
 0x1cc   : > { %5208 = vmatprep.mubr.msk.bf16.mxu1 %vm5770_vm3, %v7557_v36 }
 0x1ce   : > { %5203 = vmatmul.mubr.msk.bf16.gmra.mrb[104].mxu0 %vm1753_vm4, %v1820_v17 }
 0x1cf   : > { %5230 = vmatprep.mubr.msk.bf16.mxu0 %vm5770_vm3, %v7557_v36 }
 0x1d3   : > { %5209 = vmatmul.mubr.msk.bf16.vlgmr.msra.gmra.mrb[100].mxu1 %vm1753_vm4, %v1800_v15 }
 0x1d4   : > { %5251 = vmatpush3.bf16.msra.mxu1 %v2157_v37  ;;  %5212 = vmatprep.mubr.msk.bf16.mxu1 %vm5770_vm3, %v7557_v36 }
 0x1d5   : > { %5294 = vmatprep.subr.bf16.mxu1 %v7557_v36 }
 0x1d6   : > { %5231 = vmatmul.mubr.msk.bf16.vlgmr.msra.gmra.mrb[108].mxu0 %vm1753_vm4, %v2016_v44  ;;  %v2020_v44 = vpack.c.bf16 %v6461_v13, %v6447_v19 }
 0x1d7   : > { %5273 = vmatpush3.bf16.msra.mxu0 %v2275_v34  ;;  %5234 = vmatprep.mubr.msk.bf16.mxu0 %vm5770_vm3, %v7557_v36  ;;  %v7570_v34 = vpack.c.bf16 %v6397_v58, %v6389_v38  ;;  %v4692_v38 = vld [vmem:[%s7493_s5 + $0xc] sm:$0x3] }
 0x1d8   : > { %5316 = vmatprep.subr.bf16.mxu0 %v7557_v36 }
 0x1db   : > { %5213 = vmatmul.mubr.msk.bf16.gmra.mrb[104].mxu1 %vm1753_vm4, %v7567_v41  ;;  %v752_v3 = vpop.f32.mrb[0].mxu1  ;;  %v4686_v41 = vld [vmem:[%s7493_s5 + $0xa] sm:$0x3] }
 0x1dc   : > { %5216 = vmatprep.mubr.msk.bf16.mxu1 %vm5770_vm3, %v7557_v36  ;;  %v843_v32 = vpop.f32.mrb[8].mxu0  ;;  %v4990_v48 = vpop.f32.mrb[1].mxu1 }
 0x1dd   : > { %v6628_v14 = vadd.f32 %v843_v32, %v752_v3  ;;  %v5012_v35 = vpop.f32.mrb[9].mxu0  ;;  %v755_v49 = vpop.f32.mrb[2].mxu1 }
 0x1de   : > { %5235 = vmatmul.mubr.msk.bf16.gmra.mrb[112].mxu0 %vm1753_vm4, %v2017_v40  ;;  %v846_v22 = vpop.f32.mrb[10].mxu0  ;;  %v4991_v23 = vpop.f32.mrb[3].mxu1 }
 0x1df   : > { %5238 = vmatprep.mubr.msk.bf16.mxu0 %vm5770_vm3, %v7557_v36  ;;  %v6630_v12 = vadd.f32 %v846_v22, %v755_v49  ;;  %v5013_v26 = vpop.f32.mrb[11].mxu0  ;;  %v2134_v23 = vpack.c.bf16 %v6359_v60, %v6316_v50 }
 0x1e0   : > { %v2393_v26 = vsel %vm1838_vm5, %v4686_v41, 0 }
 0x1e3   : > { %5217 = vmatmul.mubr.msk.bf16.gmra.mrb[108].mxu1 %vm1753_vm4, %v7568_v52  ;;  %v760_v53 = vpop.f32.mrb[4].mxu1 }
 0x1e4   : > { %5220 = vmatprep.mubr.msk.bf16.mxu1 %vm5770_vm3, %v7557_v36  ;;  %v851_v7 = vpop.f32.mrb[12].mxu0  ;;  %v4994_v54 = vpop.f32.mrb[5].mxu1 }
 0x1e5   : > { %v6643_v55 = vadd.f32 %v851_v7, %v760_v53  ;;  %v5016_v61 = vpop.f32.mrb[13].mxu0  ;;  %v763_v62 = vpop.f32.mrb[6].mxu1  ;;  %v2252_v53 = vpack.c.bf16 %v6376_v29, %v6318_v57  ;;  %v2511_v7 = vsel %vm1838_vm5, %v4692_v38, 0 }
 0x1e6   : > { %5239 = vmatmul.mubr.msk.bf16.gmra.mrb[116].mxu0 %vm1753_vm4, %v2018_v51  ;;  %v854_v63 = vpop.f32.mrb[14].mxu0  ;;  %v4995_v0 = vpop.f32.mrb[7].mxu1 }
 0x1e7   : > { %5242 = vmatprep.mubr.msk.bf16.mxu0 %vm5770_vm3, %v7557_v36  ;;  %v6645_v42 = vadd.f32 %v854_v63, %v763_v62  ;;  %v5017_v10 = vpop.f32.mrb[15].mxu0  ;;  %v2135_v0 = vpack.c.bf16 %v6408_v45, %v6361_v6 }
 0x1eb   : > { %5221 = vmatmul.mubr.msk.bf16.gmra.mrb[112].mxu1 %vm1753_vm4, %v7569_v2  ;;  %v768_v8 = vpop.f32.mrb[8].mxu1  ;;  %v2253_v2 = vpack.c.bf16 %v6412_v59, %v6378_v30 }
 0x1ec   : > { %5224 = vmatprep.mubr.msk.bf16.mxu1 %vm5770_vm3, %v7557_v36  ;;  %v859_v17 = vpop.f32.mrb[16].mxu0  ;;  %v4998_v9 = vpop.f32.mrb[9].mxu1 }
 0x1ed   : > { %v6658_v39 = vadd.f32 %v859_v17, %v768_v8  ;;  %v5020_v5 = vpop.f32.mrb[17].mxu0  ;;  %v771_v15 = vpop.f32.mrb[10].mxu1 }
 0x1ee   : > { %5243 = vmatmul.mubr.msk.bf16.gmra.mrb[120].mxu0 %vm1753_vm4, %v2019_v1  ;;  %v862_v37 = vpop.f32.mrb[18].mxu0  ;;  %v4999_v43 = vpop.f32.mrb[11].mxu1 }
 0x1ef   : > { %5246 = vmatprep.mubr.msk.bf16.mxu0 %vm5770_vm3, %v7557_v36  ;;  %v6660_v16 = vadd.f32 %v862_v37, %v771_v15  ;;  %v5021_v4 = vpop.f32.mrb[19].mxu0  ;;  %v2136_v43 = vpack.c.bf16 %v6427_v25, %v6410_v18 }
 0x1f3   : > { %5225 = vmatmul.mubr.msk.bf16.gmra.mrb[116].mxu1 %vm1753_vm4, %v7570_v34  ;;  %v776_v40 = vpop.f32.mrb[12].mxu1 }
 0x1f4   : > { %5252 = vmatprep.mubr.msk.bf16.mxu1 %vm5770_vm3, %v7557_v36  ;;  %v867_v3 = vpop.f32.mrb[20].mxu0  ;;  %v5002_v32 = vpop.f32.mrb[13].mxu1 }
 0x1f5   : > { %v6679_v58 = vadd.f32 %v867_v3, %v776_v40  ;;  %v5024_v48 = vpop.f32.mrb[21].mxu0  ;;  %v779_v35 = vpop.f32.mrb[14].mxu1  ;;  %v2137_v32 = vpack.c.bf16 %v6447_v19, %v6429_v27 }
 0x1f6   : > { %5247 = vmatmul.mubr.msk.bf16.gmra.mrb[124].mxu0 %vm1753_vm4, %v2020_v44  ;;  %v870_v49 = vpop.f32.mrb[22].mxu0  ;;  %v5003_v22 = vpop.f32.mrb[15].mxu1  ;;  %v2254_v44 = vpack.c.bf16 %v6431_v20, %v6414_v28 }
 0x1f7   : > { %5274 = vmatprep.mubr.msk.bf16.mxu0 %vm5770_vm3, %v7557_v36  ;;  %v6684_v51 = vadd.f32 %v870_v49, %v779_v35  ;;  %v5025_v52 = vpop.f32.mrb[23].mxu0  ;;  %v2255_v35 = vpack.c.bf16 %v6449_v24, %v6433_v56 }
 0x1fb   : > { %5253 = vmatmul.mubr.msk.bf16.vlgmr.msra.gmra.mrb[120].mxu1 %vm1753_vm4, %v2134_v23  ;;  %v784_v50 = vpop.f32.mrb[16].mxu1 }
 0x1fc   : > { %5295 = vmatpush3.bf16.msra.mxu1 %v2393_v26  ;;  %5256 = vmatprep.mubr.msk.bf16.mxu1 %vm5770_vm3, %v7557_v36  ;;  %v875_v60 = vpop.f32.mrb[24].mxu0  ;;  %v5006_v54 = vpop.f32.mrb[17].mxu1 }
 0x1fd   : > { %5338 = vmatprep.subr.bf16.mxu1 %v7557_v36  ;;  %v6697_v57 = vadd.f32 %v875_v60, %v784_v50  ;;  %v5028_v29 = vpop.f32.mrb[25].mxu0  ;;  %v787_v61 = vpop.f32.mrb[18].mxu1  ;;  %v7571_v50 = vld [vmem:[#allocation35_spill] sm:$0xff]  ;;  %v7572_v60 = vld [vmem:[#allocation36_spill] sm:$0xff] }
 0x1fe   : > { %5275 = vmatmul.mubr.msk.bf16.vlgmr.msra.gmra.mrb[128].mxu0 %vm1753_vm4, %v2252_v53  ;;  %v878_v62 = vpop.f32.mrb[26].mxu0  ;;  %v5007_v63 = vpop.f32.mrb[19].mxu1  ;;  %v2138_v53 = vpack.c.bf16 %v6463_v31, %v6461_v13  ;;  %v2256_v54 = vpack.c.bf16 %v7572_v60, %v7571_v50  ;;  %v4698_v13 = vld [vmem:[%s7493_s5 + $0xe] sm:$0x3]  ;;  %v7579_v60 = vld [vmem:[#allocation28_spill] sm:$0xff] }
 0x1ff   : > { %5317 = vmatpush3.bf16.msra.mxu0 %v2511_v7  ;;  %5278 = vmatprep.mubr.msk.bf16.mxu0 %vm5770_vm3, %v7557_v36  ;;  %v6701_v10 = vadd.f32 %v878_v62, %v787_v61  ;;  %v5029_v1 = vpop.f32.mrb[27].mxu0  ;;  %v4704_v62 = vld [vmem:[%s7493_s5 + $0x10] sm:$0x3] }
 0x200   : > { %5360 = vmatprep.subr.bf16.mxu0 %v7557_v36 }
 0x203   : > { %5257 = vmatmul.mubr.msk.bf16.gmra.mrb[124].mxu1 %vm1753_vm4, %v2135_v0  ;;  %v951_v8 = vpop.f32.mrb[20].mxu1 }
 0x204   : > { %5260 = vmatprep.mubr.msk.bf16.mxu1 %vm5770_vm3, %v7557_v36  ;;  %v990_v17 = vadd.f32 %v951_v8, %v6628_v14  ;;  %v1069_v6 = vpop.f32.mrb[28].mxu0  ;;  %v5034_v45 = vpop.f32.mrb[21].mxu1 }
 0x205   : > { %v5056_v9 = vpop.f32.mrb[29].mxu0  ;;  %v954_v5 = vpop.f32.mrb[22].mxu1  ;;  %v7574_v45 = vld [vmem:[#allocation21_spill] sm:$0xff] }
 0x206   : > { %5279 = vmatmul.mubr.msk.bf16.gmra.mrb[132].mxu0 %vm1753_vm4, %v2253_v2  ;;  %v6712_v15 = vadd.f32 %v1069_v6, %v990_v17  ;;  %v991_v30 = vadd.f32 %v954_v5, %v6630_v12  ;;  %v1072_v59 = vpop.f32.mrb[30].mxu0  ;;  %v5035_v37 = vpop.f32.mrb[23].mxu1  ;;  %v7573_v6 = vld [vmem:[#allocation18_spill] sm:$0xff]  ;;  %v2629_v5 = vsel %vm1838_vm5, %v4698_v13, 0 }
 0x207   : > { %5282 = vmatprep.mubr.msk.bf16.mxu0 %vm5770_vm3, %v7557_v36  ;;  %v5057_v4 = vpop.f32.mrb[31].mxu0  ;;  %v2370_v9 = vpack.c.bf16 %v7574_v45, %v7573_v6  ;;  %v2747_v37 = vsel %vm1838_vm5, %v4704_v62, 0 }
 0x208   : > { %v6719_v34 = vadd.f32 %v1072_v59, %v991_v30  ;;  %v7575_v30 = vld [vmem:[#allocation22_spill] sm:$0xff] }
 0x209   : > { %v2488_v59 = vpack.c.bf16 %v7575_v30, %v7574_v45  ;;  %v7581_v45 = vld [vmem:[#allocation37_spill] sm:$0xff] }
 0x20b   : > { %5261 = vmatmul.mubr.msk.bf16.gmra.mrb[128].mxu1 %vm1753_vm4, %v2136_v43  ;;  %v959_v14 = vpop.f32.mrb[24].mxu1 }
 0x20c   : > { %5264 = vmatprep.mubr.msk.bf16.mxu1 %vm5770_vm3, %v7557_v36  ;;  %v992_v12 = vadd.f32 %v959_v14, %v6643_v55  ;;  %v1077_v25 = vpop.f32.mrb[32].mxu0  ;;  %v5038_v18 = vpop.f32.mrb[25].mxu1 }
 0x20d   : > { %v5060_v40 = vpop.f32.mrb[33].mxu0  ;;  %v962_v41 = vpop.f32.mrb[26].mxu1 }
 0x20e   : > { %5283 = vmatmul.mubr.msk.bf16.gmra.mrb[136].mxu0 %vm1753_vm4, %v2254_v44  ;;  %v993_v20 = vadd.f32 %v962_v41, %v6645_v42  ;;  %v1080_v28 = vpop.f32.mrb[34].mxu0  ;;  %v5039_v3 = vpop.f32.mrb[27].mxu1  ;;  %v6731_v38 = vadd.f32 %v1077_v25, %v992_v12 }
 0x20f   : > { %5286 = vmatprep.mubr.msk.bf16.mxu0 %vm5770_vm3, %v7557_v36  ;;  %v5061_v48 = vpop.f32.mrb[35].mxu0 }
 0x210   : > { %v6736_v55 = vadd.f32 %v1080_v28, %v993_v20  ;;  %v7576_v28 = vld [vmem:[#allocation25_spill] sm:$0xff]  ;;  %v7577_v48 = vld [vmem:[#allocation26_spill] sm:$0xff] }
 0x211   : > { %v2371_v3 = vpack.c.bf16 %v7576_v28, %v7575_v30 }
 0x213   : > { %5265 = vmatmul.mubr.msk.bf16.gmra.mrb[132].mxu1 %vm1753_vm4, %v2137_v32  ;;  %v967_v42 = vpop.f32.mrb[28].mxu1 }
 0x214   : > { %5268 = vmatprep.mubr.msk.bf16.mxu1 %vm5770_vm3, %v7557_v36  ;;  %v994_v19 = vadd.f32 %v967_v42, %v6658_v39  ;;  %v1085_v27 = vpop.f32.mrb[36].mxu0  ;;  %v5042_v49 = vpop.f32.mrb[29].mxu1 }
 0x215   : > { %v5064_v22 = vpop.f32.mrb[37].mxu0  ;;  %v970_v23 = vpop.f32.mrb[30].mxu1 }
 0x216   : > { %5287 = vmatmul.mubr.msk.bf16.gmra.mrb[140].mxu0 %vm1753_vm4, %v2255_v35  ;;  %v6744_v56 = vadd.f32 %v1085_v27, %v994_v19  ;;  %v995_v24 = vadd.f32 %v970_v23, %v6660_v16  ;;  %v1088_v26 = vpop.f32.mrb[38].mxu0  ;;  %v5043_v52 = vpop.f32.mrb[31].mxu1  ;;  %v2489_v35 = vpack.c.bf16 %v7577_v48, %v7576_v28 }
 0x217   : > { %5290 = vmatprep.mubr.msk.bf16.mxu0 %vm5770_vm3, %v7557_v36  ;;  %v5065_v7 = vpop.f32.mrb[39].mxu0 }
 0x218   : > { %v6751_v29 = vadd.f32 %v1088_v26, %v995_v24 }
 0x21b   : > { %5269 = vmatmul.mubr.msk.bf16.gmra.mrb[136].mxu1 %vm1753_vm4, %v2138_v53  ;;  %v975_v39 = vpop.f32.mrb[32].mxu1  ;;  %v7578_v53 = vld [vmem:[#allocation27_spill] sm:$0xff] }
 0x21c   : > { %5296 = vmatprep.mubr.msk.bf16.mxu1 %vm5770_vm3, %v7557_v36  ;;  %v996_v31 = vadd.f32 %v975_v39, %v6679_v58  ;;  %v1093_v16 = vpop.f32.mrb[40].mxu0  ;;  %v5046_v61 = vpop.f32.mrb[33].mxu1  ;;  %v2372_v7 = vpack.c.bf16 %v7578_v53, %v7577_v48 }
 0x21d   : > { %v5068_v63 = vpop.f32.mrb[41].mxu0  ;;  %v978_v0 = vpop.f32.mrb[34].mxu1 }
 0x21e   : > { %5291 = vmatmul.mubr.msk.bf16.gmra.mrb[144].mxu0 %vm1753_vm4, %v2256_v54  ;;  %v6766_v1 = vadd.f32 %v1093_v16, %v996_v31  ;;  %v997_v2 = vadd.f32 %v978_v0, %v6684_v51  ;;  %v1096_v8 = vpop.f32.mrb[42].mxu0  ;;  %v5047_v17 = vpop.f32.mrb[35].mxu1  ;;  %v2490_v54 = vpack.c.bf16 %v7579_v60, %v7578_v53  ;;  %v7587_v53 = vld [vmem:[#allocation20_spill] sm:$0xff] }
 0x21f   : > { %5318 = vmatprep.mubr.msk.bf16.mxu0 %vm5770_vm3, %v7557_v36  ;;  %v5069_v58 = vpop.f32.mrb[43].mxu0 }
 0x220   : > { %v6775_v43 = vadd.f32 %v1096_v8, %v997_v2  ;;  %v7580_v8 = vld [vmem:[#allocation31_spill] sm:$0xff] }
 0x221   : > { %v2373_v17 = vpack.c.bf16 %v7580_v8, %v7579_v60 }
 0x223   : > { %5297 = vmatmul.mubr.msk.bf16.vlgmr.msra.gmra.mrb[140].mxu1 %vm1753_vm4, %v2370_v9  ;;  %v983_v51 = vpop.f32.mrb[36].mxu1  ;;  %v2491_v9 = vpack.c.bf16 %v7581_v45, %v7580_v8 }
 0x224   : > { %5339 = vmatpush3.bf16.msra.mxu1 %v2629_v5  ;;  %5300 = vmatprep.mubr.msk.bf16.mxu1 %vm5770_vm3, %v7557_v36  ;;  %v998_v4 = vadd.f32 %v983_v51, %v6697_v57  ;;  %v1101_v44 = vpop.f32.mrb[44].mxu0  ;;  %v5050_v14 = vpop.f32.mrb[37].mxu1 }
 0x225   : > { %5382 = vmatprep.subr.bf16.mxu1 %v7557_v36  ;;  %v5072_v12 = vpop.f32.mrb[45].mxu0  ;;  %v986_v25 = vpop.f32.mrb[38].mxu1 }
 0x226   : > { %5319 = vmatmul.mubr.msk.bf16.vlgmr.msra.gmra.mrb[148].mxu0 %vm1753_vm4, %v2488_v59  ;;  %v6786_v18 = vadd.f32 %v1101_v44, %v998_v4  ;;  %v999_v40 = vadd.f32 %v986_v25, %v6701_v10  ;;  %v1104_v41 = vpop.f32.mrb[46].mxu0  ;;  %v5051_v20 = vpop.f32.mrb[39].mxu1  ;;  %v7582_v12 = vld [vmem:[#allocation38_spill] sm:$0xff] }
 0x227   : > { %5361 = vmatpush3.bf16.msra.mxu0 %v2747_v37  ;;  %5322 = vmatprep.mubr.msk.bf16.mxu0 %vm5770_vm3, %v7557_v36  ;;  %v5073_v32 = vpop.f32.mrb[47].mxu0  ;;  %v2374_v25 = vpack.c.bf16 %v7582_v12, %v7581_v45 }
 0x228   : > { %5404 = vmatprep.subr.bf16.mxu0 %v7557_v36  ;;  %v6793_v57 = vadd.f32 %v1104_v41, %v999_v40  ;;  %v7583_v41 = vld [vmem:[#allocation15_spill] sm:$0xff] }
 0x229   : > { %v2492_v20 = vpack.c.bf16 %v7583_v41, %v7582_v12  ;;  %v7593_v12 = vld [vmem:[#allocation39_spill] sm:$0xff]  ;;  %v7594_v41 = vld [vmem:[#allocation40_spill] sm:$0xff] }
 0x22b   : > { %5301 = vmatmul.mubr.msk.bf16.gmra.mrb[144].mxu1 %vm1753_vm4, %v2371_v3  ;;  %v1187_v10 = vpop.f32.mrb[40].mxu1 }
 0x22c   : > { %5304 = vmatprep.mubr.msk.bf16.mxu1 %vm5770_vm3, %v7557_v36  ;;  %v1226_v42 = vadd.f32 %v1187_v10, %v6712_v15  ;;  %v1305_v19 = vpop.f32.mrb[48].mxu0  ;;  %v5078_v27 = vpop.f32.mrb[41].mxu1 }
 0x22d   : > { %v5100_v49 = vpop.f32.mrb[49].mxu0  ;;  %v1190_v22 = vpop.f32.mrb[42].mxu1 }
 0x22e   : > { %5323 = vmatmul.mubr.msk.bf16.gmra.mrb[152].mxu0 %vm1753_vm4, %v2489_v35  ;;  %v6802_v23 = vadd.f32 %v1305_v19, %v1226_v42  ;;  %v1227_v24 = vadd.f32 %v1190_v22, %v6719_v34  ;;  %v1308_v26 = vpop.f32.mrb[50].mxu0  ;;  %v5079_v52 = vpop.f32.mrb[43].mxu1  ;;  %v7584_v49 = vld [vmem:[#allocation23_spill] sm:$0xff] }
 0x22f   : > { %5326 = vmatprep.mubr.msk.bf16.mxu0 %vm5770_vm3, %v7557_v36  ;;  %v5101_v50 = vpop.f32.mrb[51].mxu0  ;;  %v7585_v22 = vld [vmem:[#allocation19_spill] sm:$0xff]  ;;  %v7586_v52 = vld [vmem:[#allocation24_spill] sm:$0xff] }
 0x230   : > { %v6809_v39 = vadd.f32 %v1308_v26, %v1227_v24  ;;  %v2606_v24 = vpack.c.bf16 %v7585_v22, %v7584_v49  ;;  %v2609_v22 = vpack.c.bf16 %v6489_v21, %v6487_v46 }
 0x233   : > { %5305 = vmatmul.mubr.msk.bf16.gmra.mrb[148].mxu1 %vm1753_vm4, %v2372_v7  ;;  %v1195_v15 = vpop.f32.mrb[44].mxu1  ;;  %v2724_v7 = vpack.c.bf16 %v7587_v53, %v7586_v52 }
 0x234   : > { %5308 = vmatprep.mubr.msk.bf16.mxu1 %vm5770_vm3, %v7557_v36  ;;  %v1228_v34 = vadd.f32 %v1195_v15, %v6731_v38  ;;  %v1313_v13 = vpop.f32.mrb[52].mxu0  ;;  %v5082_v31 = vpop.f32.mrb[45].mxu1 }
 0x235   : > { %v5104_v16 = vpop.f32.mrb[53].mxu0  ;;  %v1198_v61 = vpop.f32.mrb[46].mxu1 }
 0x236   : > { %5327 = vmatmul.mubr.msk.bf16.gmra.mrb[156].mxu0 %vm1753_vm4, %v2490_v54  ;;  %v6818_v62 = vadd.f32 %v1313_v13, %v1228_v34  ;;  %v1229_v63 = vadd.f32 %v1198_v61, %v6736_v55  ;;  %v1316_v0 = vpop.f32.mrb[54].mxu0  ;;  %v5083_v2 = vpop.f32.mrb[47].mxu1 }
 0x237   : > { %5330 = vmatprep.mubr.msk.bf16.mxu0 %vm5770_vm3, %v7557_v36  ;;  %v5105_v6 = vpop.f32.mrb[55].mxu0 }
 0x238   : > { %v6825_v5 = vadd.f32 %v1316_v0, %v1229_v63  ;;  %v7588_v63 = vld [vmem:[#allocation29_spill] sm:$0xff]  ;;  %v7589_v0 = vld [vmem:[#allocation30_spill] sm:$0xff] }
 0x239   : > { %v2607_v2 = vpack.c.bf16 %v7589_v0, %v7588_v63  ;;  %v7591_v6 = vld [vmem:[#allocation33_spill] sm:$0xff] }
 0x23b   : > { %5309 = vmatmul.mubr.msk.bf16.gmra.mrb[152].mxu1 %vm1753_vm4, %v2373_v17  ;;  %v1203_v38 = vpop.f32.mrb[48].mxu1  ;;  %v7590_v17 = vld [vmem:[#allocation32_spill] sm:$0xff] }
 0x23c   : > { %5312 = vmatprep.mubr.msk.bf16.mxu1 %vm5770_vm3, %v7557_v36  ;;  %v1230_v55 = vadd.f32 %v1203_v38, %v6744_v56  ;;  %v1321_v58 = vpop.f32.mrb[56].mxu0  ;;  %v5086_v30 = vpop.f32.mrb[49].mxu1  ;;  %v2725_v45 = vpack.c.bf16 %v7591_v6, %v7590_v17 }
 0x23d   : > { %v5108_v59 = vpop.f32.mrb[57].mxu0  ;;  %v1206_v37 = vpop.f32.mrb[50].mxu1 }
 0x23e   : > { %5331 = vmatmul.mubr.msk.bf16.gmra.mrb[160].mxu0 %vm1753_vm4, %v2491_v9  ;;  %v6834_v51 = vadd.f32 %v1321_v58, %v1230_v55  ;;  %v1231_v4 = vadd.f32 %v1206_v37, %v6751_v29  ;;  %v1324_v44 = vpop.f32.mrb[58].mxu0  ;;  %v5087_v14 = vpop.f32.mrb[51].mxu1 }
 0x23f   : > { %5334 = vmatprep.mubr.msk.bf16.mxu0 %vm5770_vm3, %v7557_v36  ;;  %v5109_v40 = vpop.f32.mrb[59].mxu0  ;;  %v7592_v14 = vld [vmem:[#allocation34_spill] sm:$0xff] }
 0x240   : > { %v6841_v28 = vadd.f32 %v1324_v44, %v1231_v4 }
 0x243   : > { %5313 = vmatmul.mubr.msk.bf16.gmra.mrb[156].mxu1 %vm1753_vm4, %v2374_v25  ;;  %v1211_v56 = vpop.f32.mrb[52].mxu1  ;;  %v2608_v25 = vpack.c.bf16 %v7593_v12, %v7592_v14 }
 0x244   : > { %5340 = vmatprep.mubr.msk.bf16.mxu1 %vm5770_vm3, %v7557_v36  ;;  %v1232_v29 = vadd.f32 %v1211_v56, %v6766_v1  ;;  %v1329_v3 = vpop.f32.mrb[60].mxu0  ;;  %v5090_v32 = vpop.f32.mrb[53].mxu1 }
 0x245   : > { %v5112_v48 = vpop.f32.mrb[61].mxu0  ;;  %v1214_v35 = vpop.f32.mrb[54].mxu1 }
 0x246   : > { %5335 = vmatmul.mubr.msk.bf16.gmra.mrb[164].mxu0 %vm1753_vm4, %v2492_v20  ;;  %v6850_v10 = vadd.f32 %v1329_v3, %v1232_v29  ;;  %v1233_v42 = vadd.f32 %v1214_v35, %v6775_v43  ;;  %v1332_v19 = vpop.f32.mrb[62].mxu0  ;;  %v5091_v27 = vpop.f32.mrb[55].mxu1  ;;  %v7595_v20 = vld [vmem:[#allocation41_spill] sm:$0xff] }
 0x247   : > { %5362 = vmatprep.mubr.msk.bf16.mxu0 %vm5770_vm3, %v7557_v36  ;;  %v5113_v26 = vpop.f32.mrb[63].mxu0  ;;  %v2726_v56 = vpack.c.bf16 %v7595_v20, %v7594_v41  ;;  %v6944_v41 = vld [vmem:[%s7492_s4] ss:$0 sm:$0xff] }
 0x248   : > { %v6857_v50 = vadd.f32 %v1332_v19, %v1233_v42  ;;  %v7596_v26 = vld [vmem:[#allocation42_spill] sm:$0xff] }
 0x249   : > { %v2727_v52 = vpack.c.bf16 %v7596_v26, %v6491_v47 }
 0x24b   : > { %5341 = vmatmul.mubr.msk.bf16.vlgmr.msra.gmra.mrb[160].mxu1 %vm1753_vm4, %v2606_v24  ;;  %v1219_v1 = vpop.f32.mrb[56].mxu1 }
 0x24c   : > { %5344 = vmatprep.mubr.msk.bf16.mxu1 %vm5770_vm3, %v7557_v36  ;;  %v1234_v43 = vadd.f32 %v1219_v1, %v6786_v18  ;;  %v1337_v60 = vpop.f32.mrb[64].mxu0  ;;  %v5094_v54 = vpop.f32.mrb[57].mxu1 }
 0x24d   : > { %v5116_v15 = vpop.f32.mrb[65].mxu0  ;;  %v1222_v34 = vpop.f32.mrb[58].mxu1 }
 0x24e   : > { %5363 = vmatmul.mubr.msk.bf16.vlgmr.msra.gmra.mrb[168].mxu0 %vm1753_vm4, %v2724_v7  ;;  %v6866_v13 = vadd.f32 %v1337_v60, %v1234_v43  ;;  %v1235_v31 = vadd.f32 %v1222_v34, %v6793_v57  ;;  %v1340_v16 = vpop.f32.mrb[66].mxu0  ;;  %v5095_v61 = vpop.f32.mrb[59].mxu1  ;;  %v7597_v15 = vld [vmem:[#allocation16_spill] sm:$0xff] }
 0x24f   : > { %5366 = vmatprep.mubr.msk.bf16.mxu0 %vm5770_vm3, %v7557_v36  ;;  %v5117_v8 = vpop.f32.mrb[67].mxu0  ;;  %v2610_v34 = vpack.c.bf16 %v7597_v15, %v6497_v11 }
 0x250   : > { %v6873_v9 = vadd.f32 %v1340_v16, %v1235_v31  ;;  %v7598_v16 = vld [vmem:[#allocation17_spill] sm:$0xff] }
 0x251   : > { %v2728_v61 = vpack.c.bf16 %v7598_v16, %v6499_v33 }
 0x253   : > { %5345 = vmatmul.mubr.msk.bf16.gmra.mrb[164].mxu1 %vm1753_vm4, %v2607_v2  ;;  %v1423_v18 = vpop.f32.mrb[60].mxu1 }
 0x254   : > { %5348 = vmatprep.mubr.msk.bf16.mxu1 %vm5770_vm3, %v7557_v36  ;;  %v1462_v57 = vadd.f32 %v1423_v18, %v6802_v23  ;;  %v1541_v38 = vpop.f32.mrb[68].mxu0  ;;  %v5122_v55 = vpop.f32.mrb[61].mxu1 }
 0x255   : > { %v5144_v58 = vpop.f32.mrb[69].mxu0  ;;  %v1426_v30 = vpop.f32.mrb[62].mxu1 }
 0x256   : > { %5367 = vmatmul.mubr.msk.bf16.gmra.mrb[172].mxu0 %vm1753_vm4, %v2725_v45  ;;  %v6882_v59 = vadd.f32 %v1541_v38, %v1462_v57  ;;  %v1463_v37 = vadd.f32 %v1426_v30, %v6809_v39  ;;  %v1544_v4 = vpop.f32.mrb[70].mxu0  ;;  %v5123_v44 = vpop.f32.mrb[63].mxu1 }
 0x257   : > { %5370 = vmatprep.mubr.msk.bf16.mxu0 %vm5770_vm3, %v7557_v36  ;;  %v5145_v40 = vpop.f32.mrb[71].mxu0 }
 0x258   : > { %v6889_v29 = vadd.f32 %v1544_v4, %v1463_v37 }
 0x25b   : > { %5349 = vmatmul.mubr.msk.bf16.gmra.mrb[168].mxu1 %vm1753_vm4, %v2608_v25  ;;  %v1431_v23 = vpop.f32.mrb[64].mxu1 }
 0x25c   : > { %5352 = vmatprep.mubr.msk.bf16.mxu1 %vm5770_vm3, %v7557_v36  ;;  %v1464_v39 = vadd.f32 %v1431_v23, %v6818_v62  ;;  %v1549_v3 = vpop.f32.mrb[72].mxu0  ;;  %v5126_v32 = vpop.f32.mrb[65].mxu1 }
 0x25d   : > { %v5148_v48 = vpop.f32.mrb[73].mxu0  ;;  %v1434_v35 = vpop.f32.mrb[66].mxu1 }
 0x25e   : > { %5371 = vmatmul.mubr.msk.bf16.gmra.mrb[176].mxu0 %vm1753_vm4, %v2726_v56  ;;  %v6898_v42 = vadd.f32 %v1549_v3, %v1464_v39  ;;  %v1465_v19 = vadd.f32 %v1434_v35, %v6825_v5  ;;  %v1552_v27 = vpop.f32.mrb[74].mxu0  ;;  %v5127_v49 = vpop.f32.mrb[67].mxu1 }
 0x25f   : > { %5374 = vmatprep.mubr.msk.bf16.mxu0 %vm5770_vm3, %v7557_v36  ;;  %v5149_v24 = vpop.f32.mrb[75].mxu0 }
 0x260   : > { %v6905_v53 = vadd.f32 %v1552_v27, %v1465_v19 }
 0x263   : > { %5353 = vmatmul.mubr.msk.bf16.gmra.mrb[172].mxu1 %vm1753_vm4, %v2609_v22 }
 0x264   : > { %5356 = vmatprep.mubr.msk.bf16.mxu1 %vm5770_vm3, %v7557_v36 }
 0x266   : > { %5375 = vmatmul.mubr.msk.bf16.gmra.mrb[180].mxu0 %vm1753_vm4, %v2727_v52  ;;  %v1439_v62 = vpop.f32.mrb[68].mxu1 }
 0x267   : > { %5378 = vmatprep.mubr.msk.bf16.mxu0 %vm5770_vm3, %v7557_v36  ;;  %v1466_v5 = vadd.f32 %v1439_v62, %v6834_v51  ;;  %v5130_v46 = vpop.f32.mrb[69].mxu1 }
 0x268   : > { %v1442_v1 = vpop.f32.mrb[70].mxu1 }
 0x269   : > { %v1557_v21 = vpop.f32.mrb[76].mxu0  ;;  %v1467_v43 = vadd.f32 %v1442_v1, %v6841_v28  ;;  %v5131_v54 = vpop.f32.mrb[71].mxu1 }
 0x26a   : > { %v5152_v7 = vpop.f32.mrb[77].mxu0  ;;  %v6914_v47 = vadd.f32 %v1557_v21, %v1466_v5 }
 0x26b   : > { %v1560_v60 = vpop.f32.mrb[78].mxu0  ;;  %5357 = vmatmul.mubr.msk.bf16.gmra.mrb[176].mxu1 %vm1753_vm4, %v2610_v34 }
 0x26c   : > { %v5153_v31 = vpop.f32.mrb[79].mxu0  ;;  %v6921_v63 = vadd.f32 %v1560_v60, %v1467_v43  ;;  %5384 = vmatprep.mubr.msk.bf16.mxu1 %vm5770_vm3, %v7557_v36  ;;  %v4711_v60 = vld [vmem:[%s7495_s7 + $0x2] sm:$0x3] }
 0x26e   : > { %5379 = vmatmul.mubr.msk.bf16.gmra.mrb[184].mxu0 %vm1753_vm4, %v2728_v61  ;;  %v1447_v51 = vpop.f32.mrb[72].mxu1 }
 0x26f   : > { %5406 = vmatprep.mubr.msk.bf16.mxu0 %vm5770_vm3, %v7557_v36  ;;  %v1468_v28 = vadd.f32 %v1447_v51, %v6850_v10  ;;  %v5134_v0 = vpop.f32.mrb[73].mxu1 }
 0x270   : > { %v1450_v8 = vpop.f32.mrb[74].mxu1 }
 0x271   : > { %v1565_v11 = vpop.f32.mrb[80].mxu0  ;;  %v1469_v17 = vadd.f32 %v1450_v8, %v6857_v50  ;;  %v5135_v45 = vpop.f32.mrb[75].mxu1 }
 0x272   : > { %v5156_v2 = vpop.f32.mrb[81].mxu0  ;;  %v6930_v33 = vadd.f32 %v1565_v11, %v1468_v28 }
 0x273   : > { %v1568_v6 = vpop.f32.mrb[82].mxu0 }
 0x274   : > { %v5157_v18 = vpop.f32.mrb[83].mxu0  ;;  %v6933_v57 = vadd.f32 %v1568_v6, %v1469_v17 }
 0x276   : > { %v1455_v38 = vpop.f32.mrb[76].mxu1 }
 0x277   : > { %v1470_v55 = vadd.f32 %v1455_v38, %v6866_v13  ;;  %v5138_v30 = vpop.f32.mrb[77].mxu1 }
 0x278   : > { %v1458_v10 = vpop.f32.mrb[78].mxu1 }
 0x279   : > { %v1573_v58 = vpop.f32.mrb[84].mxu0  ;;  %v1471_v44 = vadd.f32 %v1458_v10, %v6873_v9  ;;  %v5139_v12 = vpop.f32.mrb[79].mxu1 }
 0x27a   : > { %v5160_v37 = vpop.f32.mrb[85].mxu0  ;;  %v6936_v4 = vadd.f32 %v1573_v58, %v1470_v55 }
 0x27b   : > { %v1576_v14 = vpop.f32.mrb[86].mxu0 }
 0x27c   : > { %v5161_v25 = vpop.f32.mrb[87].mxu0  ;;  %v6939_v50 = vadd.f32 %v1576_v14, %v1471_v44 }
 0x27e   : > { %v1659_v40 = vpop.f32.mrb[80].mxu1 }
 0x27f   : > { %v1698_v13 = vadd.f32 %v1659_v40, %v6882_v59  ;;  %v5166_v56 = vpop.f32.mrb[81].mxu1 }
 0x280   : > { %v1662_v39 = vpop.f32.mrb[82].mxu1 }
 0x281   : > { %v6947_v20 = vpop.f32.mrb[88].mxu0  ;;  %v1715_v9 = vadd.f32 %v6944_v41, %v1698_v13  ;;  %v1699_v3 = vadd.f32 %v1662_v39, %v6889_v29  ;;  %v5167_v48 = vpop.f32.mrb[83].mxu1 }
 0x282   : > { %v5188_v23 = vpop.f32.mrb[89].mxu0 }
 0x283   : > { %v6951_v32 = vpop.f32.mrb[90].mxu0  ;;  %v1716_v19 = vadd.f32 %v6944_v41, %v1699_v3  ;;  %v1725_v27 = vmax.f32 %v1715_v9, 0.0 }
 0x284   : > { %v5189_v35 = vpop.f32.mrb[91].mxu0 }
 0x285   : > { %v1726_v49 = vmax.f32 %v1716_v19, 0.0 }
 0x286   : > { %v1667_v22 = vpop.f32.mrb[84].mxu1 }
 0x287   : > { %v6954_v24 = vpack.c.bf16 %v1726_v49, %v1725_v27  ;;  %v1700_v59 = vadd.f32 %v1667_v22, %v6898_v42  ;;  %v5170_v52 = vpop.f32.mrb[85].mxu1  ;;  %v2942_v42 = vsel %vm1838_vm5, %v4711_v60, 0 }
 0x288   : > { %v1670_v5 = vpop.f32.mrb[86].mxu1  ;;  %5383 = vmatpush3.bf16.msra.mxu1 %v2942_v42 }
 0x289   : > { %v6957_v26 = vpop.f32.mrb[92].mxu0  ;;  %v1717_v29 = vadd.f32 %v6944_v41, %v1700_v59  ;;  %v1701_v21 = vadd.f32 %v1670_v5, %v6905_v53  ;;  %v5171_v7 = vpop.f32.mrb[87].mxu1  ;;  %5426 = vmatprep.subr.bf16.mxu1 %v7557_v36 }
 0x28a   : > { %v5192_v62 = vpop.f32.mrb[93].mxu0 }
 0x28b   : > { %v6961_v46 = vpop.f32.mrb[94].mxu0  ;;  %v1718_v43 = vadd.f32 %v6944_v41, %v1701_v21  ;;  %v1727_v54 = vmax.f32 %v1717_v29, 0.0 }
 0x28c   : > { %v5193_v1 = vpop.f32.mrb[95].mxu0 }
 0x28d   : > { %v1728_v15 = vmax.f32 %v1718_v43, 0.0 }
 0x28e   : > { %v1675_v34 = vpop.f32.mrb[88].mxu1 }
 0x28f   : > { %v6969_v31 = vpack.c.bf16 %v1728_v15, %v1727_v54  ;;  %v1702_v53 = vadd.f32 %v1675_v34, %v6914_v47  ;;  %v5174_v61 = vpop.f32.mrb[89].mxu1 }
 0x290   : > { %v1678_v28 = vpop.f32.mrb[90].mxu1 }
 0x291   : > { %v6972_v16 = vpop.f32.mrb[96].mxu0  ;;  %v1719_v11 = vadd.f32 %v6944_v41, %v1702_v53  ;;  %v1703_v0 = vadd.f32 %v1678_v28, %v6921_v63  ;;  %v5175_v8 = vpop.f32.mrb[91].mxu1 }
 0x292   : > { %v5196_v51 = vpop.f32.mrb[97].mxu0 }
 0x293   : > { %v6976_v2 = vpop.f32.mrb[98].mxu0  ;;  %v1720_v6 = vadd.f32 %v6944_v41, %v1703_v0  ;;  %v1729_v45 = vmax.f32 %v1719_v11, 0.0 }
 0x294   : > { %v5197_v17 = vpop.f32.mrb[99].mxu0 }
 0x295   : > { %v1730_v18 = vmax.f32 %v1720_v6, 0.0 }
 0x296   : > { %v1683_v38 = vpop.f32.mrb[92].mxu1 }
 0x297   : > { %v6979_v55 = vpack.c.bf16 %v1730_v18, %v1729_v45  ;;  %v1704_v47 = vadd.f32 %v1683_v38, %v6930_v33  ;;  %v5178_v30 = vpop.f32.mrb[93].mxu1 }
 0x298   : > { %v1686_v10 = vpop.f32.mrb[94].mxu1 }
 0x299   : > { %v6982_v58 = vpop.f32.mrb[100].mxu0  ;;  %v1721_v63 = vadd.f32 %v6944_v41, %v1704_v47  ;;  %v1705_v44 = vadd.f32 %v1686_v10, %v6933_v57  ;;  %v5179_v12 = vpop.f32.mrb[95].mxu1 }
 0x29a   : > { %v5200_v37 = vpop.f32.mrb[101].mxu0 }
 0x29b   : > { %v6986_v14 = vpop.f32.mrb[102].mxu0  ;;  %v1722_v40 = vadd.f32 %v6944_v41, %v1705_v44  ;;  %v1731_v13 = vmax.f32 %v1721_v63, 0.0 }
 0x29c   : > { %v5201_v25 = vpop.f32.mrb[103].mxu0 }
 0x29d   : > { %v1732_v56 = vmax.f32 %v1722_v40, 0.0 }
 0x29e   : > { %v1691_v23 = vpop.f32.mrb[96].mxu1 }
 0x29f   : > { %v6989_v39 = vpack.c.bf16 %v1732_v56, %v1731_v13  ;;  %v1706_v33 = vadd.f32 %v1691_v23, %v6936_v4  ;;  %v5182_v3 = vpop.f32.mrb[97].mxu1 }
 0x2a0   : > { %v1694_v35 = vpop.f32.mrb[98].mxu1 }
 0x2a1   : > { %v6992_v9 = vpop.f32.mrb[104].mxu0  ;;  %v1723_v57 = vadd.f32 %v6944_v41, %v1706_v33  ;;  %v1707_v19 = vadd.f32 %v1694_v35, %v6939_v50  ;;  %v5183_v49 = vpop.f32.mrb[99].mxu1 }
 0x2a2   : > { %v5204_v48 = vpop.f32.mrb[105].mxu0 }
 0x2a3   : > { %v6996_v27 = vpop.f32.mrb[106].mxu0  ;;  %v1724_v59 = vadd.f32 %v6944_v41, %v1707_v19  ;;  %v1733_v52 = vmax.f32 %v1723_v57, 0.0 }
 0x2a4   : > { %v5205_v22 = vpop.f32.mrb[107].mxu0 }
 0x2a5   : > { %v1734_v62 = vmax.f32 %v1724_v59, 0.0 }
 0x2a6   : > { %v1967_v5 = vpop.f32.mrb[100].mxu1 }
 0x2a7   : > { %v6999_v29 = vpack.c.bf16 %v1734_v62, %v1733_v52  ;;  %v1968_v4 = vadd.f32 %v1967_v5, %v6947_v20  ;;  %v5210_v7 = vpop.f32.mrb[101].mxu1 }
 0x2a8   : > { %v1970_v43 = vpop.f32.mrb[102].mxu1 }
 0x2a9   : > { %v2075_v21 = vpop.f32.mrb[108].mxu0  ;;  %v1971_v50 = vadd.f32 %v1970_v43, %v6951_v32  ;;  %v5211_v54 = vpop.f32.mrb[103].mxu1  ;;  %v2908_v32 = vld [vmem:[%s7495_s7] sm:$0x3] }
 0x2aa   : > { %v5232_v1 = vpop.f32.mrb[109].mxu0  ;;  %v2114_v60 = vadd.f32 %v2075_v21, %v1968_v4  ;;  %v3033_v38 = vsel %vm1838_vm5, %v2908_v32, 0 }
 0x2ab   : > { %v2078_v42 = vpop.f32.mrb[110].mxu0  ;;  %5405 = vmatpush3.bf16.msra.mxu0 %v3033_v38 }
 0x2ac   : > { %v5233_v15 = vpop.f32.mrb[111].mxu0  ;;  %v2115_v34 = vadd.f32 %v2078_v42, %v1971_v50  ;;  %5448 = vmatprep.subr.bf16.mxu0 %v7557_v36 }
 0x2ae   : > { %v1975_v53 = vpop.f32.mrb[104].mxu1 }
 0x2af   : > { %v1976_v41 = vadd.f32 %v1975_v53, %v6957_v26  ;;  %v5214_v51 = vpop.f32.mrb[105].mxu1 }
 0x2b0   : > { %v1978_v11 = vpop.f32.mrb[106].mxu1 }
 0x2b1   : > { %v2083_v61 = vpop.f32.mrb[112].mxu0  ;;  %v1979_v20 = vadd.f32 %v1978_v11, %v6961_v46  ;;  %v5215_v17 = vpop.f32.mrb[107].mxu1 }
 0x2b2   : > { %v5236_v28 = vpop.f32.mrb[113].mxu0  ;;  %v2116_v0 = vadd.f32 %v2083_v61, %v1976_v41 }
 0x2b3   : > { %v2086_v8 = vpop.f32.mrb[114].mxu0 }
 0x2b4   : > { %v5237_v6 = vpop.f32.mrb[115].mxu0  ;;  %v2117_v45 = vadd.f32 %v2086_v8, %v1979_v20 }
 0x2b6   : > { %v1983_v18 = vpop.f32.mrb[108].mxu1 }
 0x2b7   : > { %v1984_v26 = vadd.f32 %v1983_v18, %v6972_v16  ;;  %v5218_v30 = vpop.f32.mrb[109].mxu1 }
 0x2b8   : > { %v1986_v10 = vpop.f32.mrb[110].mxu1 }
 0x2b9   : > { %v2091_v47 = vpop.f32.mrb[116].mxu0  ;;  %v1987_v63 = vadd.f32 %v1986_v10, %v6976_v2  ;;  %v5219_v12 = vpop.f32.mrb[111].mxu1 }
 0x2ba   : > { %v5240_v37 = vpop.f32.mrb[117].mxu0  ;;  %v2118_v46 = vadd.f32 %v2091_v47, %v1984_v26 }
 0x2bb   : > { %v2094_v44 = vpop.f32.mrb[118].mxu0 }
 0x2bc   : > { %v5241_v25 = vpop.f32.mrb[119].mxu0  ;;  %v2119_v40 = vadd.f32 %v2094_v44, %v1987_v63 }
 0x2be   : > { %v1991_v13 = vpop.f32.mrb[112].mxu1 }
 0x2bf   : > { %v1992_v56 = vadd.f32 %v1991_v13, %v6982_v58  ;;  %v5222_v33 = vpop.f32.mrb[113].mxu1 }
 0x2c0   : > { %v1994_v3 = vpop.f32.mrb[114].mxu1 }
 0x2c1   : > { %v2099_v23 = vpop.f32.mrb[120].mxu0  ;;  %v1995_v35 = vadd.f32 %v1994_v3, %v6986_v14  ;;  %v5223_v19 = vpop.f32.mrb[115].mxu1 }
 0x2c2   : > { %v5244_v16 = vpop.f32.mrb[121].mxu0  ;;  %v2120_v48 = vadd.f32 %v2099_v23, %v1992_v56 }
 0x2c3   : > { %v2102_v57 = vpop.f32.mrb[122].mxu0 }
 0x2c4   : > { %v5245_v49 = vpop.f32.mrb[123].mxu0  ;;  %v2121_v22 = vadd.f32 %v2102_v57, %v1995_v35 }
 0x2c6   : > { %v1999_v59 = vpop.f32.mrb[116].mxu1 }
 0x2c7   : > { %v2000_v2 = vadd.f32 %v1999_v59, %v6992_v9  ;;  %v5226_v62 = vpop.f32.mrb[117].mxu1 }
 0x2c8   : > { %v2002_v4 = vpop.f32.mrb[118].mxu1 }
 0x2c9   : > { %v2107_v52 = vpop.f32.mrb[124].mxu0  ;;  %v2003_v58 = vadd.f32 %v2002_v4, %v6996_v27  ;;  %v5227_v1 = vpop.f32.mrb[119].mxu1 }
 0x2ca   : > { %v5248_v5 = vpop.f32.mrb[125].mxu0  ;;  %v2122_v21 = vadd.f32 %v2107_v52, %v2000_v2 }
 0x2cb   : > { %v2110_v7 = vpop.f32.mrb[126].mxu0 }
 0x2cc   : > { %v5249_v43 = vpop.f32.mrb[127].mxu0  ;;  %v2123_v50 = vadd.f32 %v2110_v7, %v2003_v58 }
 0x2ce   : > { %v2193_v42 = vpop.f32.mrb[120].mxu1 }
 0x2cf   : > { %v2232_v14 = vadd.f32 %v2193_v42, %v2114_v60  ;;  %v5254_v15 = vpop.f32.mrb[121].mxu1 }
 0x2d0   : > { %v2196_v41 = vpop.f32.mrb[122].mxu1 }
 0x2d1   : > { %v2311_v54 = vpop.f32.mrb[128].mxu0  ;;  %v2233_v51 = vadd.f32 %v2196_v41, %v2115_v34  ;;  %v5255_v28 = vpop.f32.mrb[123].mxu1 }
 0x2d2   : > { %v5276_v53 = vpop.f32.mrb[129].mxu0  ;;  %v2350_v61 = vadd.f32 %v2311_v54, %v2232_v14 }
 0x2d3   : > { %v2314_v9 = vpop.f32.mrb[130].mxu0 }
 0x2d4   : > { %v5277_v11 = vpop.f32.mrb[131].mxu0  ;;  %v2351_v20 = vadd.f32 %v2314_v9, %v2233_v51 }
 0x2d6   : > { %v2201_v8 = vpop.f32.mrb[124].mxu1 }
 0x2d7   : > { %v2234_v17 = vadd.f32 %v2201_v8, %v2116_v0  ;;  %v5258_v27 = vpop.f32.mrb[125].mxu1 }
 0x2d8   : > { %v2204_v18 = vpop.f32.mrb[126].mxu1 }
 0x2d9   : > { %v2319_v6 = vpop.f32.mrb[132].mxu0  ;;  %v2235_v26 = vadd.f32 %v2204_v18, %v2117_v45  ;;  %v5259_v60 = vpop.f32.mrb[127].mxu1 }
 0x2da   : > { %v5280_v32 = vpop.f32.mrb[133].mxu0  ;;  %v2352_v38 = vadd.f32 %v2319_v6, %v2234_v17 }
 0x2db   : > { %v2322_v47 = vpop.f32.mrb[134].mxu0 }
 0x2dc   : > { %v5281_v30 = vpop.f32.mrb[135].mxu0  ;;  %v2353_v37 = vadd.f32 %v2322_v47, %v2235_v26 }
 0x2de   : > { %v2209_v10 = vpop.f32.mrb[128].mxu1 }
 0x2df   : > { %v2236_v63 = vadd.f32 %v2209_v10, %v2118_v46  ;;  %v5262_v34 = vpop.f32.mrb[129].mxu1 }
 0x2e0   : > { %v2212_v25 = vpop.f32.mrb[130].mxu1 }
 0x2e1   : > { %v2327_v44 = vpop.f32.mrb[136].mxu0  ;;  %v2237_v56 = vadd.f32 %v2212_v25, %v2119_v40  ;;  %v5263_v0 = vpop.f32.mrb[131].mxu1 }
 0x2e2   : > { %v5284_v12 = vpop.f32.mrb[137].mxu0  ;;  %v2354_v13 = vadd.f32 %v2327_v44, %v2236_v63 }
 0x2e3   : > { %v2330_v23 = vpop.f32.mrb[138].mxu0 }
 0x2e4   : > { %v5285_v33 = vpop.f32.mrb[139].mxu0  ;;  %v2355_v16 = vadd.f32 %v2330_v23, %v2237_v56 }
 0x2e6   : > { %v2217_v3 = vpop.f32.mrb[132].mxu1 }
 0x2e7   : > { %v2238_v35 = vadd.f32 %v2217_v3, %v2120_v48  ;;  %v5266_v45 = vpop.f32.mrb[133].mxu1 }
 0x2e8   : > { %v2220_v49 = vpop.f32.mrb[134].mxu1 }
 0x2e9   : > { %v2335_v57 = vpop.f32.mrb[140].mxu0  ;;  %v2239_v2 = vadd.f32 %v2220_v49, %v2121_v22  ;;  %v5267_v46 = vpop.f32.mrb[135].mxu1 }
 0x2ea   : > { %v5288_v19 = vpop.f32.mrb[141].mxu0  ;;  %v2356_v59 = vadd.f32 %v2335_v57, %v2238_v35 }
 0x2eb   : > { %v2338_v52 = vpop.f32.mrb[142].mxu0 }
 0x2ec   : > { %v5289_v62 = vpop.f32.mrb[143].mxu0  ;;  %v2357_v5 = vadd.f32 %v2338_v52, %v2239_v2 }
 0x2ee   : > { %v2225_v4 = vpop.f32.mrb[136].mxu1 }
 0x2ef   : > { %v2240_v58 = vadd.f32 %v2225_v4, %v2122_v21  ;;  %v5270_v40 = vpop.f32.mrb[137].mxu1 }
 0x2f0   : > { %v2228_v43 = vpop.f32.mrb[138].mxu1 }
 0x2f1   : > { %v2343_v7 = vpop.f32.mrb[144].mxu0  ;;  %v2241_v14 = vadd.f32 %v2228_v43, %v2123_v50  ;;  %v5271_v48 = vpop.f32.mrb[139].mxu1 }
 0x2f2   : > { %v5292_v1 = vpop.f32.mrb[145].mxu0  ;;  %v2358_v42 = vadd.f32 %v2343_v7, %v2240_v58 }
 0x2f3   : > { %v2346_v54 = vpop.f32.mrb[146].mxu0 }
 0x2f4   : > { %v5293_v15 = vpop.f32.mrb[147].mxu0  ;;  %v2359_v53 = vadd.f32 %v2346_v54, %v2241_v14 }
 0x2f6   : > { %v2429_v41 = vpop.f32.mrb[140].mxu1 }
 0x2f7   : > { %v2468_v51 = vadd.f32 %v2429_v41, %v2350_v61  ;;  %v5298_v22 = vpop.f32.mrb[141].mxu1 }
 0x2f8   : > { %v2432_v11 = vpop.f32.mrb[142].mxu1 }
 0x2f9   : > { %v2547_v9 = vpop.f32.mrb[148].mxu0  ;;  %v2469_v17 = vadd.f32 %v2432_v11, %v2351_v20  ;;  %v5299_v21 = vpop.f32.mrb[143].mxu1 }
 0x2fa   : > { %v5320_v28 = vpop.f32.mrb[149].mxu0  ;;  %v2586_v8 = vadd.f32 %v2547_v9, %v2468_v51 }
 0x2fb   : > { %v2550_v6 = vpop.f32.mrb[150].mxu0 }
 0x2fc   : > { %v5321_v27 = vpop.f32.mrb[151].mxu0  ;;  %v2587_v32 = vadd.f32 %v2550_v6, %v2469_v17 }
 0x2fe   : > { %v2437_v18 = vpop.f32.mrb[144].mxu1 }
 0x2ff   : > { %v2470_v26 = vadd.f32 %v2437_v18, %v2352_v38  ;;  %v5302_v50 = vpop.f32.mrb[145].mxu1 }
 0x300   : > { %v2440_v30 = vpop.f32.mrb[146].mxu1 }
 0x301   : > { %v2555_v47 = vpop.f32.mrb[152].mxu0  ;;  %v2471_v63 = vadd.f32 %v2440_v30, %v2353_v37  ;;  %v5303_v61 = vpop.f32.mrb[147].mxu1 }
 0x302   : > { %v5324_v60 = vpop.f32.mrb[153].mxu0  ;;  %v2588_v10 = vadd.f32 %v2555_v47, %v2470_v26 }
 0x303   : > { %v2558_v44 = vpop.f32.mrb[154].mxu0 }
 0x304   : > { %v5325_v34 = vpop.f32.mrb[155].mxu0  ;;  %v7016_v12 = vadd.f32 %v2558_v44, %v2471_v63 }
 0x306   : > { %v2445_v25 = vpop.f32.mrb[148].mxu1 }
 0x307   : > { %v2472_v56 = vadd.f32 %v2445_v25, %v2354_v13  ;;  %v5306_v23 = vpop.f32.mrb[149].mxu1 }
 0x308   : > { %v2448_v33 = vpop.f32.mrb[150].mxu1 }
 0x309   : > { %v2563_v20 = vpop.f32.mrb[156].mxu0  ;;  %v2473_v38 = vadd.f32 %v2448_v33, %v2355_v16  ;;  %v5307_v57 = vpop.f32.mrb[151].mxu1 }
 0x30a   : > { %v5328_v0 = vpop.f32.mrb[157].mxu0  ;;  %v7018_v3 = vadd.f32 %v2563_v20, %v2472_v56 }
 0x30b   : > { %v2566_v35 = vpop.f32.mrb[158].mxu0 }
 0x30c   : > { %v5329_v45 = vpop.f32.mrb[159].mxu0  ;;  %v7020_v19 = vadd.f32 %v2566_v35, %v2473_v38 }
 0x30e   : > { %v2453_v37 = vpop.f32.mrb[152].mxu1 }
 0x30f   : > { %v2474_v49 = vadd.f32 %v2453_v37, %v2356_v59  ;;  %v5310_v52 = vpop.f32.mrb[153].mxu1  ;;  %v4722_v37 = vld [vmem:[%s7495_s7 + $0x4] sm:$0x3] }
 0x310   : > { %v2456_v62 = vpop.f32.mrb[154].mxu1 }
 0x311   : > { %v2571_v2 = vpop.f32.mrb[160].mxu0  ;;  %v2475_v13 = vadd.f32 %v2456_v62, %v2357_v5  ;;  %v5311_v7 = vpop.f32.mrb[155].mxu1 }
 0x312   : > { %v5332_v46 = vpop.f32.mrb[161].mxu0  ;;  %v7022_v4 = vadd.f32 %v2571_v2, %v2474_v49  ;;  %v2893_v49 = vld [vmem:[#allocation2] sm:$0xff] }
 0x313   : > { %v2574_v58 = vpop.f32.mrb[162].mxu0 }
 0x314   : > { %v5333_v40 = vpop.f32.mrb[163].mxu0  ;;  %v7024_v1 = vadd.f32 %v2574_v58, %v2475_v13  ;;  %v3141_v58 = vsel %vm1838_vm5, %v4722_v37, 0 }
 0x316   : > { %v2461_v16 = vpop.f32.mrb[156].mxu1 }
 0x317   : > { %v2476_v43 = vadd.f32 %v2461_v16, %v2358_v42  ;;  %v5314_v54 = vpop.f32.mrb[157].mxu1  ;;  %v7033_v42 = vld [vmem:[%s7494_s6] ss:$0 sm:$0xff] }
 0x318   : > { %v2464_v15 = vpop.f32.mrb[158].mxu1 }
 0x319   : > { %v2579_v14 = vpop.f32.mrb[164].mxu0  ;;  %v2477_v59 = vadd.f32 %v2464_v15, %v2359_v53  ;;  %v5315_v9 = vpop.f32.mrb[159].mxu1 }
 0x31a   : > { %v5336_v48 = vpop.f32.mrb[165].mxu0  ;;  %v7026_v41 = vadd.f32 %v2579_v14, %v2476_v43 }
 0x31b   : > { %v2582_v51 = vpop.f32.mrb[166].mxu0 }
 0x31c   : > { %v5337_v22 = vpop.f32.mrb[167].mxu0  ;;  %v7028_v28 = vadd.f32 %v2582_v51, %v2477_v59 }
 0x31e   : > { %v2665_v5 = vpop.f32.mrb[160].mxu1 }
 0x31f   : > { %v2704_v11 = vadd.f32 %v2665_v5, %v2586_v8  ;;  %v5342_v6 = vpop.f32.mrb[161].mxu1 }
 0x320   : > { %v2668_v27 = vpop.f32.mrb[162].mxu1 }
 0x321   : > { %v2783_v17 = vpop.f32.mrb[168].mxu0  ;;  %v2705_v26 = vadd.f32 %v2668_v27, %v2587_v32  ;;  %v5343_v53 = vpop.f32.mrb[163].mxu1 }
 0x322   : > { %v5364_v21 = vpop.f32.mrb[169].mxu0  ;;  %v2822_v18 = vadd.f32 %v2783_v17, %v2704_v11 }
 0x323   : > { %v2786_v47 = vpop.f32.mrb[170].mxu0 }
 0x324   : > { %v5365_v50 = vpop.f32.mrb[171].mxu0  ;;  %v2839_v60 = vadd.f32 %v7033_v42, %v2822_v18  ;;  %v2823_v30 = vadd.f32 %v2786_v47, %v2705_v26 }
 0x326   : > { %v2849_v63 = vmax.f32 %v2839_v60, 0.0  ;;  %v2840_v8 = vadd.f32 %v7033_v42, %v2823_v30  ;;  %v2673_v44 = vpop.f32.mrb[164].mxu1 }
 0x327   : > { %v2706_v34 = vadd.f32 %v2673_v44, %v2588_v10  ;;  %v5346_v56 = vpop.f32.mrb[165].mxu1  ;;  %v2909_v10 = vld [vmem:[#allocation2 + $0x1] sm:$0xff] }
 0x328   : > { %2873 = vst.msk [vmem:[#allocation2 + $0xb] sm:$0xff] %vm1753_vm4, %v2849_v63  ;;  %v2850_v61 = vmax.f32 %v2840_v8, 0.0  ;;  %v2676_v23 = vpop.f32.mrb[166].mxu1 }
 0x329   : > { %v2791_v25 = vpop.f32.mrb[172].mxu0  ;;  %v2707_v0 = vadd.f32 %v2676_v23, %v7016_v12  ;;  %v5347_v38 = vpop.f32.mrb[167].mxu1  ;;  %v4728_v12 = vld [vmem:[%s7495_s7 + $0x6] sm:$0x3] }
 0x32a   : > { %v5368_v20 = vpop.f32.mrb[173].mxu0  ;;  %v2824_v32 = vadd.f32 %v2791_v25, %v2706_v34  ;;  %2875 = vst.msk [vmem:[#allocation2 + $0x13] sm:$0xfc] %vm2874_vm6, %v2850_v61  ;;  %v3259_v59 = vsel %vm1838_vm5, %v4728_v12, 0 }
 0x32b   : > { %v2794_v33 = vpop.f32.mrb[174].mxu0 }
 0x32c   : > { %v5369_v35 = vpop.f32.mrb[175].mxu0  ;;  %v2841_v57 = vadd.f32 %v7033_v42, %v2824_v32  ;;  %v2825_v45 = vadd.f32 %v2794_v33, %v2707_v0 }
 0x32e   : > { %v2851_v2 = vmax.f32 %v2841_v57, 0.0  ;;  %v2842_v52 = vadd.f32 %v7033_v42, %v2825_v45  ;;  %v2681_v46 = vpop.f32.mrb[168].mxu1 }
 0x32f   : > { %v2910_v62 = vld [vmem:[#allocation2 + $0x9] sm:$0xff]  ;;  %v2708_v40 = vadd.f32 %v2681_v46, %v7018_v3  ;;  %v5350_v43 = vpop.f32.mrb[169].mxu1 }
 0x330   : > { %v2894_v13 = vld [vmem:[#allocation2 + $0x8] sm:$0xff]  ;;  %v2852_v7 = vmax.f32 %v2842_v52, 0.0  ;;  %v2919_v14 = vpack.c.bf16 %v2910_v62, %v2909_v10  ;;  %2877 = vst.msk [vmem:[#allocation2 + $0x1b] sm:$0x3] %vm2876_vm7, %v2851_v2  ;;  %v2684_v15 = vpop.f32.mrb[170].mxu1 }
 0x331   : > { %v2799_v16 = vpop.f32.mrb[176].mxu0  ;;  %v2903_v54 = vpack.c.bf16 %v2894_v13, %v2893_v49  ;;  %2879 = vst.msk [vmem:[#allocation2 + $0x1b] sm:$0xf0] %vm2878_vm8, %v2851_v2  ;;  %v2709_v9 = vadd.f32 %v2684_v15, %v7020_v19  ;;  %v5351_v5 = vpop.f32.mrb[171].mxu1  ;;  %v2911_v21 = vld [vmem:[#allocation2 + $0x11] sm:$0xff] }
 0x332   : > { %v5372_v48 = vpop.f32.mrb[177].mxu0  ;;  %v2826_v51 = vadd.f32 %v2799_v16, %v2708_v40  ;;  %5385 = vmatmul.mubr.msk.bf16.vlgmr.msra.gmra.mrb[180].mxu1 %vm1753_vm4, %v2919_v14  ;;  %2881 = vst.msk [vmem:[#allocation2 + $0x23] sm:$0xf] %vm2880_vm9, %v2852_v7  ;;  %v2895_v26 = vld [vmem:[#allocation2 + $0x10] sm:$0xff] }
 0x333   : > { %v2802_v22 = vpop.f32.mrb[178].mxu0  ;;  %5407 = vmatmul.mubr.msk.bf16.vlgmr.msra.gmra.mrb[188].mxu0 %vm1753_vm4, %v2903_v54  ;;  %2883 = vst.msk [vmem:[#allocation2 + $0x23] sm:$0xc0] %vm2882_vm10, %v2852_v7  ;;  %5427 = vmatpush3.bf16.msra.mxu1 %v3141_v58 }
 0x334   : > { %v5373_v3 = vpop.f32.mrb[179].mxu0  ;;  %5388 = vmatprep.mubr.msk.bf16.mxu1 %vm5770_vm3, %v7557_v36  ;;  %v2843_v11 = vadd.f32 %v7033_v42, %v2826_v51  ;;  %v2827_v17 = vadd.f32 %v2802_v22, %v2709_v9  ;;  %5410 = vmatprep.mubr.msk.bf16.mxu0 %vm5770_vm3, %v7557_v36 }
 0x335   : > { %5449 = vmatpush3.bf16.msra.mxu0 %v3259_v59  ;;  %5470 = vmatprep.subr.bf16.mxu1 %v7557_v36 }
 0x336   : > { %5492 = vmatprep.subr.bf16.mxu0 %v7557_v36  ;;  %v2853_v19 = vmax.f32 %v2843_v11, 0.0  ;;  %v2844_v6 = vadd.f32 %v7033_v42, %v2827_v17  ;;  %v2689_v27 = vpop.f32.mrb[172].mxu1 }
 0x337   : > { %v2710_v50 = vadd.f32 %v2689_v27, %v7022_v4  ;;  %v5354_v30 = vpop.f32.mrb[173].mxu1  ;;  %v3227_v27 = vld [vmem:[#allocation2 + $0x12] sm:$0xff] }
 0x338   : > { %v2912_v18 = vld [vmem:[#allocation2 + $0x19] sm:$0xff]  ;;  %v2854_v53 = vmax.f32 %v2844_v6, 0.0  ;;  %2885 = vst.msk [vmem:[#allocation2 + $0x2b] sm:$0x3f] %vm2884_vm11, %v2853_v19  ;;  %v2692_v61 = vpop.f32.mrb[174].mxu1  ;;  %v3108_v6 = vld [vmem:[#allocation2 + $0x2] sm:$0xff] }
 0x339   : > { %v2896_v47 = vld [vmem:[#allocation2 + $0x18] sm:$0xff]  ;;  %v2807_v60 = vpop.f32.mrb[180].mxu0  ;;  %v2920_v63 = vpack.c.bf16 %v2912_v18, %v2911_v21  ;;  %v2711_v25 = vadd.f32 %v2692_v61, %v7024_v1  ;;  %v5355_v20 = vpop.f32.mrb[175].mxu1  ;;  %v2913_v1 = vld [vmem:[#allocation2 + $0x21] sm:$0xff]  ;;  %v3109_v21 = vld [vmem:[#allocation2 + $0xa] sm:$0xff] }
 0x33a   : > { %v2904_v8 = vpack.c.bf16 %v2896_v47, %v2895_v26  ;;  %v5376_v44 = vpop.f32.mrb[181].mxu0  ;;  %2886 = vst.msk [vmem:[#allocation2 + $0x33] sm:$0xff] %vm1753_vm4, %v2854_v53  ;;  %v2828_v34 = vadd.f32 %v2807_v60, %v2710_v50  ;;  %v2897_v57 = vld [vmem:[#allocation2 + $0x20] sm:$0xff]  ;;  %v4734_v18 = vld [vmem:[%s7495_s7 + $0x8] sm:$0x3]  ;;  %v3118_v47 = vpack.c.bf16 %v3109_v21, %v3108_v6  ;;  %v3236_v53 = vpack.c.bf16 %v3227_v27, %v3109_v21 }
 0x33b   : > { %v2810_v56 = vpop.f32.mrb[182].mxu0  ;;  %5389 = vmatmul.mubr.msk.bf16.gmra.mrb[184].mxu1 %vm1753_vm4, %v2920_v63  ;;  %v4740_v26 = vld [vmem:[%s7495_s7 + $0xa] sm:$0x3]  ;;  %v3377_v50 = vsel %vm1838_vm5, %v4734_v18, 0  ;;  %v3111_v30 = vld [vmem:[#allocation2 + $0x1a] sm:$0xff]  ;;  %v3229_v63 = vld [vmem:[#allocation2 + $0x22] sm:$0xff] }
 0x33c   : > { %5411 = vmatmul.mubr.msk.bf16.gmra.mrb[192].mxu0 %vm1753_vm4, %v2904_v8  ;;  %v5377_v4 = vpop.f32.mrb[183].mxu0  ;;  %5392 = vmatprep.mubr.msk.bf16.mxu1 %vm5770_vm3, %v7557_v36  ;;  %v2845_v23 = vadd.f32 %v7033_v42, %v2828_v34  ;;  %v2829_v32 = vadd.f32 %v2810_v56, %v2711_v25  ;;  %v3495_v60 = vsel %vm1838_vm5, %v4740_v26, 0  ;;  %v3119_v8 = vpack.c.bf16 %v3111_v30, %v3227_v27  ;;  %v3699_v21 = vld [vmem:[#allocation2 + $0x1d] sm:$0xff]  ;;  %v4758_v27 = vld [vmem:[%s7495_s7 + $0x10] sm:$0x3]  ;;  %v3698_v18 = vld [vmem:[#allocation2 + $0x15] sm:$0xff] }
 0x33d   : > { %5414 = vmatprep.mubr.msk.bf16.mxu0 %vm5770_vm3, %v7557_v36  ;;  %v3237_v44 = vpack.c.bf16 %v3229_v63, %v3111_v30 }
 0x33e   : > { %v2855_v0 = vmax.f32 %v2845_v23, 0.0  ;;  %v2846_v33 = vadd.f32 %v7033_v42, %v2829_v32  ;;  %v2697_v38 = vpop.f32.mrb[176].mxu1 }
 0x33f   : > { %v2914_v35 = vld [vmem:[#allocation2 + $0x29] sm:$0xff]  ;;  %v2712_v10 = vadd.f32 %v2697_v38, %v7026_v41  ;;  %v5358_v2 = vpop.f32.mrb[177].mxu1 }
 0x340   : > { %v2898_v45 = vld [vmem:[#allocation2 + $0x28] sm:$0xff]  ;;  %v2856_v37 = vmax.f32 %v2846_v33, 0.0  ;;  %2887 = vst.msk [vmem:[#allocation2 + $0x3b] sm:$0xfc] %vm2874_vm6, %v2855_v0  ;;  %v2921_v52 = vpack.c.bf16 %v2914_v35, %v2913_v1  ;;  %v2700_v62 = vpop.f32.mrb[178].mxu1  ;;  %v3345_v35 = vld [vmem:[#allocation2 + $0x13] sm:$0xff] }
 0x341   : > { %v2815_v49 = vpop.f32.mrb[184].mxu0  ;;  %v2905_v12 = vpack.c.bf16 %v2898_v45, %v2897_v57  ;;  %v2713_v58 = vadd.f32 %v2700_v62, %v7028_v28  ;;  %v5359_v40 = vpop.f32.mrb[179].mxu1  ;;  %v2915_v28 = vld [vmem:[#allocation2 + $0x31] sm:$0xff]  ;;  %v4746_v45 = vld [vmem:[%s7495_s7 + $0xc] sm:$0x3]  ;;  %v3347_v62 = vld [vmem:[#allocation2 + $0x23] sm:$0xff] }
 0x342   : > { %v5380_v46 = vpop.f32.mrb[185].mxu0  ;;  %2888 = vst.msk [vmem:[#allocation2 + $0x43] sm:$0x3] %vm2876_vm7, %v2856_v37  ;;  %v2830_v13 = vadd.f32 %v2815_v49, %v2712_v10  ;;  %v2899_v15 = vld [vmem:[#allocation2 + $0x30] sm:$0xff] }
 0x343   : > { %2889 = vst.msk [vmem:[#allocation2 + $0x43] sm:$0xf0] %vm2878_vm8, %v2856_v37  ;;  %v2818_v7 = vpop.f32.mrb[186].mxu0  ;;  %5393 = vmatmul.mubr.msk.bf16.gmra.mrb[188].mxu1 %vm1753_vm4, %v2921_v52  ;;  %v3113_v61 = vld [vmem:[#allocation2 + $0x2a] sm:$0xff]  ;;  %v3231_v34 = vld [vmem:[#allocation2 + $0x32] sm:$0xff] }
 0x344   : > { %5415 = vmatmul.mubr.msk.bf16.gmra.mrb[196].mxu0 %vm1753_vm4, %v2905_v12  ;;  %v5381_v41 = vpop.f32.mrb[187].mxu0  ;;  %5396 = vmatprep.mubr.msk.bf16.mxu1 %vm5770_vm3, %v7557_v36  ;;  %v2847_v16 = vadd.f32 %v7033_v42, %v2830_v13  ;;  %v2831_v43 = vadd.f32 %v2818_v7, %v2713_v58  ;;  %v3120_v25 = vpack.c.bf16 %v3113_v61, %v3229_v63  ;;  %v7146_v57 = vld [vmem:[#allocation2 + $0x14] sm:$0xff]  ;;  %v4752_v37 = vld [vmem:[%s7495_s7 + $0xe] sm:$0x3]  ;;  %v3613_v12 = vsel %vm1838_vm5, %v4746_v45, 0  ;;  %v3465_v13 = vld [vmem:[#allocation2 + $0x24] sm:$0xff] }
 0x345   : > { %5418 = vmatprep.mubr.msk.bf16.mxu0 %vm5770_vm3, %v7557_v36  ;;  %v3238_v56 = vpack.c.bf16 %v3231_v34, %v3113_v61  ;;  %v3344_v10 = vld [vmem:[#allocation2 + $0xb] sm:$0xff]  ;;  %v3731_v46 = vsel %vm1838_vm5, %v4752_v37, 0  ;;  %v3346_v58 = vld [vmem:[#allocation2 + $0x1b] sm:$0xff] }
 0x346   : > { %v2857_v14 = vmax.f32 %v2847_v16, 0.0  ;;  %v2848_v54 = vadd.f32 %v7033_v42, %v2831_v43  ;;  %v3462_v49 = vld [vmem:[#allocation2 + $0xc] sm:$0xff]  ;;  %v3354_v2 = vpack.c.bf16 %v3345_v35, %v3344_v10  ;;  %v3464_v7 = vld [vmem:[#allocation2 + $0x1c] sm:$0xff]  ;;  %v3355_v40 = vpack.c.bf16 %v3347_v62, %v3346_v58 }
 0x347   : > { %v2916_v48 = vld [vmem:[#allocation2 + $0x39] sm:$0xff]  ;;  %v3472_v52 = vpack.c.bf16 %v7146_v57, %v3462_v49  ;;  %v3473_v41 = vpack.c.bf16 %v3465_v13, %v3464_v7  ;;  %v3466_v43 = vld [vmem:[#allocation2 + $0x2c] sm:$0xff]  ;;  %v3590_v26 = vpack.c.bf16 %v3464_v7, %v7146_v57 }
 0x348   : > { %v2900_v59 = vld [vmem:[#allocation2 + $0x38] sm:$0xff]  ;;  %v2858_v51 = vmax.f32 %v2848_v54, 0.0  ;;  %2890 = vst.msk [vmem:[#allocation2 + $0x4b] sm:$0xf] %vm2880_vm9, %v2857_v14  ;;  %v2922_v9 = vpack.c.bf16 %v2916_v48, %v2915_v28  ;;  %v3348_v54 = vld [vmem:[#allocation2 + $0x2b] sm:$0xff]  ;;  %v3591_v30 = vpack.c.bf16 %v3466_v43, %v3465_v13 }
 0x349   : > { %2891 = vst.msk [vmem:[#allocation2 + $0x4b] sm:$0xc0] %vm2882_vm10, %v2857_v14  ;;  %v2906_v22 = vpack.c.bf16 %v2900_v59, %v2899_v15  ;;  %v3115_v20 = vld [vmem:[#allocation2 + $0x3a] sm:$0xff]  ;;  %v3819_v10 = vld [vmem:[#allocation2 + $0x2e] sm:$0xff]  ;;  %v3818_v49 = vld [vmem:[#allocation2 + $0x26] sm:$0xff] }
 0x34a   : > { %2892 = vst.msk [vmem:[#allocation2 + $0x53] sm:$0x3f] %vm2884_vm11, %v2858_v51  ;;  %v2917_v42 = vld [vmem:[#allocation2 + $0x41] sm:$0xff]  ;;  %v3121_v23 = vpack.c.bf16 %v3115_v20, %v3231_v34  ;;  %v3349_v16 = vld [vmem:[#allocation2 + $0x33] sm:$0xff] }
 0x34b   : > { %5397 = vmatmul.mubr.msk.bf16.gmra.mrb[192].mxu1 %vm1753_vm4, %v2922_v9  ;;  %v2901_v3 = vld [vmem:[#allocation2 + $0x40] sm:$0xff]  ;;  %v3467_v14 = vld [vmem:[#allocation2 + $0x34] sm:$0xff]  ;;  %v3356_v28 = vpack.c.bf16 %v3349_v16, %v3348_v54 }
 0x34c   : > { %5419 = vmatmul.mubr.msk.bf16.gmra.mrb[200].mxu0 %vm1753_vm4, %v2906_v22  ;;  %5400 = vmatprep.mubr.msk.bf16.mxu1 %vm5770_vm3, %v7557_v36  ;;  %v3233_v4 = vld [vmem:[#allocation2 + $0x42] sm:$0xff]  ;;  %v3474_v48 = vpack.c.bf16 %v3467_v14, %v3466_v43  ;;  %v3816_v57 = vld [vmem:[#allocation2 + $0x16] sm:$0xff] }
 0x34d   : > { %5422 = vmatprep.mubr.msk.bf16.mxu0 %vm5770_vm3, %v7557_v36  ;;  %v3239_v32 = vpack.c.bf16 %v3233_v4, %v3115_v20  ;;  %v3351_v15 = vld [vmem:[#allocation2 + $0x43] sm:$0xff]  ;;  %v3350_v51 = vld [vmem:[#allocation2 + $0x3b] sm:$0xff] }
 0x34e   : > { %v3468_v9 = vld [vmem:[#allocation2 + $0x3c] sm:$0xff]  ;;  %v3357_v22 = vpack.c.bf16 %v3351_v15, %v3350_v51 }
 0x34f   : > { %v2918_v5 = vld [vmem:[#allocation2 + $0x49] sm:$0xff]  ;;  %v3592_v61 = vpack.c.bf16 %v3468_v9, %v3467_v14  ;;  %v3966_v35 = vld [vmem:[%s7497_s9] sm:$0xf] }
 0x350   : > { %v2902_v11 = vld [vmem:[#allocation2 + $0x48] sm:$0xff]  ;;  %v2923_v17 = vpack.c.bf16 %v2918_v5, %v2917_v42  ;;  %v4080_v37 = vsel %vm714_vm1, %v3966_v35, 0 }
 0x351   : > { %v2907_v19 = vpack.c.bf16 %v2902_v11, %v2901_v3  ;;  %v3117_v0 = vld [vmem:[#allocation2 + $0x4a] sm:$0xff]  ;;  %v3235_v33 = vld [vmem:[#allocation2 + $0x52] sm:$0xff] }
 0x352   : > { %v3122_v1 = vpack.c.bf16 %v3117_v0, %v3233_v4  ;;  %v3240_v38 = vpack.c.bf16 %v3235_v33, %v3117_v0  ;;  %v3469_v59 = vld [vmem:[#allocation2 + $0x44] sm:$0xff]  ;;  %v3353_v5 = vld [vmem:[#allocation2 + $0x53] sm:$0xff] }
 0x353   : > { %5401 = vmatmul.mubr.msk.bf16.gmra.mrb[196].mxu1 %vm1753_vm4, %v2923_v17  ;;  %v3475_v42 = vpack.c.bf16 %v3469_v59, %v3468_v9  ;;  %v3470_v3 = vld [vmem:[#allocation2 + $0x4c] sm:$0xff]  ;;  %v3471_v11 = vld [vmem:[#allocation2 + $0x54] sm:$0xff]  ;;  %v3707_v0 = vld [vmem:[#allocation2 + $0x5d] sm:$0xff] }
 0x354   : > { %5423 = vmatmul.mubr.msk.bf16.gmra.mrb[204].mxu0 %vm1753_vm4, %v2907_v19  ;;  %5428 = vmatprep.mubr.msk.bf16.mxu1 %vm5770_vm3, %v7557_v36  ;;  %v3352_v17 = vld [vmem:[#allocation2 + $0x4b] sm:$0xff]  ;;  %v3476_v6 = vpack.c.bf16 %v3471_v11, %v3470_v3  ;;  %v3593_v20 = vpack.c.bf16 %v3470_v3, %v3469_v59  ;;  %v3824_v7 = vld [vmem:[#allocation2 + $0x56] sm:$0xff] }
 0x355   : > { %5450 = vmatprep.mubr.msk.bf16.mxu0 %vm5770_vm3, %v7557_v36  ;;  %v3358_v19 = vpack.c.bf16 %v3353_v5, %v3352_v17  ;;  %v3823_v62 = vld [vmem:[#allocation2 + $0x4e] sm:$0xff]  ;;  %v3822_v13 = vld [vmem:[#allocation2 + $0x46] sm:$0xff] }
 0x356   : > { %v3829_v58 = vpack.c.bf16 %v3823_v62, %v3822_v13 }
 0x35b   : > { %5429 = vmatmul.mubr.msk.bf16.vlgmr.msra.gmra.mrb[200].mxu1 %vm1753_vm4, %v3118_v47  ;;  %v3708_v47 = vpack.c.bf16 %v3699_v21, %v3698_v18 }
 0x35c   : > { %5451 = vmatmul.mubr.msk.bf16.vlgmr.msra.gmra.mrb[208].mxu0 %vm1753_vm4, %v3236_v53  ;;  %5471 = vmatpush3.bf16.msra.mxu1 %v3377_v50  ;;  %v3849_v53 = vsel %vm1838_vm5, %v4758_v27, 0  ;;  %v3701_v50 = vld [vmem:[#allocation2 + $0x2d] sm:$0xff] }
 0x35d   : > { %5432 = vmatprep.mubr.msk.bf16.mxu1 %vm5770_vm3, %v7557_v36  ;;  %5454 = vmatprep.mubr.msk.bf16.mxu0 %vm5770_vm3, %v7557_v36 }
 0x35e   : > { %5493 = vmatpush3.bf16.msra.mxu0 %v3495_v60  ;;  %5514 = vmatprep.subr.bf16.mxu1 %v7557_v36  ;;  %v3700_v60 = vld [vmem:[#allocation2 + $0x25] sm:$0xff] }
 0x35f   : > { %5536 = vmatprep.subr.bf16.mxu0 %v7557_v36  ;;  %v3709_v63 = vpack.c.bf16 %v3701_v50, %v3700_v60 }
 0x363   : > { %5433 = vmatmul.mubr.msk.bf16.gmra.mrb[204].mxu1 %vm1753_vm4, %v3119_v8  ;;  %v3703_v8 = vld [vmem:[#allocation2 + $0x3d] sm:$0xff] }
 0x364   : > { %5455 = vmatmul.mubr.msk.bf16.gmra.mrb[212].mxu0 %vm1753_vm4, %v3237_v44  ;;  %5436 = vmatprep.mubr.msk.bf16.mxu1 %vm5770_vm3, %v7557_v36  ;;  %v3702_v44 = vld [vmem:[#allocation2 + $0x35] sm:$0xff] }
 0x365   : > { %5458 = vmatprep.mubr.msk.bf16.mxu0 %vm5770_vm3, %v7557_v36  ;;  %v3710_v34 = vpack.c.bf16 %v3703_v8, %v3702_v44 }
 0x36b   : > { %5437 = vmatmul.mubr.msk.bf16.gmra.mrb[208].mxu1 %vm1753_vm4, %v3120_v25  ;;  %v3705_v25 = vld [vmem:[#allocation2 + $0x4d] sm:$0xff] }
 0x36c   : > { %5459 = vmatmul.mubr.msk.bf16.gmra.mrb[216].mxu0 %vm1753_vm4, %v3238_v56  ;;  %5440 = vmatprep.mubr.msk.bf16.mxu1 %vm5770_vm3, %v7557_v36  ;;  %v3704_v56 = vld [vmem:[#allocation2 + $0x45] sm:$0xff] }
 0x36d   : > { %5462 = vmatprep.mubr.msk.bf16.mxu0 %vm5770_vm3, %v7557_v36  ;;  %v3711_v4 = vpack.c.bf16 %v3705_v25, %v3704_v56 }
 0x373   : > { %5441 = vmatmul.mubr.msk.bf16.gmra.mrb[212].mxu1 %vm1753_vm4, %v3121_v23  ;;  %v3589_v23 = vld [vmem:[#allocation2 + $0x5c] sm:$0xff] }
 0x374   : > { %5463 = vmatmul.mubr.msk.bf16.gmra.mrb[220].mxu0 %vm1753_vm4, %v3239_v32  ;;  %5444 = vmatprep.mubr.msk.bf16.mxu1 %vm5770_vm3, %v7557_v36  ;;  %v3706_v32 = vld [vmem:[#allocation2 + $0x55] sm:$0xff]  ;;  %v3594_v33 = vpack.c.bf16 %v3589_v23, %v3471_v11 }
 0x375   : > { %5466 = vmatprep.mubr.msk.bf16.mxu0 %vm5770_vm3, %v7557_v36 }
 0x37b   : > { %5445 = vmatmul.mubr.msk.bf16.gmra.mrb[216].mxu1 %vm1753_vm4, %v3122_v1  ;;  %v3712_v1 = vpack.c.bf16 %v3707_v0, %v3706_v32 }
 0x37c   : > { %5467 = vmatmul.mubr.msk.bf16.gmra.mrb[224].mxu0 %vm1753_vm4, %v3240_v38  ;;  %5472 = vmatprep.mubr.msk.bf16.mxu1 %vm5770_vm3, %v7557_v36  ;;  %v3817_v38 = vld [vmem:[#allocation2 + $0x1e] sm:$0xff] }
 0x37d   : > { %5494 = vmatprep.mubr.msk.bf16.mxu0 %vm5770_vm3, %v7557_v36  ;;  %v3826_v45 = vpack.c.bf16 %v3817_v38, %v3816_v57 }
 0x383   : > { %5473 = vmatmul.mubr.msk.bf16.vlgmr.msra.gmra.mrb[220].mxu1 %vm1753_vm4, %v3354_v2  ;;  %v3827_v2 = vpack.c.bf16 %v3819_v10, %v3818_v49 }
 0x384   : > { %5495 = vmatmul.mubr.msk.bf16.vlgmr.msra.gmra.mrb[228].mxu0 %vm1753_vm4, %v3472_v52  ;;  %5515 = vmatpush3.bf16.msra.mxu1 %v3613_v12  ;;  %v3821_v52 = vld [vmem:[#allocation2 + $0x3e] sm:$0xff]  ;;  %v3820_v12 = vld [vmem:[#allocation2 + $0x36] sm:$0xff] }
 0x385   : > { %5476 = vmatprep.mubr.msk.bf16.mxu1 %vm5770_vm3, %v7557_v36  ;;  %5498 = vmatprep.mubr.msk.bf16.mxu0 %vm5770_vm3, %v7557_v36 }
 0x386   : > { %5537 = vmatpush3.bf16.msra.mxu0 %v3731_v46  ;;  %5558 = vmatprep.subr.bf16.mxu1 %v7557_v36  ;;  %v3828_v46 = vpack.c.bf16 %v3821_v52, %v3820_v12 }
 0x387   : > { %5580 = vmatprep.subr.bf16.mxu0 %v7557_v36 }
 0x38b   : > { %5477 = vmatmul.mubr.msk.bf16.gmra.mrb[224].mxu1 %vm1753_vm4, %v3355_v40  ;;  %v3825_v40 = vld [vmem:[#allocation2 + $0x5e] sm:$0xff] }
 0x38c   : > { %5499 = vmatmul.mubr.msk.bf16.gmra.mrb[232].mxu0 %vm1753_vm4, %v3473_v41  ;;  %5480 = vmatprep.mubr.msk.bf16.mxu1 %vm5770_vm3, %v7557_v36  ;;  %v3830_v41 = vpack.c.bf16 %v3825_v40, %v3824_v7 }
 0x38d   : > { %5502 = vmatprep.mubr.msk.bf16.mxu0 %vm5770_vm3, %v7557_v36 }
 0x393   : > { %5481 = vmatmul.mubr.msk.bf16.gmra.mrb[228].mxu1 %vm1753_vm4, %v3356_v28 }
 0x394   : > { %5503 = vmatmul.mubr.msk.bf16.gmra.mrb[236].mxu0 %vm1753_vm4, %v3474_v48  ;;  %5484 = vmatprep.mubr.msk.bf16.mxu1 %vm5770_vm3, %v7557_v36 }
 0x395   : > { %5506 = vmatprep.mubr.msk.bf16.mxu0 %vm5770_vm3, %v7557_v36 }
 0x39b   : > { %5485 = vmatmul.mubr.msk.bf16.gmra.mrb[232].mxu1 %vm1753_vm4, %v3357_v22 }
 0x39c   : > { %5507 = vmatmul.mubr.msk.bf16.gmra.mrb[240].mxu0 %vm1753_vm4, %v3475_v42  ;;  %5488 = vmatprep.mubr.msk.bf16.mxu1 %vm5770_vm3, %v7557_v36 }
 0x39d   : > { %5510 = vmatprep.mubr.msk.bf16.mxu0 %vm5770_vm3, %v7557_v36 }
 0x3a3   : > { %5489 = vmatmul.mubr.msk.bf16.gmra.mrb[236].mxu1 %vm1753_vm4, %v3358_v19 }
 0x3a4   : > { %5511 = vmatmul.mubr.msk.bf16.gmra.mrb[244].mxu0 %vm1753_vm4, %v3476_v6  ;;  %5516 = vmatprep.mubr.msk.bf16.mxu1 %vm5770_vm3, %v7557_v36 }
 0x3a5   : > { %5538 = vmatprep.mubr.msk.bf16.mxu0 %vm5770_vm3, %v7557_v36 }
 0x3ab   : > { %5517 = vmatmul.mubr.msk.bf16.vlgmr.msra.gmra.mrb[240].mxu1 %vm1753_vm4, %v3590_v26 }
 0x3ac   : > { %5539 = vmatmul.mubr.msk.bf16.vlgmr.msra.gmra.mrb[248].mxu0 %vm1753_vm4, %v3708_v47  ;;  %5559 = vmatpush3.bf16.msra.mxu1 %v3849_v53 }
 0x3ad   : > { %5520 = vmatprep.mubr.msk.bf16.mxu1 %vm5770_vm3, %v7557_v36  ;;  %5542 = vmatprep.mubr.msk.bf16.mxu0 %vm5770_vm3, %v7557_v36 }
 0x3ae   : > { %5602 = vmatprep.subr.bf16.mxu1 %v7557_v36 }
 0x3b3   : > { %5521 = vmatmul.mubr.msk.bf16.gmra.mrb[244].mxu1 %vm1753_vm4, %v3591_v30 }
 0x3b4   : > { %5543 = vmatmul.mubr.msk.bf16.gmra.mrb[252].mxu0 %vm1753_vm4, %v3709_v63  ;;  %5524 = vmatprep.mubr.msk.bf16.mxu1 %vm5770_vm3, %v7557_v36 }
 0x3b5   : > { %5546 = vmatprep.mubr.msk.bf16.mxu0 %vm5770_vm3, %v7557_v36 }
 0x3bb   : > { %5525 = vmatmul.mubr.msk.bf16.gmra.mrb[248].mxu1 %vm1753_vm4, %v3592_v61 }
 0x3bc   : > { %5547 = vmatmul.mubr.msk.bf16.gmra.mrb[0].mxu0 %vm1753_vm4, %v3710_v34  ;;  %5528 = vmatprep.mubr.msk.bf16.mxu1 %vm5770_vm3, %v7557_v36 }
 0x3bd   : > { %5550 = vmatprep.mubr.msk.bf16.mxu0 %vm5770_vm3, %v7557_v36 }
 0x3c3   : > { %5529 = vmatmul.mubr.msk.bf16.gmra.mrb[252].mxu1 %vm1753_vm4, %v3593_v20 }
 0x3c4   : > { %5551 = vmatmul.mubr.msk.bf16.gmra.mrb[4].mxu0 %vm1753_vm4, %v3711_v4  ;;  %5532 = vmatprep.mubr.msk.bf16.mxu1 %vm5770_vm3, %v7557_v36 }
 0x3c5   : > { %5554 = vmatprep.mubr.msk.bf16.mxu0 %vm5770_vm3, %v7557_v36 }
 0x3cb   : > { %5533 = vmatmul.mubr.msk.bf16.gmra.mrb[0].mxu1 %vm1753_vm4, %v3594_v33 }
 0x3cc   : > { %5555 = vmatmul.mubr.msk.bf16.gmra.mrb[8].mxu0 %vm1753_vm4, %v3712_v1  ;;  %5560 = vmatprep.mubr.msk.bf16.mxu1 %vm5770_vm3, %v7557_v36 }
 0x3cd   : > { %5582 = vmatprep.mubr.msk.bf16.mxu0 %vm5770_vm3, %v7557_v36 }
 0x3d3   : > { %5561 = vmatmul.mubr.msk.bf16.vlgmr.msra.gmra.mrb[4].mxu1 %vm1753_vm4, %v3826_v45 }
 0x3d4   : > { %5564 = vmatprep.mubr.msk.bf16.mxu1 %vm5770_vm3, %v7557_v36  ;;  %5603 = vmatpush3.bf16.msra.mxu1 %v4080_v37 }
 0x3db   : > { %5565 = vmatmul.mubr.msk.bf16.gmra.mrb[8].mxu1 %vm1753_vm4, %v3827_v2 }
 0x3dc   : > { %5568 = vmatprep.mubr.msk.bf16.mxu1 %vm5770_vm3, %v7557_v36 }
 0x3e3   : > { %5569 = vmatmul.mubr.msk.bf16.gmra.mrb[12].mxu1 %vm1753_vm4, %v3828_v46 }
 0x3e4   : > { %5572 = vmatprep.mubr.msk.bf16.mxu1 %vm5770_vm3, %v7557_v36 }
 0x3eb   : > { %5573 = vmatmul.mubr.msk.bf16.gmra.mrb[16].mxu1 %vm1753_vm4, %v3829_v58 }
 0x3ec   : > { %5576 = vmatprep.mubr.msk.bf16.mxu1 %vm5770_vm3, %v7557_v36 }
 0x3f3   : > { %5577 = vmatmul.mubr.msk.bf16.gmra.mrb[20].mxu1 %vm1753_vm4, %v3830_v41 }
 0x3f4   : > { %5604 = vmatprep.mubr.msk.bf16.mxu1 %vm5770_vm3, %v7557_v36 }
 0x3fb   : > { %5605 = vmatmul.mubr.msk.bf16.vlgmr.msra.gmra.mrb[24].mxu1 %vm642_vm2, %v6954_v24  ;;  %v3972_v24 = vld [vmem:[%s7498_s10] sm:$0x3] }
 0x3fc   : > { %5608 = vmatprep.mubr.msk.bf16.mxu1 %vm5770_vm3, %v7557_v36 }
 0x403   : > { %5609 = vmatmul.mubr.msk.bf16.gmra.mrb[28].mxu1 %vm642_vm2, %v6969_v31  ;;  %v3989_v31 = vsel %vm1838_vm5, %v3972_v24, 0 }
 0x404   : > { %5612 = vmatprep.mubr.msk.bf16.mxu1 %vm5770_vm3, %v7557_v36  ;;  %5581 = vmatpush3.bf16.msra.mxu0 %v3989_v31 }
 0x405   : > { %v2978_v16 = vpop.f32.mrb[180].mxu1 }
 0x406   : > { %v3069_v43 = vpop.f32.mrb[188].mxu0  ;;  %v5386_v54 = vpop.f32.mrb[181].mxu1 }
 0x407   : > { %v3070_v14 = vadd.f32 %v3069_v43, %v2978_v16  ;;  %v5408_v28 = vpop.f32.mrb[189].mxu0  ;;  %v2981_v48 = vpop.f32.mrb[182].mxu1 }
 0x408   : > { %v3072_v15 = vpop.f32.mrb[190].mxu0  ;;  %v5387_v51 = vpop.f32.mrb[183].mxu1 }
 0x409   : > { %v3073_v59 = vadd.f32 %v3072_v15, %v2981_v48  ;;  %v5409_v9 = vpop.f32.mrb[191].mxu0 }
 0x40b   : > { %5613 = vmatmul.mubr.msk.bf16.gmra.mrb[32].mxu1 %vm642_vm2, %v6979_v55 }
 0x40c   : > { %5616 = vmatprep.mubr.msk.bf16.mxu1 %vm5770_vm3, %v7557_v36 }
 0x40e   : > { %v2986_v22 = vpop.f32.mrb[184].mxu1 }
 0x40f   : > { %v3077_v42 = vpop.f32.mrb[192].mxu0  ;;  %v5390_v3 = vpop.f32.mrb[185].mxu1 }
 0x410   : > { %v3078_v5 = vadd.f32 %v3077_v42, %v2986_v22  ;;  %v5412_v11 = vpop.f32.mrb[193].mxu0  ;;  %v2989_v17 = vpop.f32.mrb[186].mxu1 }
 0x411   : > { %v3080_v19 = vpop.f32.mrb[194].mxu0  ;;  %v5391_v21 = vpop.f32.mrb[187].mxu1 }
 0x412   : > { %v3081_v6 = vadd.f32 %v3080_v19, %v2989_v17  ;;  %v5413_v55 = vpop.f32.mrb[195].mxu0 }
 0x413   : > { %5617 = vmatmul.mubr.msk.bf16.gmra.mrb[36].mxu1 %vm642_vm2, %v6989_v39 }
 0x414   : > { %5620 = vmatprep.mubr.msk.bf16.mxu1 %vm5770_vm3, %v7557_v36 }
 0x416   : > { %v2994_v27 = vpop.f32.mrb[188].mxu1 }
 0x417   : > { %v3085_v18 = vpop.f32.mrb[196].mxu0  ;;  %v5394_v47 = vpop.f32.mrb[189].mxu1 }
 0x418   : > { %v3086_v26 = vadd.f32 %v3085_v18, %v2994_v27  ;;  %v5416_v53 = vpop.f32.mrb[197].mxu0  ;;  %v2997_v50 = vpop.f32.mrb[190].mxu1 }
 0x419   : > { %v3088_v60 = vpop.f32.mrb[198].mxu0  ;;  %v5395_v63 = vpop.f32.mrb[191].mxu1 }
 0x41a   : > { %v3089_v30 = vadd.f32 %v3088_v60, %v2997_v50  ;;  %v5417_v8 = vpop.f32.mrb[199].mxu0 }
 0x41b   : > { %5621 = vmatmul.mubr.msk.bf16.gmra.mrb[40].mxu1 %vm642_vm2, %v6999_v29  ;;  %vm4464_vm2 = vcmask 257024  }
 0x41e   : > { %v3002_v44 = vpop.f32.mrb[192].mxu1 }
 0x41f   : > { %v3093_v61 = vpop.f32.mrb[200].mxu0  ;;  %v5398_v39 = vpop.f32.mrb[193].mxu1 }
 0x420   : > { %v3094_v34 = vadd.f32 %v3093_v61, %v3002_v44  ;;  %v5420_v25 = vpop.f32.mrb[201].mxu0  ;;  %v3005_v56 = vpop.f32.mrb[194].mxu1 }
 0x421   : > { %v3096_v20 = vpop.f32.mrb[202].mxu0  ;;  %v5399_v23 = vpop.f32.mrb[195].mxu1 }
 0x422   : > { %v3097_v4 = vadd.f32 %v3096_v20, %v3005_v56  ;;  %v5421_v32 = vpop.f32.mrb[203].mxu0 }
 0x426   : > { %v3010_v0 = vpop.f32.mrb[196].mxu1 }
 0x427   : > { %v3101_v33 = vpop.f32.mrb[204].mxu0  ;;  %v5402_v38 = vpop.f32.mrb[197].mxu1 }
 0x428   : > { %v3102_v1 = vadd.f32 %v3101_v33, %v3010_v0  ;;  %v5424_v35 = vpop.f32.mrb[205].mxu0  ;;  %v3013_v57 = vpop.f32.mrb[198].mxu1 }
 0x429   : > { %v3104_v45 = vpop.f32.mrb[206].mxu0  ;;  %v5403_v10 = vpop.f32.mrb[199].mxu1 }
 0x42a   : > { %v3105_v37 = vadd.f32 %v3104_v45, %v3013_v57  ;;  %v5425_v29 = vpop.f32.mrb[207].mxu0 }
 0x42e   : > { %v3177_v49 = vpop.f32.mrb[200].mxu1 }
 0x42f   : > { %v3295_v2 = vpop.f32.mrb[208].mxu0  ;;  %v3216_v52 = vadd.f32 %v3177_v49, %v3070_v14  ;;  %v5430_v12 = vpop.f32.mrb[201].mxu1 }
 0x430   : > { %v5452_v46 = vpop.f32.mrb[209].mxu0  ;;  %v3180_v62 = vpop.f32.mrb[202].mxu1 }
 0x431   : > { %v3298_v13 = vpop.f32.mrb[210].mxu0  ;;  %v3334_v58 = vadd.f32 %v3295_v2, %v3216_v52  ;;  %v3217_v7 = vadd.f32 %v3180_v62, %v3073_v59  ;;  %v5431_v40 = vpop.f32.mrb[203].mxu1 }
 0x432   : > { %v5453_v41 = vpop.f32.mrb[211].mxu0 }
 0x433   : > { %v3335_v16 = vadd.f32 %v3298_v13, %v3217_v7 }
 0x436   : > { %v3185_v43 = vpop.f32.mrb[204].mxu1 }
 0x437   : > { %v3303_v54 = vpop.f32.mrb[212].mxu0  ;;  %v3218_v28 = vadd.f32 %v3185_v43, %v3078_v5  ;;  %v5434_v48 = vpop.f32.mrb[205].mxu1 }
 0x438   : > { %v5456_v15 = vpop.f32.mrb[213].mxu0  ;;  %v3188_v51 = vpop.f32.mrb[206].mxu1 }
 0x439   : > { %v3306_v9 = vpop.f32.mrb[214].mxu0  ;;  %v3336_v24 = vadd.f32 %v3303_v54, %v3218_v28  ;;  %v3219_v31 = vadd.f32 %v3188_v51, %v3081_v6  ;;  %v5435_v22 = vpop.f32.mrb[207].mxu1 }
 0x43a   : > { %v5457_v14 = vpop.f32.mrb[215].mxu0 }
 0x43b   : > { %v3337_v42 = vadd.f32 %v3306_v9, %v3219_v31 }
 0x43e   : > { %v3193_v3 = vpop.f32.mrb[208].mxu1 }
 0x43f   : > { %v3311_v11 = vpop.f32.mrb[216].mxu0  ;;  %v3220_v17 = vadd.f32 %v3193_v3, %v3086_v26  ;;  %v5438_v19 = vpop.f32.mrb[209].mxu1 }
 0x440   : > { %v5460_v59 = vpop.f32.mrb[217].mxu0  ;;  %v3196_v21 = vpop.f32.mrb[210].mxu1 }
 0x441   : > { %v3314_v55 = vpop.f32.mrb[218].mxu0  ;;  %v3338_v27 = vadd.f32 %v3311_v11, %v3220_v17  ;;  %v3221_v18 = vadd.f32 %v3196_v21, %v3089_v30  ;;  %v5439_v47 = vpop.f32.mrb[211].mxu1 }
 0x442   : > { %v5461_v5 = vpop.f32.mrb[219].mxu0 }
 0x443   : > { %v3339_v53 = vadd.f32 %v3314_v55, %v3221_v18 }
 0x446   : > { %v3201_v50 = vpop.f32.mrb[212].mxu1 }
 0x447   : > { %v3319_v60 = vpop.f32.mrb[220].mxu0  ;;  %v3222_v63 = vadd.f32 %v3201_v50, %v3094_v34  ;;  %v5442_v8 = vpop.f32.mrb[213].mxu1 }
 0x448   : > { %v5464_v6 = vpop.f32.mrb[221].mxu0  ;;  %v3204_v44 = vpop.f32.mrb[214].mxu1 }
 0x449   : > { %v3322_v61 = vpop.f32.mrb[222].mxu0  ;;  %v3340_v39 = vadd.f32 %v3319_v60, %v3222_v63  ;;  %v3223_v25 = vadd.f32 %v3204_v44, %v3097_v4  ;;  %v5443_v56 = vpop.f32.mrb[215].mxu1 }
 0x44a   : > { %v5465_v26 = vpop.f32.mrb[223].mxu0 }
 0x44b   : > { %v3341_v20 = vadd.f32 %v3322_v61, %v3223_v25 }
 0x44e   : > { %v3209_v23 = vpop.f32.mrb[216].mxu1 }
 0x44f   : > { %v3327_v32 = vpop.f32.mrb[224].mxu0  ;;  %v3224_v0 = vadd.f32 %v3209_v23, %v3102_v1  ;;  %v5446_v33 = vpop.f32.mrb[217].mxu1 }
 0x450   : > { %v5468_v30 = vpop.f32.mrb[225].mxu0  ;;  %v3212_v38 = vpop.f32.mrb[218].mxu1 }
 0x451   : > { %v3330_v35 = vpop.f32.mrb[226].mxu0  ;;  %v3342_v57 = vadd.f32 %v3327_v32, %v3224_v0  ;;  %v3225_v45 = vadd.f32 %v3212_v38, %v3105_v37  ;;  %v5447_v10 = vpop.f32.mrb[219].mxu1 }
 0x452   : > { %v5469_v34 = vpop.f32.mrb[227].mxu0 }
 0x453   : > { %v3343_v29 = vadd.f32 %v3330_v35, %v3225_v45 }
 0x456   : > { %v3413_v49 = vpop.f32.mrb[220].mxu1 }
 0x457   : > { %v3531_v2 = vpop.f32.mrb[228].mxu0  ;;  %v3452_v52 = vadd.f32 %v3413_v49, %v3334_v58  ;;  %v5474_v12 = vpop.f32.mrb[221].mxu1 }
 0x458   : > { %v5496_v4 = vpop.f32.mrb[229].mxu0  ;;  %v3416_v46 = vpop.f32.mrb[222].mxu1 }
 0x459   : > { %v3534_v62 = vpop.f32.mrb[230].mxu0  ;;  %v3570_v13 = vadd.f32 %v3531_v2, %v3452_v52  ;;  %v3453_v7 = vadd.f32 %v3416_v46, %v3335_v16  ;;  %v5475_v40 = vpop.f32.mrb[223].mxu1 }
 0x45a   : > { %v5497_v1 = vpop.f32.mrb[231].mxu0 }
 0x45b   : > { %v3571_v41 = vadd.f32 %v3534_v62, %v3453_v7 }
 0x45e   : > { %v3421_v43 = vpop.f32.mrb[224].mxu1 }
 0x45f   : > { %v3539_v54 = vpop.f32.mrb[232].mxu0  ;;  %v3454_v28 = vadd.f32 %v3421_v43, %v3336_v24  ;;  %v5478_v48 = vpop.f32.mrb[225].mxu1 }
 0x460   : > { %v5500_v37 = vpop.f32.mrb[233].mxu0  ;;  %v3424_v15 = vpop.f32.mrb[226].mxu1 }
 0x461   : > { %v3542_v51 = vpop.f32.mrb[234].mxu0  ;;  %v3572_v9 = vadd.f32 %v3539_v54, %v3454_v28  ;;  %v3455_v31 = vadd.f32 %v3424_v15, %v3337_v42  ;;  %v5479_v22 = vpop.f32.mrb[227].mxu1 }
 0x462   : > { %v5501_v58 = vpop.f32.mrb[235].mxu0 }
 0x463   : > { %v3573_v14 = vadd.f32 %v3542_v51, %v3455_v31 }
 0x466   : > { %v3429_v3 = vpop.f32.mrb[228].mxu1 }
 0x467   : > { %v3547_v11 = vpop.f32.mrb[236].mxu0  ;;  %v3456_v17 = vadd.f32 %v3429_v3, %v3338_v27  ;;  %v5482_v19 = vpop.f32.mrb[229].mxu1 }
 0x468   : > { %v5504_v16 = vpop.f32.mrb[237].mxu0  ;;  %v3432_v59 = vpop.f32.mrb[230].mxu1 }
 0x469   : > { %v3550_v21 = vpop.f32.mrb[238].mxu0  ;;  %v3574_v55 = vadd.f32 %v3547_v11, %v3456_v17  ;;  %v3457_v18 = vadd.f32 %v3432_v59, %v3339_v53  ;;  %v5483_v47 = vpop.f32.mrb[231].mxu1 }
 0x46a   : > { %v5505_v24 = vpop.f32.mrb[239].mxu0 }
 0x46b   : > { %v3575_v5 = vadd.f32 %v3550_v21, %v3457_v18 }
 0x46e   : > { %v3437_v50 = vpop.f32.mrb[232].mxu1 }
 0x46f   : > { %v3555_v60 = vpop.f32.mrb[240].mxu0  ;;  %v3458_v63 = vadd.f32 %v3437_v50, %v3340_v39  ;;  %v5486_v8 = vpop.f32.mrb[233].mxu1 }
 0x470   : > { %v5508_v42 = vpop.f32.mrb[241].mxu0  ;;  %v3440_v6 = vpop.f32.mrb[234].mxu1 }
 0x471   : > { %v3558_v44 = vpop.f32.mrb[242].mxu0  ;;  %v3576_v61 = vadd.f32 %v3555_v60, %v3458_v63  ;;  %v3459_v25 = vadd.f32 %v3440_v6, %v3341_v20  ;;  %v5487_v56 = vpop.f32.mrb[235].mxu1 }
 0x472   : > { %v5509_v27 = vpop.f32.mrb[243].mxu0 }
 0x473   : > { %v3577_v26 = vadd.f32 %v3558_v44, %v3459_v25 }
 0x476   : > { %v3445_v23 = vpop.f32.mrb[236].mxu1 }
 0x477   : > { %v3563_v32 = vpop.f32.mrb[244].mxu0  ;;  %v3460_v0 = vadd.f32 %v3445_v23, %v3342_v57  ;;  %v5490_v33 = vpop.f32.mrb[237].mxu1 }
 0x478   : > { %v5512_v53 = vpop.f32.mrb[245].mxu0  ;;  %v3448_v30 = vpop.f32.mrb[238].mxu1 }
 0x479   : > { %v3566_v38 = vpop.f32.mrb[246].mxu0  ;;  %v3578_v35 = vadd.f32 %v3563_v32, %v3460_v0  ;;  %v3461_v45 = vadd.f32 %v3448_v30, %v3343_v29  ;;  %v5491_v10 = vpop.f32.mrb[239].mxu1 }
 0x47a   : > { %v5513_v39 = vpop.f32.mrb[247].mxu0 }
 0x47b   : > { %v3579_v34 = vadd.f32 %v3566_v38, %v3461_v45 }
 0x47e   : > { %v3649_v49 = vpop.f32.mrb[240].mxu1 }
 0x47f   : > { %v3767_v2 = vpop.f32.mrb[248].mxu0  ;;  %v3688_v52 = vadd.f32 %v3649_v49, %v3570_v13  ;;  %v5518_v12 = vpop.f32.mrb[241].mxu1 }
 0x480   : > { %v5540_v20 = vpop.f32.mrb[249].mxu0  ;;  %v3652_v4 = vpop.f32.mrb[242].mxu1 }
 0x481   : > { %v3770_v46 = vpop.f32.mrb[250].mxu0  ;;  %v3806_v62 = vadd.f32 %v3767_v2, %v3688_v52  ;;  %v3689_v7 = vadd.f32 %v3652_v4, %v3571_v41  ;;  %v5519_v40 = vpop.f32.mrb[243].mxu1 }
 0x482   : > { %v5541_v57 = vpop.f32.mrb[251].mxu0 }
 0x483   : > { %v3807_v1 = vadd.f32 %v3770_v46, %v3689_v7 }
 0x486   : > { %v3657_v43 = vpop.f32.mrb[244].mxu1 }
 0x487   : > { %v3775_v54 = vpop.f32.mrb[252].mxu0  ;;  %v3690_v28 = vadd.f32 %v3657_v43, %v3572_v9  ;;  %v5522_v48 = vpop.f32.mrb[245].mxu1 }
 0x488   : > { %v5544_v29 = vpop.f32.mrb[253].mxu0  ;;  %v3660_v37 = vpop.f32.mrb[246].mxu1 }
 0x489   : > { %v3778_v15 = vpop.f32.mrb[254].mxu0  ;;  %v3808_v51 = vadd.f32 %v3775_v54, %v3690_v28  ;;  %v3691_v31 = vadd.f32 %v3660_v37, %v3573_v14  ;;  %v5523_v22 = vpop.f32.mrb[247].mxu1 }
 0x48a   : > { %v5545_v13 = vpop.f32.mrb[255].mxu0 }
 0x48b   : > { %v3809_v58 = vadd.f32 %v3778_v15, %v3691_v31 }
 0x48e   : > { %v3665_v3 = vpop.f32.mrb[248].mxu1 }
 0x48f   : > { %v3783_v11 = vpop.f32.mrb[0].mxu0  ;;  %v3692_v17 = vadd.f32 %v3665_v3, %v3574_v55  ;;  %v5526_v19 = vpop.f32.mrb[249].mxu1 }
 0x490   : > { %v5548_v41 = vpop.f32.mrb[1].mxu0  ;;  %v3668_v16 = vpop.f32.mrb[250].mxu1 }
 0x491   : > { %v3786_v59 = vpop.f32.mrb[2].mxu0  ;;  %v3810_v21 = vadd.f32 %v3783_v11, %v3692_v17  ;;  %v3693_v18 = vadd.f32 %v3668_v16, %v3575_v5  ;;  %v5527_v47 = vpop.f32.mrb[251].mxu1 }
 0x492   : > { %v5549_v9 = vpop.f32.mrb[3].mxu0 }
 0x493   : > { %v3811_v24 = vadd.f32 %v3786_v59, %v3693_v18 }
 0x496   : > { %v3673_v50 = vpop.f32.mrb[252].mxu1 }
 0x497   : > { %v3791_v60 = vpop.f32.mrb[4].mxu0  ;;  %v3694_v63 = vadd.f32 %v3673_v50, %v3576_v61  ;;  %v5530_v8 = vpop.f32.mrb[253].mxu1 }
 0x498   : > { %v5552_v14 = vpop.f32.mrb[5].mxu0  ;;  %v3676_v42 = vpop.f32.mrb[254].mxu1 }
 0x499   : > { %v3794_v6 = vpop.f32.mrb[6].mxu0  ;;  %v3812_v44 = vadd.f32 %v3791_v60, %v3694_v63  ;;  %v3695_v25 = vadd.f32 %v3676_v42, %v3577_v26  ;;  %v5531_v56 = vpop.f32.mrb[255].mxu1  ;;  %v4764_v26 = vld [vmem:[%s7496_s8] ss:$0 sm:$0xff] }
 0x49a   : > { %v5553_v55 = vpop.f32.mrb[7].mxu0 }
 0x49b   : > { %v3813_v27 = vadd.f32 %v3794_v6, %v3695_v25 }
 0x49e   : > { %v3681_v23 = vpop.f32.mrb[0].mxu1 }
 0x49f   : > { %v3799_v32 = vpop.f32.mrb[8].mxu0  ;;  %v3696_v0 = vadd.f32 %v3681_v23, %v3578_v35  ;;  %v5534_v33 = vpop.f32.mrb[1].mxu1 }
 0x4a0   : > { %v5556_v5 = vpop.f32.mrb[9].mxu0  ;;  %v3684_v53 = vpop.f32.mrb[2].mxu1 }
 0x4a1   : > { %v3802_v30 = vpop.f32.mrb[10].mxu0  ;;  %v3814_v38 = vadd.f32 %v3799_v32, %v3696_v0  ;;  %v3697_v45 = vadd.f32 %v3684_v53, %v3579_v34  ;;  %v5535_v10 = vpop.f32.mrb[3].mxu1 }
 0x4a2   : > { %v5557_v61 = vpop.f32.mrb[11].mxu0 }
 0x4a3   : > { %v3815_v39 = vadd.f32 %v3802_v30, %v3697_v45 }
 0x4a6   : > { %v3885_v49 = vpop.f32.mrb[4].mxu1 }
 0x4a7   : > { %v3924_v2 = vadd.f32 %v3885_v49, %v3806_v62  ;;  %v5562_v52 = vpop.f32.mrb[5].mxu1 }
 0x4a8   : > { %v3888_v12 = vpop.f32.mrb[6].mxu1 }
 0x4a9   : > { %v3941_v20 = vadd.f32 %v4764_v26, %v3924_v2  ;;  %v3925_v4 = vadd.f32 %v3888_v12, %v3807_v1  ;;  %v5563_v35 = vpop.f32.mrb[7].mxu1 }
 0x4ab   : > { %v3942_v46 = vadd.f32 %v4764_v26, %v3925_v4  ;;  %v3951_v7 = vmax.f32 %v3941_v20, 0.0 }
 0x4ad   : > { %v3952_v40 = vmax.f32 %v3942_v46, 0.0 }
 0x4ae   : > { %v3893_v57 = vpop.f32.mrb[8].mxu1 }
 0x4af   : > { %v3967_v43 = vpack.c.bf16 %v3952_v40, %v3951_v7  ;;  %v3926_v34 = vadd.f32 %v3893_v57, %v3808_v51  ;;  %v5566_v54 = vpop.f32.mrb[9].mxu1 }
 0x4b0   : > { %v3896_v28 = vpop.f32.mrb[10].mxu1  ;;  %v4270_v54 = vld [vmem:[%s7500_s12 + $0x8] sm:$0xff] }
 0x4b1   : > { %v3943_v48 = vadd.f32 %v4764_v26, %v3926_v34  ;;  %v3927_v29 = vadd.f32 %v3896_v28, %v3809_v58  ;;  %v5567_v37 = vpop.f32.mrb[11].mxu1  ;;  %5583 = vmatmul.mubr.msk.bf16.vlgmr.msra.gmra.mrb[12].mxu0 %vm1753_vm4, %v3967_v43  ;;  %v4269_v34 = vld [vmem:[%s7500_s12] sm:$0xff]  ;;  %v5772_v28 = vmov 0.0|0.0  }
 0x4b2   : > { %5586 = vmatprep.mubr.msk.bf16.mxu0 %vm5770_vm3, %v7557_v36  ;;  %5640 = vmatprep.subr.bf16.mxu0 %v5772_v28  ;;  %v4272_v37 = vld [vmem:[%s7500_s12 + $0x18] sm:$0xff] }
 0x4b3   : > { %v3944_v62 = vadd.f32 %v4764_v26, %v3927_v29  ;;  %v3953_v15 = vmax.f32 %v3943_v48, 0.0  ;;  %v5641_v48 = vpack.c.bf16 %v4270_v54, %v4269_v34  ;;  %v4271_v29 = vld [vmem:[%s7500_s12 + $0x10] sm:$0xff] }
 0x4b5   : > { %v3954_v1 = vmax.f32 %v3944_v62, 0.0  ;;  %5642 = vmatpush3.bf16.msra.mxu0 %v5641_v48  ;;  %v5644_v62 = vpack.c.bf16 %v4272_v37, %v4271_v29 }
 0x4b6   : > { %v3901_v31 = vpop.f32.mrb[12].mxu1  ;;  %5643 = vmatprep.subr.bf16.mxu0 %v5772_v28 }
 0x4b7   : > { %v3968_v22 = vpack.c.bf16 %v3954_v1, %v3953_v15  ;;  %v3928_v13 = vadd.f32 %v3901_v31, %v3810_v21  ;;  %v5570_v3 = vpop.f32.mrb[13].mxu1 }
 0x4b8   : > { %v3904_v11 = vpop.f32.mrb[14].mxu1 }
 0x4b9   : > { %v3945_v17 = vadd.f32 %v4764_v26, %v3928_v13  ;;  %v3929_v51 = vadd.f32 %v3904_v11, %v3811_v24  ;;  %v5571_v19 = vpop.f32.mrb[15].mxu1  ;;  %5587 = vmatmul.mubr.msk.bf16.gmra.mrb[16].mxu0 %vm1753_vm4, %v3968_v22  ;;  %v7308_v11 = vld [vmem:[%s7499_s11] ss:$0 sm:$0xff] }
 0x4ba   : > { %5590 = vmatprep.mubr.msk.bf16.mxu0 %vm5770_vm3, %v7557_v36  ;;  %5645 = vmatpush3.bf16.msra.mxu0 %v5644_v62 }
 0x4bb   : > { %v3946_v58 = vadd.f32 %v4764_v26, %v3929_v51  ;;  %v3955_v41 = vmax.f32 %v3945_v17, 0.0  ;;  %5635 = vmatprep.subr.mxu0 %v7557_v36 }
 0x4bd   : > { %v3956_v16 = vmax.f32 %v3946_v58, 0.0 }
 0x4be   : > { %v3909_v59 = vpop.f32.mrb[16].mxu1 }
 0x4bf   : > { %v3969_v18 = vpack.c.bf16 %v3956_v16, %v3955_v41  ;;  %v3930_v47 = vadd.f32 %v3909_v59, %v3812_v44  ;;  %v5574_v9 = vpop.f32.mrb[17].mxu1 }
 0x4c0   : > { %v3912_v50 = vpop.f32.mrb[18].mxu1 }
 0x4c1   : > { %v3947_v60 = vadd.f32 %v4764_v26, %v3930_v47  ;;  %v3931_v21 = vadd.f32 %v3912_v50, %v3813_v27  ;;  %v5575_v63 = vpop.f32.mrb[19].mxu1  ;;  %5591 = vmatmul.mubr.msk.bf16.gmra.mrb[20].mxu0 %vm1753_vm4, %v3969_v18 }
 0x4c2   : > { %5594 = vmatprep.mubr.msk.bf16.mxu0 %vm5770_vm3, %v7557_v36 }
 0x4c3   : > { %v3948_v24 = vadd.f32 %v4764_v26, %v3931_v21  ;;  %v3957_v8 = vmax.f32 %v3947_v60, 0.0 }
 0x4c5   : > { %v3958_v14 = vmax.f32 %v3948_v24, 0.0 }
 0x4c6   : > { %v3917_v42 = vpop.f32.mrb[20].mxu1 }
 0x4c7   : > { %v3970_v6 = vpack.c.bf16 %v3958_v14, %v3957_v8  ;;  %v3932_v25 = vadd.f32 %v3917_v42, %v3814_v38  ;;  %v5578_v56 = vpop.f32.mrb[21].mxu1 }
 0x4c8   : > { %v3920_v55 = vpop.f32.mrb[22].mxu1 }
 0x4c9   : > { %v3949_v23 = vadd.f32 %v4764_v26, %v3932_v25  ;;  %v3933_v44 = vadd.f32 %v3920_v55, %v3815_v39  ;;  %v5579_v32 = vpop.f32.mrb[23].mxu1  ;;  %5595 = vmatmul.mubr.msk.bf16.gmra.mrb[24].mxu0 %vm1753_vm4, %v3970_v6 }
 0x4ca   : > { %5598 = vmatprep.mubr.msk.bf16.mxu0 %vm5770_vm3, %v7557_v36 }
 0x4cb   : > { %v3950_v27 = vadd.f32 %v4764_v26, %v3933_v44  ;;  %v3959_v0 = vmax.f32 %v3949_v23, 0.0 }
 0x4cd   : > { %v3960_v33 = vmax.f32 %v3950_v27, 0.0 }
 0x4ce   : > { %v4116_v5 = vpop.f32.mrb[24].mxu1 }
 0x4cf   : > { %v3971_v53 = vpack.c.bf16 %v3960_v33, %v3959_v0  ;;  %v5606_v30 = vpop.f32.mrb[25].mxu1 }
 0x4d0   : > { %v4119_v45 = vpop.f32.mrb[26].mxu1 }
 0x4d1   : > { %5599 = vmatmul.mubr.msk.bf16.gmra.mrb[28].mxu0 %vm1753_vm4, %v3971_v53  ;;  %v5607_v38 = vpop.f32.mrb[27].mxu1  ;;  %vm4476_vm4 = vcmask 259072  }
 0x4d2   : > { %5632 = vmatprep.mubr.msk.f32.mxu0 %vm5770_vm3, %v7557_v36 }
 0x4d6   : > { %v4124_v10 = vpop.f32.mrb[28].mxu1 }
 0x4d7   : > { %v5610_v61 = vpop.f32.mrb[29].mxu1 }
 0x4d8   : > { %v4127_v39 = vpop.f32.mrb[30].mxu1 }
 0x4d9   : > { %v5611_v49 = vpop.f32.mrb[31].mxu1 }
 0x4de   : > { %v4132_v2 = vpop.f32.mrb[32].mxu1 }
 0x4df   : > { %v5614_v52 = vpop.f32.mrb[33].mxu1 }
 0x4e0   : > { %v4135_v12 = vpop.f32.mrb[34].mxu1 }
 0x4e1   : > { %v5615_v26 = vpop.f32.mrb[35].mxu1 }
 0x4e6   : > { %v7284_v20 = vpop.f32.mrb[36].mxu1 }
 0x4e7   : > { %v5618_v4 = vpop.f32.mrb[37].mxu1 }
 0x4e8   : > { %v7286_v35 = vpop.f32.mrb[38].mxu1 }
 0x4e9   : > { %v5619_v46 = vpop.f32.mrb[39].mxu1 }
 0x4ee   : > { %v7288_v7 = vpop.f32.mrb[40].mxu1 }
 0x4ef   : > { %v5622_v40 = vpop.f32.mrb[41].mxu1 }
 0x4f0   : > { %v7290_v57 = vpop.f32.mrb[42].mxu1 }
 0x4f1   : > { %v5623_v43 = vpop.f32.mrb[43].mxu1 }
 0x584   : > { %v4025_v15 = vpop.f32.mrb[12].mxu0 }
 0x585   : > { %v4117_v1 = vadd.f32 %v4116_v5, %v4025_v15  ;;  %v5584_v31 = vpop.f32.mrb[13].mxu0 }
 0x586   : > { %v4028_v22 = vpop.f32.mrb[14].mxu0 }
 0x587   : > { %v4120_v13 = vadd.f32 %v4119_v45, %v4028_v22  ;;  %v5585_v3 = vpop.f32.mrb[15].mxu0  ;;  %v7311_v51 = vadd.f32 %v7308_v11, %v4117_v1 }
 0x589   : > { %v7314_v19 = vadd.f32 %v7308_v11, %v4120_v13  ;;  %v4172_v9 = vsel %vm556_vm0, %v7311_v51, 0.0 }
 0x58a   : > { %v4173_v14 = vrot.slane %v4172_v9, 4 }
 0x58b   : > { %v4182_v50 = vrot.slane %v7314_v19, 2 }
 0x58c   : > { %v4033_v17 = vpop.f32.mrb[16].mxu0  ;;  %v4174_v30 = vadd.f32 %v4173_v14, %v4172_v9 }
 0x58d   : > { %v4125_v58 = vadd.f32 %v4124_v10, %v4033_v17  ;;  %v5588_v41 = vpop.f32.mrb[17].mxu0 }
 0x58e   : > { %v4036_v16 = vpop.f32.mrb[18].mxu0 }
 0x58f   : > { %v7317_v59 = vadd.f32 %v7308_v11, %v4125_v58  ;;  %v4128_v18 = vadd.f32 %v4127_v39, %v4036_v16  ;;  %v5589_v47 = vpop.f32.mrb[19].mxu0 }
 0x591   : > { %v4183_v60 = vrot.slane %v7317_v59, 2  ;;  %v7324_v21 = vadd.f32 %v7308_v11, %v4128_v18  ;;  %v4195_v24 = vrot.slane %v7317_v59, 4 }
 0x593   : > { %v4184_v63 = vsel %vm4181_vm12, %v4182_v50, %v4183_v60  ;;  %v4196_v8 = vrot.slane %v7324_v21, 4  ;;  %v4208_v45 = vrot.slane %v7324_v21, 6 }
 0x594   : > { %v4186_v42 = vsel %vm556_vm0, %v4184_v63, 0.0  ;;  %v4041_v6 = vpop.f32.mrb[20].mxu0 }
 0x595   : > { %v4187_v25 = vrot.slane %v4186_v42, 4  ;;  %v4197_v56 = vsel %vm714_vm1, %v4195_v24, %v4196_v8  ;;  %v4133_v55 = vadd.f32 %v4132_v2, %v4041_v6  ;;  %v5592_v23 = vpop.f32.mrb[21].mxu0  ;;  %v4175_v2 = vrot.slane %v4174_v30, 2 }
 0x596   : > { %v4199_v44 = vsel %vm556_vm0, %v4197_v56, 0.0  ;;  %v4044_v32 = vpop.f32.mrb[22].mxu0 }
 0x597   : > { %v4188_v27 = vadd.f32 %v4187_v25, %v4186_v42  ;;  %v4200_v0 = vrot.slane %v4199_v44, 4  ;;  %v7333_v33 = vadd.f32 %v7308_v11, %v4133_v55  ;;  %v4136_v5 = vadd.f32 %v4135_v12, %v4044_v32  ;;  %v5593_v53 = vpop.f32.mrb[23].mxu0 }
 0x598   : > { %v4176_v37 = vadd.f32 %v4175_v2, %v4174_v30 }
 0x599   : > { %v4209_v38 = vrot.slane %v7333_v33, 6  ;;  %v7338_v10 = vadd.f32 %v7308_v11, %v4136_v5  ;;  %v4189_v61 = vrot.slane %v4188_v27, 2  ;;  %v4201_v39 = vadd.f32 %v4200_v0, %v4199_v44 }
 0x59a   : > { %v4177_v3 = vrot.slane %v4176_v37, 1 }
 0x59b   : > { %v4210_v49 = vsel %vm1838_vm5, %v4208_v45, %v4209_v38  ;;  %v4220_v26 = vsel %vm556_vm0, %v7338_v10, 0.0  ;;  %v4190_v43 = vadd.f32 %v4189_v61, %v4188_v27  ;;  %v4202_v34 = vrot.slane %v4201_v39, 2 }
 0x59c   : > { %v4212_v52 = vsel %vm556_vm0, %v4210_v49, 0.0  ;;  %v4049_v12 = vpop.f32.mrb[24].mxu0  ;;  %v4221_v48 = vrot.slane %v4220_v26, 4  ;;  %v4178_v6 = vadd.f32 %v4177_v3, %v4176_v37 }
 0x59d   : > { %v4213_v4 = vrot.slane %v4212_v52, 4  ;;  %v4141_v46 = vadd.f32 %v7284_v20, %v4049_v12  ;;  %v5596_v40 = vpop.f32.mrb[25].mxu0  ;;  %v4191_v31 = vrot.slane %v4190_v43, 1  ;;  %v4203_v22 = vadd.f32 %v4202_v34, %v4201_v39 }
 0x59e   : > { %v4052_v54 = vpop.f32.mrb[26].mxu0  ;;  %v4222_v20 = vadd.f32 %v4221_v48, %v4220_v26 }
 0x59f   : > { %v4214_v28 = vadd.f32 %v4213_v4, %v4212_v52  ;;  %v5597_v29 = vpop.f32.mrb[27].mxu0  ;;  %v7346_v62 = vadd.f32 %v7308_v11, %v4141_v46  ;;  %v4144_v15 = vadd.f32 %v7286_v35, %v4052_v54  ;;  %v4192_v9 = vadd.f32 %v4191_v31, %v4190_v43 }
 0x5a0   : > { %v4204_v50 = vrot.slane %v4203_v22, 1  ;;  %v4223_v63 = vrot.slane %v4222_v20, 2 }
 0x5a1   : > { %v4215_v1 = vrot.slane %v4214_v28, 2  ;;  %v7350_v13 = vadd.f32 %v7308_v11, %v4144_v15  ;;  %v4230_v17 = vrot.slane %v7346_v62, 2  ;;  %v4193_v44 = vadd.f32 %v4192_v9, %v4178_v6 }
 0x5a2   : > { %v4205_v32 = vadd.f32 %v4204_v50, %v4203_v22  ;;  %v4224_v0 = vadd.f32 %v4223_v63, %v4222_v20  ;;  %v4433_v6 = vlaneseq }
 0x5a3   : > { %v4231_v58 = vrot.slane %v7350_v13, 2  ;;  %v4216_v16 = vadd.f32 %v4215_v1, %v4214_v28 }
 0x5a4   : > { %v4057_v41 = vpop.f32.mrb[28].mxu0  ;;  %v4206_v2 = vadd.f32 %v4205_v32, %v4193_v44  ;;  %v4225_v52 = vrot.slane %v4224_v0, 1  ;;  %v5698_v32 = vld [vmem:[%s5920_s17 + $0x10] sm:$0xff] }
 0x5a5   : > { %v4149_v18 = vadd.f32 %v7288_v7, %v4057_v41  ;;  %v5600_v47 = vpop.f32.mrb[29].mxu0  ;;  %v4232_v35 = vsel %vm4181_vm12, %v4230_v17, %v4231_v58  ;;  %v4217_v56 = vrot.slane %v4216_v16, 1  ;;  %v4243_v7 = vrot.slane %v7350_v13, 4  ;;  %v4348_v41 = vld [vmem:[%s7502_s14] sm:$0x3] }
 0x5a6   : > { %v4060_v60 = vpop.f32.mrb[30].mxu0  ;;  %v4234_v24 = vsel %vm556_vm0, %v4232_v35, 0.0  ;;  %v4226_v34 = vadd.f32 %v4225_v52, %v4224_v0  ;;  %v5699_v0 = vld [vmem:[%s5920_s17 + $0x18] sm:$0xff] }
 0x5a7   : > { %v7358_v8 = vadd.f32 %v7308_v11, %v4149_v18  ;;  %v4152_v14 = vadd.f32 %v7290_v57, %v4060_v60  ;;  %v5601_v42 = vpop.f32.mrb[31].mxu0  ;;  %v4235_v25 = vrot.slane %v4234_v24, 4  ;;  %v4218_v38 = vadd.f32 %v4217_v56, %v4216_v16  ;;  %v4273_v16 = vld [vmem:[%s7501_s13] sm:$0x1] }
 0x5a9   : > { %v4244_v55 = vrot.slane %v7358_v8, 4  ;;  %v7364_v23 = vadd.f32 %v7308_v11, %v4152_v14  ;;  %v4236_v27 = vadd.f32 %v4235_v25, %v4234_v24  ;;  %v4256_v53 = vrot.slane %v7358_v8, 6 }
 0x5aa   : > { %v4219_v46 = vadd.f32 %v4218_v38, %v4206_v2  ;;  %v4434_v25 = vshrl.u32 %v4433_v6, 7  ;;  %v5702_v38 = vld [vmem:[%s5920_s17 + $0x38] sm:$0xff] }
 0x5ab   : > { %v4245_v5 = vsel %vm714_vm1, %v4243_v7, %v4244_v55  ;;  %v4257_v57 = vrot.slane %v7364_v23, 6  ;;  %v4237_v30 = vrot.slane %v4236_v27, 2  ;;  %v5697_v7 = vld [vmem:[%s5920_s17 + $0x8] sm:$0xff]  ;;  %vm4462_vm1 = vcmask 261124  }
 0x5ac   : > { %v4247_v45 = vsel %vm556_vm0, %v4245_v5, 0.0  ;;  %v4227_v29 = vadd.f32 %v4226_v34, %v4219_v46  ;;  %v4435_v56 = vsub.s32 0, %v4434_v25  ;;  %v4444_v55 = vrot.slane %v5697_v7, 6 }
 0x5ad   : > { %v4248_v61 = vrot.slane %v4247_v45, 4  ;;  %v4258_v39 = vsel %vm1838_vm5, %v4256_v53, %v4257_v57  ;;  %v4238_v49 = vadd.f32 %v4237_v30, %v4236_v27  ;;  %v4456_v27 = vrot.slane %v5698_v32, 4  ;;  %v5700_v53 = vld [vmem:[%s5920_s17 + $0x28] sm:$0xff]  ;;  %v5701_v30 = vld [vmem:[%s5920_s17 + $0x30] sm:$0xff] }
 0x5ae   : > { %v4260_v11 = vsel %vm556_vm0, %v4258_v39, 0.0  ;;  %v4468_v5 = vrot.slane %v5699_v0, 2  ;;  %v4485_v57 = vrot.slane %v5700_v53, 6 }
 0x5af   : > { %v4249_v26 = vadd.f32 %v4248_v61, %v4247_v45  ;;  %v4261_v12 = vrot.slane %v4260_v11, 4  ;;  %v4239_v4 = vrot.slane %v4238_v49, 1  ;;  %v4495_v45 = vrot.slane %v5701_v30, 4 }
 0x5b0   : > { %v4505_v61 = vrot.slane %v5702_v38, 2 }
 0x5b1   : > { %v4250_v40 = vrot.slane %v4249_v26, 2  ;;  %v4262_v43 = vadd.f32 %v4261_v12, %v4260_v11  ;;  %v4240_v54 = vadd.f32 %v4239_v4, %v4238_v49 }
 0x5b3   : > { %v4251_v28 = vadd.f32 %v4250_v40, %v4249_v26  ;;  %v4263_v48 = vrot.slane %v4262_v43, 2  ;;  %v4241_v1 = vadd.f32 %v4240_v54, %v4227_v29  ;;  %v5703_v40 = vld [vmem:[%s5920_s17] sm:$0xff] }
 0x5b4   : > { %v5704_v29 = vld [vmem:[%s5920_s17 + $0x20] sm:$0xff]  ;;  %s4786_s17 = sshll.u32 %s5882_s25, 10 }
 0x5b5   : > { %v4252_v37 = vrot.slane %v4251_v28, 1  ;;  %v4264_v15 = vadd.f32 %v4263_v48, %v4262_v43  ;;  %s7435_s28 = scalar_lea.hbm %s7504_s16, %s4786_s17  ;;  %s5711_s17 = scalar_lea.vmem %s5710_s18, 2048 }
 0x5b6   : > { %p5713_p1 = scmp.lt.s32.totalorder %s5711_s17, %s5705_s23 }
 0x5b7   : > { %v4253_v31 = vadd.f32 %v4252_v37, %v4251_v28  ;;  %v4265_v22 = vrot.slane %v4264_v15, 1 }
 0x5b8   : > { %p5714_p2 = por %p5713_p1, %p5712_p0 }
 0x5b9   : > { %v4254_v20 = vadd.f32 %v4253_v31, %v4241_v1  ;;  %v4266_v3 = vadd.f32 %v4265_v22, %v4264_v15 }
 0x5ba   : > { %p5715_p3 = pnand %p5714_p2, %p5708_p13 }
 0x5bb   : > { %v4267_v17 = vadd.f32 %v4266_v3, %v4254_v20 }
 0x5bd   : > { %v4268_v58 = vmul.f32 0.015625, %v4267_v17 }
 0x5bf   : > { %5633 = vmatmul.mubr.msk.f32.vlgmr.msra.gmra.mrb[32].mxu0 %vm556_vm0, %v4268_v58 }
 0x5c0   : > { %5637 = vmatprep.mubr.msk.f32.mxu0 %vm5770_vm3, %v7557_v36  ;;  %5636 = vmatpush3.msk.msra.mxu0 %vm1838_vm5, %v4348_v41  ;;  %v4349_v36 = vld [vmem:[%s7503_s15] sm:$0x1]  ;;  %vm4474_vm3 = vcmask 261126  }
 0x692   : > { %v4343_v18 = vpop.f32.mrb[32].mxu0 }
 0x693   : > { %v4344_v47 = vadd.f32 %v4343_v18, %v4273_v16  ;;  %v5634_v9 = vpop.f32.mrb[33].mxu0 }
 0x695   : > { %v4347_v50 = vmax.f32 %v4344_v47, 0.0 }
 0x697   : > { %5638 = vmatmul.mubr.msk.f32.vlgmr.msra.gmra.mrb[34].mxu0 %vm4350_vm13, %v4347_v50 }
 0x76a   : > { %v4423_v35 = vpop.f32.mrb[34].mxu0 }
 0x76b   : > { %v4424_v60 = vadd.f32 %v4423_v35, %v4349_v36  ;;  %v5639_v63 = vpop.f32.mrb[35].mxu0 }
 0x76d   : > { %v4779_v24 = vmul.f32 -1.442695, %v4424_v60 }
 0x76f   : > { %5693 = vpow2.f32 %v4779_v24 }
 0x779   : > { %v5694_v14 = vpop.eup %5693 }
 0x77a   : > { %v4430_v42 = vadd.f32 1.0, %v5694_v14 }
 0x77c   : > { %5695 = vrcp.f32 %v4430_v42 }
 0x786   : > { %v5696_v44 = vpop.eup %5695 }
 0x787   : > { %v4436_v39 = vrot.slane %v5696_v44, %v4435_v56 }
 0x789   : > { %v4437_v49 = vmul.f32 %v4436_v39, %v7311_v51  ;;  %v4441_v11 = vmul.f32 %v4436_v39, %v7314_v19  ;;  %v4442_v2 = vmul.f32 %v4436_v39, %v7317_v59  ;;  %v4454_v52 = vmul.f32 %v4436_v39, %v7324_v21 }
 0x78a   : > { %v4466_v26 = vmul.f32 %v4436_v39, %v7333_v33  ;;  %v4478_v12 = vmul.f32 %v4436_v39, %v7338_v10  ;;  %v4482_v4 = vmul.f32 %v4436_v39, %v7346_v62  ;;  %v4483_v46 = vmul.f32 %v4436_v39, %v7350_v13 }
 0x78b   : > { %v4438_v43 = vadd.f32 %v5703_v40, %v4437_v49  ;;  %v4446_v34 = vadd.f32 %v4444_v55, %v4441_v11  ;;  %v4447_v54 = vadd.f32 %v4444_v55, %v4442_v2  ;;  %v4458_v51 = vadd.f32 %v4456_v27, %v4442_v2 }
 0x78c   : > { %v4459_v28 = vadd.f32 %v4456_v27, %v4454_v52  ;;  %v4470_v48 = vadd.f32 %v4468_v5, %v4454_v52  ;;  %v4471_v19 = vadd.f32 %v4468_v5, %v4466_v26  ;;  %v4479_v59 = vadd.f32 %v5704_v29, %v4478_v12 }
 0x78d   : > { %v4439_v37 = vmax.f32 %v4438_v43, 0.0  ;;  %v4448_v21 = vmax.f32 %v4446_v34, 0.0  ;;  %v4449_v15 = vmax.f32 %v4447_v54, 0.0  ;;  %v4460_v33 = vmax.f32 %v4458_v51, 0.0 }
 0x78e   : > { %v4461_v1 = vmax.f32 %v4459_v28, 0.0  ;;  %v4472_v10 = vmax.f32 %v4470_v48, 0.0  ;;  %v4473_v31 = vmax.f32 %v4471_v19, 0.0  ;;  %v4480_v62 = vmax.f32 %v4479_v59, 0.0 }
 0x78f   : > { %4440 = vst.msk [vmem:[%s7404_s19] sm:$0xff] %vm556_vm0, %v4439_v37  ;;  %v4487_v13 = vadd.f32 %v4485_v57, %v4482_v4  ;;  %v4488_v22 = vadd.f32 %v4485_v57, %v4483_v46  ;;  %v4493_v20 = vmul.f32 %v4436_v39, %v7358_v8  ;;  %v4497_v3 = vadd.f32 %v4495_v45, %v4483_v46 }
 0x790   : > { %4451 = vst.msk [vmem:[%s7404_s19 + $0x6] sm:$0xfc] %vm4450_vm14, %v4448_v21  ;;  %v4503_v17 = vmul.f32 %v4436_v39, %v7364_v23 }
 0x791   : > { %4453 = vst.msk [vmem:[%s7404_s19 + $0xe] sm:$0x3] %vm4452_vm15, %v4449_v15  ;;  %v4489_v58 = vmax.f32 %v4487_v13, 0.0  ;;  %v4490_v8 = vmax.f32 %v4488_v22, 0.0  ;;  %v4498_v41 = vadd.f32 %v4495_v45, %v4493_v20  ;;  %v4499_v16 = vmax.f32 %v4497_v3, 0.0 }
 0x792   : > { %4463 = vst.msk [vmem:[%s7404_s19 + $0xc] sm:$0xf0] %vm4462_vm1, %v4460_v33  ;;  %v4507_v18 = vadd.f32 %v4505_v61, %v4493_v20  ;;  %v4508_v47 = vadd.f32 %v4505_v61, %v4503_v17 }
 0x793   : > { %4465 = vst.msk [vmem:[%s7404_s19 + $0x14] sm:$0xf] %vm4464_vm2, %v4461_v1  ;;  %v4500_v9 = vmax.f32 %v4498_v41, 0.0 }
 0x794   : > { %4475 = vst.msk [vmem:[%s7404_s19 + $0x12] sm:$0xc0] %vm4474_vm3, %v4472_v10  ;;  %v4509_v23 = vmax.f32 %v4507_v18, 0.0  ;;  %v4510_v50 = vmax.f32 %v4508_v47, 0.0 }
 0x795   : > { %4477 = vst.msk [vmem:[%s7404_s19 + $0x1a] sm:$0x3f] %vm4476_vm4, %v4473_v31 }
 0x796   : > { %4481 = vst.msk [vmem:[%s7404_s19 + $0x20] sm:$0xff] %vm556_vm0, %v4480_v62 }
 0x797   : > { %4491 = vst.msk [vmem:[%s7404_s19 + $0x26] sm:$0xfc] %vm4450_vm14, %v4489_v58 }
 0x798   : > { %4492 = vst.msk [vmem:[%s7404_s19 + $0x2e] sm:$0x3] %vm4452_vm15, %v4490_v8 }
 0x799   : > { %4501 = vst.msk [vmem:[%s7404_s19 + $0x2c] sm:$0xf0] %vm4462_vm1, %v4499_v16 }
 0x79a   : > { %4502 = vst.msk [vmem:[%s7404_s19 + $0x34] sm:$0xf] %vm4464_vm2, %v4500_v9 }
 0x79b   : > { %4511 = vst.msk [vmem:[%s7404_s19 + $0x32] sm:$0xc0] %vm4474_vm3, %v4509_v23 }
 0x79c   : > { %4512 = vst.msk [vmem:[%s7404_s19 + $0x3a] sm:$0x3f] %vm4476_vm4, %v4510_v50 }
 0x79d   : > { %5718 = shalt.err (!%p5715_p3)
}
 0x79e   : > { %s5719_s30 = scalar_lea.hbm %s7435_s28, 1024  ;;  %s5723_s26 = scalar_lea.hbm %s7504_s16, 2048 }
 0x79f   : > { %p5720_p4 = scmp.ne.s32.totalorder %s7435_s28, %s5719_s30  ;;  %p5724_p9 = scmp.lt.u32.totalorder %s7435_s28, %s7504_s16 }
 0x7a0   : > { %p5725_p10 = scmp.lt.u32.totalorder %s5723_s26, %s5719_s30  ;;  %p5727_p12 = scmp.lt.u32.totalorder %s5719_s30, %s7435_s28 }
 0x7a1   : > { %p5721_p7 = pnand %p5720_p4, %p5899_p5 }
 0x7a2   : > { %p5726_p11 = por %p5725_p10, %p5724_p9 }
 0x7a3   : > { %p5722_p8 = pneg %p5721_p7 }
 0x7a4   : > { %p5728_p13 = por %p5727_p12, %p5726_p11 }
 0x7a6   : > { %p5729_p0 = pnand %p5728_p13, %p5722_p8 }
 0x7a8   : > { %5732 = shalt.err (!%p5729_p0)
}
 0x7a9   : > { %s5774_s23 = smov 128   ;;  %s5775_s17 = smov 8  }
 0x7aa   : > { %5646 = dma.vmem_to_hbm [thread:$0]  (%p5899_p5), %s7437_s20, 1024, %s7435_s28, %s7447_s29, %s5774_s23, %s5774_s23, %s5775_s17  }
 0x7ab PF: > { %p5652_p1 = scmp.ge.s32.totalorder %s5767_s24, 2  ;;  %s4542_s25 = sand.u32 1, %s5755_s21  }
 0x7ac   : > { %s4543_s30 = scalar_lea.sflag [#allocation4], %s4542_s25 }
 0x7ad   : > { %p5649_p2 = pnand %p5652_p1, %p5903_p6 }
 0x7af   : > { %5750 = dma.done.wait (!%p5649_p2), %s4543_s30, 1024  }
 0x7b0   : > { %5752 = vsyncadd (!%p5649_p2), %s4543_s30, 4294966272  ;;  %s7600_s24 = sld [smem:[#allocation7_spill]]  ;;  %s7601_s26 = sld [smem:[#allocation6_spill]] }
 0x7b1   : > { %s7602_s23 = sld [smem:[#allocation8_spill]]  ;;  %s7603_s21 = smov %s5759_s22 }
 0x7b6   : > { %p26_p3 = scmp.ge.s32.totalorder %s7600_s24, 4   ;;  %s7604_s22 = smov %s7601_s26 }
 0x7b8   :  { %28 = sbr.rel (!%p26_p3) target bundleno = 5 (0x5), region = 143 }
 0x7bf   :  { %4548 = vsyncpa [#allocation4], 1 }
 0x7c0   :  { %4550 = vsyncpa [#allocation4 + $0x1], 1 }

</bundles_post_ra>
